<compile_context>
chip_gen: v7x
topology: tpu7x:2x2x1
jax: 0.10.0
libtpu: 0.0.40
codegen_flags: <defaults>
</compile_context>

<pallas_src>
import functools
import math

import jax
import jax.numpy as jnp
from jax.experimental import pallas as pl
from jax.experimental.pallas import tpu as pltpu

TM = 512                        # max M-tile rows (<=512: earlier multi-tile M)
GATHER_MIN_CIN = 64             # gathered single-K matmul when Cin >= this
LANE = 128                      # native lane count (K alignment unit)
SUBLANE_PACK = 16               # bf16 rows per sublane tile (row-pitch align)
_VMEM_LIMIT = 48 * 1024 * 1024  # explicit scoped-VMEM budget (v5e default is
                                # 16 MiB; stays under v7x's 64 MiB physical)


# ----------------------------- Pallas kernels ------------------------------

def _conv_kernel(*refs, taps, taps2, tm, n_mt, relu, gather, has_res, has_aux):
    """Direct conv over the phase-flattened image resident in VMEM.

    gather=True : taps concatenated along K (128-aligned) -> ONE MXU matmul.
    gather=False: per-tap accumulate (tiny-Cin stem only; acc fits in vregs).
    Epilogue fuses folded-BN bias, optional fused downsample-conv branch or
    identity residual, ReLU and the output-dtype cast."""
    if has_aux:
        x_ref, w_ref, b_ref, x2_ref, w2_ref, o_ref = refs
    elif has_res:
        x_ref, w_ref, b_ref, r_ref, o_ref = refs
    else:
        x_ref, w_ref, b_ref, o_ref = refs

    # Tile base row; hinted tm-aligned so tap slice starts are known offsets.
    base = 0 if n_mt == 1 else pl.multiple_of(pl.program_id(1) * tm, tm)

    if gather:
        parts = [x_ref[0, p, pl.ds(base + off, tm), :] for p, off in taps]
        xg = parts[0] if len(parts) == 1 else jnp.concatenate(parts, axis=-1)
        acc = jnp.dot(xg, w_ref[...], preferred_element_type=jnp.float32)
    else:
        acc = None
        for t, (p, off) in enumerate(taps):
            xt = x_ref[0, p, pl.ds(base + off, tm), :]
            part = jnp.dot(xt, w_ref[t], preferred_element_type=jnp.float32)
            acc = part if acc is None else acc + part

    if has_aux:
        # Fused 1x1 (possibly strided) downsample branch of the bottleneck.
        p2, off2 = taps2[0]
        x2 = x2_ref[0, p2, pl.ds(base + off2, tm), :]
        acc = acc + jnp.dot(x2, w2_ref[...], preferred_element_type=jnp.float32)

    acc = acc + b_ref[...]                         # folded-BN bias(es), f32
    if has_res:
        acc = acc + r_ref[0].astype(jnp.float32)   # fused identity residual
    if relu:
        acc = jnp.maximum(acc, 0.0)
    o_ref[0] = acc.astype(o_ref.dtype)             # single cast at the store


def _pool_kernel(x_ref, o_ref, *, taps, tm, n_mt):
    """3x3 stride-2 max-pool as an in-VMEM tap-max over the phase-flattened
    input (no patch tensor in HBM)."""
    base = 0 if n_mt == 1 else pl.multiple_of(pl.program_id(1) * tm, tm)
    acc = None
    for p, off in taps:
        xt = x_ref[0, p, pl.ds(base + off, tm), :]
        acc = xt if acc is None else jnp.maximum(acc, xt)
    o_ref[0] = acc.astype(o_ref.dtype)


# ------------------------ geometry / host-side prep -------------------------

def _conv_geom(H, W, kh, kw, stride, pad):
    """Static geometry of the phase-flattened (space-to-depth) conv layout.

    Tap (i, j) of a k x k / stride-s window becomes a contiguous shifted slice
    (offset `off`) of flattened phase image `pidx`; the flattened output keeps
    Ws - Wo junk columns per row which are sliced off afterwards."""
    s = stride
    Ho = (H + 2 * pad - kh) // s + 1
    Wo = (W + 2 * pad - kw) // s + 1
    Ws = -(-(W + 2 * pad) // s)                  # per-phase padded width
    if kh * kw > 1:
        # Align the row pitch so tap offsets i*Ws start on a sublane boundary
        # (removes ~2/3 of misaligned tap loads for 3x3 convs; the extra junk
        # columns are sliced off afterwards).
        Ws = -(-Ws // SUBLANE_PACK) * SUBLANE_PACK
    taps = tuple(((i % s) * s + (j % s), (i // s) * Ws + (j // s))
                 for i in range(kh) for j in range(kw))
    off_max = max(off for _, off in taps)
    Mo = Ho * Ws                                 # flat output rows (w/ junk)
    if Mo <= TM:
        tm, n_mt = Mo, 1
    else:
        tm = TM
        n_mt = -(-Mo // tm)
    Mpad = tm * n_mt
    # phase image long enough for every tap slice of every (padded) M tile
    Hs = max(-(-(Mpad + off_max) // Ws), -(-(H + 2 * pad) // s))
    return dict(s=s, ho=Ho, wo=Wo, ws=Ws, hs=Hs, taps=taps,
                mo=Mo, mpad=Mpad, tm=tm, n_mt=n_mt)


def _phase_flatten(x, g, pad, pad_value):
    """(B,H,W,C) -> (B, s*s, Hs*Ws, C): pad, space-to-depth by the stride and
    flatten each phase image (one ~1x host copy fused under jit; a no-op for
    1x1 stride-1 convs)."""
    B, H, W, C = x.shape
    s, Hs, Ws = g["s"], g["hs"], g["ws"]
    xq = jnp.pad(x, ((0, 0), (pad, Hs * s - H - pad),
                     (pad, Ws * s - W - pad), (0, 0)),
                 constant_values=pad_value)
    xq = xq.reshape(B, Hs, s, Ws, s, C)
    xq = jnp.transpose(xq, (0, 2, 4, 1, 3, 5))       # (B, s, s, Hs, Ws, C)
    return xq.reshape(B, s * s, Hs * Ws, C)


def _unflatten_out(out, g, Cout):
    B = out.shape[0]
    out = out[:, :g["mo"], :].reshape(B, g["ho"], g["ws"], Cout)
    return out[:, :, :g["wo"], :]


def _pick_tn(cout):
    """Output-channel tile: whole Cout when small, else 256/128 divisor."""
    if cout <= 256:
        return cout
    for t in (256, 128):
        if cout % t == 0:
            return t
    return cout


# ----------------------------- fused conv / pool -----------------------------

def conv_bn(x, params, stride, pad, relu, residual=None, aux=None):
    """Conv2d (BN folded into w/b) + optional fused identity-residual add OR
    fused 1x1 downsample branch (aux=(x_aux, (w,b), stride_aux)) + ReLU.

    x: (B,H,W,Cin) NHWC.  One pallas_call; grid (batch, M-tiles, Cout-tiles),
    all axes parallel (no accumulation across the grid)."""
    w, b = params                                    # (kh,kw,Cin,Cout), (Cout,)
    kh, kw, Cin, Cout = w.shape
    B, H, W, _ = x.shape
    KK = kh * kw
    g = _conv_geom(H, W, kh, kw, stride, pad)
    s, tm, n_mt, Mpad = g["s"], g["tm"], g["n_mt"], g["mpad"]

    # Gathered single-K matmul whenever 128-lane K padding costs <= 2x; the
    # tiny-Cin stem keeps per-tap accumulation (small accumulator, no padding).
    gather = (KK == 1) or (Cin >= GATHER_MIN_CIN)
    if gather and KK > 1:
        Cpad = -(-Cin // LANE) * LANE
        if Cpad != Cin:
            x = jnp.pad(x, ((0, 0), (0, 0), (0, 0), (0, Cpad - Cin)))
            w = jnp.pad(w, ((0, 0), (0, 0), (0, Cpad - Cin), (0, 0)))
    else:
        Cpad = Cin

    Ls = g["hs"] * g["ws"]
    xp = _phase_flatten(x, g, pad, 0.0)
    b = b.astype(jnp.float32)

    tn = _pick_tn(Cout)
    n_nt = Cout // tn

    if gather:
        wm = w.reshape(KK * Cpad, Cout).astype(x.dtype)
        w_spec = pl.BlockSpec((KK * Cpad, tn), lambda bi, mi, ni: (0, ni))
    else:
        wm = w.reshape(KK, Cin, Cout).astype(x.dtype)
        w_spec = pl.BlockSpec((KK, Cin, tn), lambda bi, mi, ni: (0, 0, ni))

    taps2 = None
    aux_inputs, aux_specs = [], []
    if aux is not None:
        # Fused downsample: a 1x1 (stride 1 or 2) conv on the block input,
        # added before the ReLU.  Flat-row geometry must match the main conv.
        assert residual is None and KK == 1 and stride == 1 and pad == 0
        x2, (w2, b2), s2 = aux
        _, H2, W2, Cin2 = x2.shape
        g2 = _conv_geom(H2, W2, 1, 1, s2, 0)
        assert (g2["mo"], g2["ws"], g2["tm"], g2["n_mt"]) == \
               (g["mo"], g["wo"], tm, n_mt)
        xp2 = _phase_flatten(x2, g2, 0, 0.0)
        Ls2 = g2["hs"] * g2["ws"]
        aux_inputs = [xp2, w2.reshape(Cin2, Cout).astype(x.dtype)]
        aux_specs = [
            pl.BlockSpec((1, s2 * s2, Ls2, Cin2),
                         lambda bi, mi, ni: (bi, 0, 0, 0)),
            pl.BlockSpec((Cin2, tn), lambda bi, mi, ni: (0, ni)),
        ]
        taps2 = g2["taps"]
        b = b + b2.astype(jnp.float32)          # fold both BN biases together

    inputs = [xp, wm, b.reshape(1, Cout)] + aux_inputs
    in_specs = [
        # Whole phase-flattened image of one batch element; revisited across
        # the M/Cout tile axes (index_map ignores mi/ni -> DMA'd once/batch).
        # TODO(synk): pipeline_mode=pl.Buffered(1) here on v7x (64 MiB VMEM).
        pl.BlockSpec((1, s * s, Ls, Cpad), lambda bi, mi, ni: (bi, 0, 0, 0)),
        w_spec,
        pl.BlockSpec((1, tn), lambda bi, mi, ni: (0, ni)),
    ] + aux_specs

    if residual is not None:
        # Identity-residual fusion (1x1/stride-1 conv3: no junk columns).
        assert aux is None and g["ws"] == g["wo"] and g["mo"] == g["ho"] * g["wo"]
        rf = residual.reshape(B, -1, Cout).astype(x.dtype)
        if rf.shape[1] != Mpad:
            rf = jnp.pad(rf, ((0, 0), (0, Mpad - rf.shape[1]), (0, 0)))
        inputs.append(rf)
        in_specs.append(pl.BlockSpec((1, tm, tn),
                                     lambda bi, mi, ni: (bi, mi, ni)))

    # NOTE: at the scaled-down demo widths tn < 128 -> masked output stores
    # (accepted); at real ResNet widths the N tiling keeps stores lane-dense.
    out = pl.pallas_call(
        functools.partial(_conv_kernel, taps=g["taps"], taps2=taps2, tm=tm,
                          n_mt=n_mt, relu=relu, gather=gather,
                          has_res=residual is not None,
                          has_aux=aux is not None),
        out_shape=jax.ShapeDtypeStruct((B, Mpad, Cout), x.dtype),
        grid=(B, n_mt, n_nt),
        in_specs=in_specs,
        out_specs=pl.BlockSpec((1, tm, tn), lambda bi, mi, ni: (bi, mi, ni)),
        compiler_params=pltpu.CompilerParams(
            dimension_semantics=("parallel", "parallel", "parallel"),
            vmem_limit_bytes=_VMEM_LIMIT),
    )(*inputs)
    return _unflatten_out(out, g, Cout)


def maxpool2d(x, k=3, stride=2, pad=1):
    B, H, W, C = x.shape
    g = _conv_geom(H, W, k, k, stride, pad)
    s, tm, n_mt, Mpad = g["s"], g["tm"], g["n_mt"], g["mpad"]
    Ls = g["hs"] * g["ws"]
    xp = _phase_flatten(x, g, pad, float(jnp.finfo(x.dtype).min))
    out = pl.pallas_call(
        functools.partial(_pool_kernel, taps=g["taps"], tm=tm, n_mt=n_mt),
        out_shape=jax.ShapeDtypeStruct((B, Mpad, C), x.dtype),
        grid=(B, n_mt),
        in_specs=[pl.BlockSpec((1, s * s, Ls, C), lambda bi, mi: (bi, 0, 0, 0))],
        out_specs=pl.BlockSpec((1, tm, C), lambda bi, mi: (bi, mi, 0)),
        compiler_params=pltpu.CompilerParams(
            dimension_semantics=("parallel", "parallel"),
            vmem_limit_bytes=_VMEM_LIMIT),
    )(xp)
    return _unflatten_out(out, g, C)


def bottleneck(x, p, stride):
    out = conv_bn(x, p["conv1"], 1, 0, relu=True)
    out = conv_bn(out, p["conv2"], stride, 1, relu=True)
    # TODO(synk): fuse conv1(1x1)+conv2(3x3) into one pallas_call (conv1's
    # output staying in VMEM as conv2's phase image) to halve the call count.
    if "downsample" in p:
        # conv3+BN + downsample-conv+BN + add + ReLU in ONE pallas_call.
        return conv_bn(out, p["conv3"], 1, 0, relu=True,
                       aux=(x, p["downsample"], stride))
    # conv3+BN + identity residual add + ReLU in one pallas_call.
    return conv_bn(out, p["conv3"], 1, 0, relu=True, residual=x)


# -------------------------- parameter construction --------------------------

class _KeyGen:
    def __init__(self, key):
        self.key = key

    def __call__(self):
        self.key, sub = jax.random.split(self.key)
        return sub


def _fold_bn(w, gamma, beta, mean, var, eps=1e-5):
    scale = gamma / jnp.sqrt(var + eps)
    w_f = (w * scale).astype(jnp.bfloat16)            # bf16 MXU weights
    b_f = (beta - mean * scale).astype(jnp.float32)   # f32 folded bias
    return w_f, b_f


def _make_conv_bn(kg, kh, kw, cin, cout):
    fan_in = kh * kw * cin
    w = jax.random.normal(kg(), (kh, kw, cin, cout), jnp.float32) / math.sqrt(fan_in)
    gamma = jax.random.uniform(kg(), (cout,), jnp.float32, 0.5, 1.5)
    beta = jax.random.normal(kg(), (cout,), jnp.float32) * 0.1
    mean = jax.random.normal(kg(), (cout,), jnp.float32) * 0.1
    var = jax.random.uniform(kg(), (cout,), jnp.float32, 0.5, 1.5)
    return _fold_bn(w, gamma, beta, mean, var)


def make_resnet50_params(key, base=8, in_ch=3):
    """ResNet-50 topology ([3,4,6,3] bottlenecks) with scaled-down widths;
    synthetic deterministic weights (the pretrained torchvision weights are
    not reproducible in-script)."""
    kg = _KeyGen(key)
    expansion = 4
    params = {"stem": _make_conv_bn(kg, 7, 7, in_ch, base)}
    layers = []
    in_planes = base
    for li, nblocks in enumerate([3, 4, 6, 3]):
        width = base * (2 ** li)
        layer_stride = 1 if li == 0 else 2
        blocks = []
        for bi in range(nblocks):
            s = layer_stride if bi == 0 else 1
            p = {
                "conv1": _make_conv_bn(kg, 1, 1, in_planes, width),
                "conv2": _make_conv_bn(kg, 3, 3, width, width),
                "conv3": _make_conv_bn(kg, 1, 1, width, width * expansion),
            }
            if s != 1 or in_planes != width * expansion:
                p["downsample"] = _make_conv_bn(kg, 1, 1, in_planes,
                                                width * expansion)
            blocks.append(p)
            in_planes = width * expansion
        layers.append(blocks)
    params["layers"] = layers
    return params


# ------------------------------ forward pass ---------------------------------

def fully_use_cnn_forward(params, x_nchw):
    """Mirrors fully_use_cnn.forward. x_nchw: (B, 3, H, W) float32."""
    x = jnp.transpose(x_nchw, (0, 2, 3, 1)).astype(jnp.bfloat16)  # NCHW->NHWC
    x = conv_bn(x, params["stem"], stride=2, pad=3, relu=True)
    x = maxpool2d(x, 3, 2, 1)
    for li, blocks in enumerate(params["layers"]):
        for bi, p in enumerate(blocks):
            stride = 2 if (li > 0 and bi == 0) else 1
            x = bottleneck(x, p, stride)

    feat = jnp.transpose(x, (0, 3, 1, 2)).astype(jnp.float32)     # (B,C,h,w)
    out = feat.reshape(feat.shape[0], feat.shape[1], -1)          # flatten(2)
    out = jnp.transpose(out, (0, 2, 1))                           # transpose(1,2)
    # flatten(start_dim=2) on an already-3D tensor is a no-op
    out = jnp.transpose(out, (0, 2, 1))                           # transpose(1,2)

    # TODO(synk): torch.long is int64; JAX x64 is disabled by default -> int32.
    vis_pe = jnp.arange(out.shape[1], dtype=jnp.int32)
    vis_pe = jnp.broadcast_to(vis_pe[None, :], (out.shape[0], out.shape[1]))
    return out, vis_pe


if __name__ == "__main__":
    key = jax.random.PRNGKey(0)
    pkey, xkey, vkey = jax.random.split(key, 3)

    # ---- correctness spot-checks of the Pallas conv / pool vs lax (f32) ----
    def ref_conv(x, w, b, s, p, relu, residual=None):
        y = jax.lax.conv_general_dilated(
            x, w, window_strides=(s, s), padding=[(p, p), (p, p)],
            dimension_numbers=("NHWC", "HWIO", "NHWC"),
            precision=jax.lax.Precision.HIGHEST)
        y = y + b[None, None, None, :]
        if residual is not None:
            y = y + residual
        return jnp.maximum(y, 0.0) if relu else y

    vkeys = jax.random.split(vkey, 24)
    xv = jax.random.normal(vkeys[0], (2, 16, 16, 5), jnp.float32)
    configs = [(7, 2, 3, 9), (3, 1, 1, 6), (3, 2, 1, 6), (1, 2, 0, 11),
               (1, 1, 0, 4)]
    for n, (kh, s, p, co) in enumerate(configs):
        wv = jax.random.normal(vkeys[2 * n + 1], (kh, kh, 5, co), jnp.float32) * 0.2
        bv = jax.random.normal(vkeys[2 * n + 2], (co,), jnp.float32) * 0.2
        got = conv_bn(xv, (wv, bv), s, p, relu=True)
        want = ref_conv(xv, wv, bv, s, p, relu=True)
        assert jnp.allclose(got, want, atol=5e-2, rtol=5e-2), (kh, s, p, co)

    # fused residual branch (1x1/stride-1, as used for conv3 of most blocks)
    wv = jax.random.normal(vkeys[11], (1, 1, 5, 8), jnp.float32) * 0.2
    bv = jax.random.normal(vkeys[12], (8,), jnp.float32) * 0.2
    rv = jax.random.normal(vkeys[13], (2, 16, 16, 8), jnp.float32)
    got = conv_bn(xv, (wv, bv), 1, 0, relu=True, residual=rv)
    want = ref_conv(xv, wv, bv, 1, 0, True, residual=rv)
    assert jnp.allclose(got, want, atol=5e-2, rtol=5e-2)

    # gathered single-K matmul path (Cin>=64, channel-padded taps) + N tiling
    xg = jax.random.normal(vkeys[14], (2, 8, 8, 64), jnp.float32)
    wg = jax.random.normal(vkeys[15], (3, 3, 64, 512), jnp.float32) * 0.2
    bg = jax.random.normal(vkeys[16], (512,), jnp.float32) * 0.2
    got = conv_bn(xg, (wg, bg), 1, 1, relu=True)
    want = ref_conv(xg, wg, bg, 1, 1, relu=True)
    assert jnp.allclose(got, want, atol=5e-2, rtol=5e-2)

    # fused downsample branch (conv3 1x1 + strided 1x1 downsample + ReLU)
    yv = jax.random.normal(vkeys[17], (2, 8, 8, 16), jnp.float32)
    w3 = jax.random.normal(vkeys[18], (1, 1, 16, 64), jnp.float32) * 0.2
    b3 = jax.random.normal(vkeys[19], (64,), jnp.float32) * 0.2
    xd = jax.random.normal(vkeys[20], (2, 16, 16, 24), jnp.float32)
    wd = jax.random.normal(vkeys[21], (1, 1, 24, 64), jnp.float32) * 0.2
    bd = jax.random.normal(vkeys[22], (64,), jnp.float32) * 0.2
    got = conv_bn(yv, (w3, b3), 1, 0, relu=True, aux=(xd, (wd, bd), 2))
    want = jnp.maximum(ref_conv(yv, w3, b3, 1, 0, relu=False)
                       + ref_conv(xd, wd, bd, 2, 0, relu=False), 0.0)
    assert jnp.allclose(got, want, atol=5e-2, rtol=5e-2)

    # max-pool
    got = maxpool2d(xv, 3, 2, 1)
    want = jax.lax.reduce_window(xv, -jnp.inf, jax.lax.max, (1, 3, 3, 1),
                                 (1, 2, 2, 1), ((0, 0), (1, 1), (1, 1), (0, 0)))
    assert jnp.allclose(got, want, atol=1e-5, rtol=1e-5)

    # ---------------- full scaled-down ResNet-50 forward --------------------
    params = make_resnet50_params(pkey, base=8, in_ch=3)
    x = jax.random.normal(xkey, (2, 3, 64, 64), jnp.float32)     # NCHW input

    out, vis_pe = jax.jit(fully_use_cnn_forward)(params, x)
    out, vis_pe = jax.block_until_ready((out, vis_pe))

    # Scaled-down ResNet-50: final features (B, 256, 2, 2) -> out (B, 256, 4).
    assert out.shape == (2, 256, 4) and out.dtype == jnp.float32
    assert vis_pe.shape == (2, 256) and vis_pe.dtype == jnp.int32
    assert bool(jnp.all(vis_pe[0] == jnp.arange(256)))
    assert bool(jnp.all(jnp.isfinite(out)))
    print("KERNEL_OK")
</pallas_src>

<mosaic_0001>
module attributes {stable_mosaic.version = 11 : i64} {
  func.func @_conv_kernel(%arg0: i32, %arg1: i32, %arg2: i32, %arg3: memref<1x4x192x5xf32, #tpu.memory_space<vmem>>, %arg4: memref<49x5x9xf32, #tpu.memory_space<vmem>>, %arg5: memref<1x9xf32, #tpu.memory_space<vmem>>, %arg6: memref<1x128x9xf32, #tpu.memory_space<vmem>>) attributes {dimension_semantics = [#tpu.dimension_semantics<parallel>, #tpu.dimension_semantics<parallel>, #tpu.dimension_semantics<parallel>], iteration_bounds = array<i64: 2, 1, 1>, scalar_prefetch = 0 : i64, scratch_operands = 0 : i64, tpu.core_type = #tpu.core_type<tc>, window_params = [{transform_indices = @transform_0, window_bounds = array<i64: 1, 4, 192, 5>}, {transform_indices = @transform_1, window_bounds = array<i64: 49, 5, 9>}, {transform_indices = @transform_2, window_bounds = array<i64: 1, 9>}, {transform_indices = @transform_3, window_bounds = array<i64: 1, 128, 9>}]} {
    %c0 = arith.constant 0 : index
    %c0_0 = arith.constant 0 : index
    %c0_1 = arith.constant 0 : index
    %c0_2 = arith.constant 0 : index
    %0 = vector.load %arg3[%c0, %c0_0, %c0_1, %c0_2] : memref<1x4x192x5xf32, #tpu.memory_space<vmem>>, vector<1x1x128x5xf32>
    %1 = vector.shape_cast %0 : vector<1x1x128x5xf32> to vector<128x5xf32>
    %c0_3 = arith.constant 0 : index
    %c0_4 = arith.constant 0 : index
    %c0_5 = arith.constant 0 : index
    %2 = vector.load %arg4[%c0_3, %c0_4, %c0_5] : memref<49x5x9xf32, #tpu.memory_space<vmem>>, vector<1x5x9xf32>
    %3 = vector.shape_cast %2 : vector<1x5x9xf32> to vector<5x9xf32>
    %cst = arith.constant dense<0.000000e+00> : vector<128x9xf32>
    %4 = tpu.matmul %1, %3, %cst {dimension_numbers = #tpu.dot_dimension_numbers<[1], [0], [0], [1], [0, 0, 1, 1], [], []>} : vector<128x5xf32>, vector<5x9xf32>, vector<128x9xf32> -> vector<128x9xf32>
    %c0_6 = arith.constant 0 : index
    %c1 = arith.constant 1 : index
    %c0_7 = arith.constant 0 : index
    %c0_8 = arith.constant 0 : index
    %5 = vector.load %arg3[%c0_6, %c1, %c0_7, %c0_8] : memref<1x4x192x5xf32, #tpu.memory_space<vmem>>, vector<1x1x128x5xf32>
    %6 = vector.shape_cast %5 : vector<1x1x128x5xf32> to vector<128x5xf32>
    %c1_9 = arith.constant 1 : index
    %c0_10 = arith.constant 0 : index
    %c0_11 = arith.constant 0 : index
    %7 = vector.load %arg4[%c1_9, %c0_10, %c0_11] : memref<49x5x9xf32, #tpu.memory_space<vmem>>, vector<1x5x9xf32>
    %8 = vector.shape_cast %7 : vector<1x5x9xf32> to vector<5x9xf32>
    %cst_12 = arith.constant dense<0.000000e+00> : vector<128x9xf32>
    %9 = tpu.matmul %6, %8, %cst_12 {dimension_numbers = #tpu.dot_dimension_numbers<[1], [0], [0], [1], [0, 0, 1, 1], [], []>} : vector<128x5xf32>, vector<5x9xf32>, vector<128x9xf32> -> vector<128x9xf32>
    %10 = arith.addf %4, %9 : vector<128x9xf32>
    %c0_13 = arith.constant 0 : index
    %c0_14 = arith.constant 0 : index
    %c1_15 = arith.constant 1 : index
    %c0_16 = arith.constant 0 : index
    %11 = vector.load %arg3[%c0_13, %c0_14, %c1_15, %c0_16] : memref<1x4x192x5xf32, #tpu.memory_space<vmem>>, vector<1x1x128x5xf32>
    %12 = vector.shape_cast %11 : vector<1x1x128x5xf32> to vector<128x5xf32>
    %c2 = arith.constant 2 : index
    %c0_17 = arith.constant 0 : index
    %c0_18 = arith.constant 0 : index
    %13 = vector.load %arg4[%c2, %c0_17, %c0_18] : memref<49x5x9xf32, #tpu.memory_space<vmem>>, vector<1x5x9xf32>
    %14 = vector.shape_cast %13 : vector<1x5x9xf32> to vector<5x9xf32>
    %cst_19 = arith.constant dense<0.000000e+00> : vector<128x9xf32>
    %15 = tpu.matmul %12, %14, %cst_19 {dimension_numbers = #tpu.dot_dimension_numbers<[1], [0], [0], [1], [0, 0, 1, 1], [], []>} : vector<128x5xf32>, vector<5x9xf32>, vector<128x9xf32> -> vector<128x9xf32>
    %16 = arith.addf %10, %15 : vector<128x9xf32>
    %c0_20 = arith.constant 0 : index
    %c1_21 = arith.constant 1 : index
    %c1_22 = arith.constant 1 : index
    %c0_23 = arith.constant 0 : index
    %17 = vector.load %arg3[%c0_20, %c1_21, %c1_22, %c0_23] : memref<1x4x192x5xf32, #tpu.memory_space<vmem>>, vector<1x1x128x5xf32>
    %18 = vector.shape_cast %17 : vector<1x1x128x5xf32> to vector<128x5xf32>
    %c3 = arith.constant 3 : index
    %c0_24 = arith.constant 0 : index
    %c0_25 = arith.constant 0 : index
    %19 = vector.load %arg4[%c3, %c0_24, %c0_25] : memref<49x5x9xf32, #tpu.memory_space<vmem>>, vector<1x5x9xf32>
    %20 = vector.shape_cast %19 : vector<1x5x9xf32> to vector<5x9xf32>
    %cst_26 = arith.constant dense<0.000000e+00> : vector<128x9xf32>
    %21 = tpu.matmul %18, %20, %cst_26 {dimension_numbers = #tpu.dot_dimension_numbers<[1], [0], [0], [1], [0, 0, 1, 1], [], []>} : vector<128x5xf32>, vector<5x9xf32>, vector<128x9xf32> -> vector<128x9xf32>
    %22 = arith.addf %16, %21 : vector<128x9xf32>
    %c0_27 = arith.constant 0 : index
    %c0_28 = arith.constant 0 : index
    %c2_29 = arith.constant 2 : index
    %c0_30 = arith.constant 0 : index
    %23 = vector.load %arg3[%c0_27, %c0_28, %c2_29, %c0_30] : memref<1x4x192x5xf32, #tpu.memory_space<vmem>>, vector<1x1x128x5xf32>
    %24 = vector.shape_cast %23 : vector<1x1x128x5xf32> to vector<128x5xf32>
    %c4 = arith.constant 4 : index
    %c0_31 = arith.constant 0 : index
    %c0_32 = arith.constant 0 : index
    %25 = vector.load %arg4[%c4, %c0_31, %c0_32] : memref<49x5x9xf32, #tpu.memory_space<vmem>>, vector<1x5x9xf32>
    %26 = vector.shape_cast %25 : vector<1x5x9xf32> to vector<5x9xf32>
    %cst_33 = arith.constant dense<0.000000e+00> : vector<128x9xf32>
    %27 = tpu.matmul %24, %26, %cst_33 {dimension_numbers = #tpu.dot_dimension_numbers<[1], [0], [0], [1], [0, 0, 1, 1], [], []>} : vector<128x5xf32>, vector<5x9xf32>, vector<128x9xf32> -> vector<128x9xf32>
    %28 = arith.addf %22, %27 : vector<128x9xf32>
    %c0_34 = arith.constant 0 : index
    %c1_35 = arith.constant 1 : index
    %c2_36 = arith.constant 2 : index
    %c0_37 = arith.constant 0 : index
    %29 = vector.load %arg3[%c0_34, %c1_35, %c2_36, %c0_37] : memref<1x4x192x5xf32, #tpu.memory_space<vmem>>, vector<1x1x128x5xf32>
    %30 = vector.shape_cast %29 : vector<1x1x128x5xf32> to vector<128x5xf32>
    %c5 = arith.constant 5 : index
    %c0_38 = arith.constant 0 : index
    %c0_39 = arith.constant 0 : index
    %31 = vector.load %arg4[%c5, %c0_38, %c0_39] : memref<49x5x9xf32, #tpu.memory_space<vmem>>, vector<1x5x9xf32>
    %32 = vector.shape_cast %31 : vector<1x5x9xf32> to vector<5x9xf32>
    %cst_40 = arith.constant dense<0.000000e+00> : vector<128x9xf32>
    %33 = tpu.matmul %30, %32, %cst_40 {dimension_numbers = #tpu.dot_dimension_numbers<[1], [0], [0], [1], [0, 0, 1, 1], [], []>} : vector<128x5xf32>, vector<5x9xf32>, vector<128x9xf32> -> vector<128x9xf32>
    %34 = arith.addf %28, %33 : vector<128x9xf32>
    %c0_41 = arith.constant 0 : index
    %c0_42 = arith.constant 0 : index
    %c3_43 = arith.constant 3 : index
    %c0_44 = arith.constant 0 : index
    %35 = vector.load %arg3[%c0_41, %c0_42, %c3_43, %c0_44] : memref<1x4x192x5xf32, #tpu.memory_space<vmem>>, vector<1x1x128x5xf32>
    %36 = vector.shape_cast %35 : vector<1x1x128x5xf32> to vector<128x5xf32>
    %c6 = arith.constant 6 : index
    %c0_45 = arith.constant 0 : index
    %c0_46 = arith.constant 0 : index
    %37 = vector.load %arg4[%c6, %c0_45, %c0_46] : memref<49x5x9xf32, #tpu.memory_space<vmem>>, vector<1x5x9xf32>
    %38 = vector.shape_cast %37 : vector<1x5x9xf32> to vector<5x9xf32>
    %cst_47 = arith.constant dense<0.000000e+00> : vector<128x9xf32>
    %39 = tpu.matmul %36, %38, %cst_47 {dimension_numbers = #tpu.dot_dimension_numbers<[1], [0], [0], [1], [0, 0, 1, 1], [], []>} : vector<128x5xf32>, vector<5x9xf32>, vector<128x9xf32> -> vector<128x9xf32>
    %40 = arith.addf %34, %39 : vector<128x9xf32>
    %c0_48 = arith.constant 0 : index
    %c2_49 = arith.constant 2 : index
    %c0_50 = arith.constant 0 : index
    %c0_51 = arith.constant 0 : index
    %41 = vector.load %arg3[%c0_48, %c2_49, %c0_50, %c0_51] : memref<1x4x192x5xf32, #tpu.memory_space<vmem>>, vector<1x1x128x5xf32>
    %42 = vector.shape_cast %41 : vector<1x1x128x5xf32> to vector<128x5xf32>
    %c7 = arith.constant 7 : index
    %c0_52 = arith.constant 0 : index
    %c0_53 = arith.constant 0 : index
    %43 = vector.load %arg4[%c7, %c0_52, %c0_53] : memref<49x5x9xf32, #tpu.memory_space<vmem>>, vector<1x5x9xf32>
    %44 = vector.shape_cast %43 : vector<1x5x9xf32> to vector<5x9xf32>
    %cst_54 = arith.constant dense<0.000000e+00> : vector<128x9xf32>
    %45 = tpu.matmul %42, %44, %cst_54 {dimension_numbers = #tpu.dot_dimension_numbers<[1], [0], [0], [1], [0, 0, 1, 1], [], []>} : vector<128x5xf32>, vector<5x9xf32>, vector<128x9xf32> -> vector<128x9xf32>
    %46 = arith.addf %40, %45 : vector<128x9xf32>
    %c0_55 = arith.constant 0 : index
    %c3_56 = arith.constant 3 : index
    %c0_57 = arith.constant 0 : index
    %c0_58 = arith.constant 0 : index
    %47 = vector.load %arg3[%c0_55, %c3_56, %c0_57, %c0_58] : memref<1x4x192x5xf32, #tpu.memory_space<vmem>>, vector<1x1x128x5xf32>
    %48 = vector.shape_cast %47 : vector<1x1x128x5xf32> to vector<128x5xf32>
    %c8 = arith.constant 8 : index
    %c0_59 = arith.constant 0 : index
    %c0_60 = arith.constant 0 : index
    %49 = vector.load %arg4[%c8, %c0_59, %c0_60] : memref<49x5x9xf32, #tpu.memory_space<vmem>>, vector<1x5x9xf32>
    %50 = vector.shape_cast %49 : vector<1x5x9xf32> to vector<5x9xf32>
    %cst_61 = arith.constant dense<0.000000e+00> : vector<128x9xf32>
    %51 = tpu.matmul %48, %50, %cst_61 {dimension_numbers = #tpu.dot_dimension_numbers<[1], [0], [0], [1], [0, 0, 1, 1], [], []>} : vector<128x5xf32>, vector<5x9xf32>, vector<128x9xf32> -> vector<128x9xf32>
    %52 = arith.addf %46, %51 : vector<128x9xf32>
    %c0_62 = arith.constant 0 : index
    %c2_63 = arith.constant 2 : index
    %c1_64 = arith.constant 1 : index
    %c0_65 = arith.constant 0 : index
    %53 = vector.load %arg3[%c0_62, %c2_63, %c1_64, %c0_65] : memref<1x4x192x5xf32, #tpu.memory_space<vmem>>, vector<1x1x128x5xf32>
    %54 = vector.shape_cast %53 : vector<1x1x128x5xf32> to vector<128x5xf32>
    %c9 = arith.constant 9 : index
    %c0_66 = arith.constant 0 : index
    %c0_67 = arith.constant 0 : index
    %55 = vector.load %arg4[%c9, %c0_66, %c0_67] : memref<49x5x9xf32, #tpu.memory_space<vmem>>, vector<1x5x9xf32>
    %56 = vector.shape_cast %55 : vector<1x5x9xf32> to vector<5x9xf32>
    %cst_68 = arith.constant dense<0.000000e+00> : vector<128x9xf32>
    %57 = tpu.matmul %54, %56, %cst_68 {dimension_numbers = #tpu.dot_dimension_numbers<[1], [0], [0], [1], [0, 0, 1, 1], [], []>} : vector<128x5xf32>, vector<5x9xf32>, vector<128x9xf32> -> vector<128x9xf32>
    %58 = arith.addf %52, %57 : vector<128x9xf32>
    %c0_69 = arith.constant 0 : index
    %c3_70 = arith.constant 3 : index
    %c1_71 = arith.constant 1 : index
    %c0_72 = arith.constant 0 : index
    %59 = vector.load %arg3[%c0_69, %c3_70, %c1_71, %c0_72] : memref<1x4x192x5xf32, #tpu.memory_space<vmem>>, vector<1x1x128x5xf32>
    %60 = vector.shape_cast %59 : vector<1x1x128x5xf32> to vector<128x5xf32>
    %c10 = arith.constant 10 : index
    %c0_73 = arith.constant 0 : index
    %c0_74 = arith.constant 0 : index
    %61 = vector.load %arg4[%c10, %c0_73, %c0_74] : memref<49x5x9xf32, #tpu.memory_space<vmem>>, vector<1x5x9xf32>
    %62 = vector.shape_cast %61 : vector<1x5x9xf32> to vector<5x9xf32>
    %cst_75 = arith.constant dense<0.000000e+00> : vector<128x9xf32>
    %63 = tpu.matmul %60, %62, %cst_75 {dimension_numbers = #tpu.dot_dimension_numbers<[1], [0], [0], [1], [0, 0, 1, 1], [], []>} : vector<128x5xf32>, vector<5x9xf32>, vector<128x9xf32> -> vector<128x9xf32>
    %64 = arith.addf %58, %63 : vector<128x9xf32>
    %c0_76 = arith.constant 0 : index
    %c2_77 = arith.constant 2 : index
    %c2_78 = arith.constant 2 : index
    %c0_79 = arith.constant 0 : index
    %65 = vector.load %arg3[%c0_76, %c2_77, %c2_78, %c0_79] : memref<1x4x192x5xf32, #tpu.memory_space<vmem>>, vector<1x1x128x5xf32>
    %66 = vector.shape_cast %65 : vector<1x1x128x5xf32> to vector<128x5xf32>
    %c11 = arith.constant 11 : index
    %c0_80 = arith.constant 0 : index
    %c0_81 = arith.constant 0 : index
    %67 = vector.load %arg4[%c11, %c0_80, %c0_81] : memref<49x5x9xf32, #tpu.memory_space<vmem>>, vector<1x5x9xf32>
    %68 = vector.shape_cast %67 : vector<1x5x9xf32> to vector<5x9xf32>
    %cst_82 = arith.constant dense<0.000000e+00> : vector<128x9xf32>
    %69 = tpu.matmul %66, %68, %cst_82 {dimension_numbers = #tpu.dot_dimension_numbers<[1], [0], [0], [1], [0, 0, 1, 1], [], []>} : vector<128x5xf32>, vector<5x9xf32>, vector<128x9xf32> -> vector<128x9xf32>
    %70 = arith.addf %64, %69 : vector<128x9xf32>
    %c0_83 = arith.constant 0 : index
    %c3_84 = arith.constant 3 : index
    %c2_85 = arith.constant 2 : index
    %c0_86 = arith.constant 0 : index
    %71 = vector.load %arg3[%c0_83, %c3_84, %c2_85, %c0_86] : memref<1x4x192x5xf32, #tpu.memory_space<vmem>>, vector<1x1x128x5xf32>
    %72 = vector.shape_cast %71 : vector<1x1x128x5xf32> to vector<128x5xf32>
    %c12 = arith.constant 12 : index
    %c0_87 = arith.constant 0 : index
    %c0_88 = arith.constant 0 : index
    %73 = vector.load %arg4[%c12, %c0_87, %c0_88] : memref<49x5x9xf32, #tpu.memory_space<vmem>>, vector<1x5x9xf32>
    %74 = vector.shape_cast %73 : vector<1x5x9xf32> to vector<5x9xf32>
    %cst_89 = arith.constant dense<0.000000e+00> : vector<128x9xf32>
    %75 = tpu.matmul %72, %74, %cst_89 {dimension_numbers = #tpu.dot_dimension_numbers<[1], [0], [0], [1], [0, 0, 1, 1], [], []>} : vector<128x5xf32>, vector<5x9xf32>, vector<128x9xf32> -> vector<128x9xf32>
    %76 = arith.addf %70, %75 : vector<128x9xf32>
    %c0_90 = arith.constant 0 : index
    %c2_91 = arith.constant 2 : index
    %c3_92 = arith.constant 3 : index
    %c0_93 = arith.constant 0 : index
    %77 = vector.load %arg3[%c0_90, %c2_91, %c3_92, %c0_93] : memref<1x4x192x5xf32, #tpu.memory_space<vmem>>, vector<1x1x128x5xf32>
    %78 = vector.shape_cast %77 : vector<1x1x128x5xf32> to vector<128x5xf32>
    %c13 = arith.constant 13 : index
    %c0_94 = arith.constant 0 : index
    %c0_95 = arith.constant 0 : index
    %79 = vector.load %arg4[%c13, %c0_94, %c0_95] : memref<49x5x9xf32, #tpu.memory_space<vmem>>, vector<1x5x9xf32>
    %80 = vector.shape_cast %79 : vector<1x5x9xf32> to vector<5x9xf32>
    %cst_96 = arith.constant dense<0.000000e+00> : vector<128x9xf32>
    %81 = tpu.matmul %78, %80, %cst_96 {dimension_numbers = #tpu.dot_dimension_numbers<[1], [0], [0], [1], [0, 0, 1, 1], [], []>} : vector<128x5xf32>, vector<5x9xf32>, vector<128x9xf32> -> vector<128x9xf32>
    %82 = arith.addf %76, %81 : vector<128x9xf32>
    %c0_97 = arith.constant 0 : index
    %c0_98 = arith.constant 0 : index
    %c16 = arith.constant 16 : index
    %c0_99 = arith.constant 0 : index
    %83 = vector.load %arg3[%c0_97, %c0_98, %c16, %c0_99] : memref<1x4x192x5xf32, #tpu.memory_space<vmem>>, vector<1x1x128x5xf32>
    %84 = vector.shape_cast %83 : vector<1x1x128x5xf32> to vector<128x5xf32>
    %c14 = arith.constant 14 : index
    %c0_100 = arith.constant 0 : index
    %c0_101 = arith.constant 0 : index
    %85 = vector.load %arg4[%c14, %c0_100, %c0_101] : memref<49x5x9xf32, #tpu.memory_space<vmem>>, vector<1x5x9xf32>
    %86 = vector.shape_cast %85 : vector<1x5x9xf32> to vector<5x9xf32>
    %cst_102 = arith.constant dense<0.000000e+00> : vector<128x9xf32>
    %87 = tpu.matmul %84, %86, %cst_102 {dimension_numbers = #tpu.dot_dimension_numbers<[1], [0], [0], [1], [0, 0, 1, 1], [], []>} : vector<128x5xf32>, vector<5x9xf32>, vector<128x9xf32> -> vector<128x9xf32>
    %88 = arith.addf %82, %87 : vector<128x9xf32>
    %c0_103 = arith.constant 0 : index
    %c1_104 = arith.constant 1 : index
    %c16_105 = arith.constant 16 : index
    %c0_106 = arith.constant 0 : index
    %89 = vector.load %arg3[%c0_103, %c1_104, %c16_105, %c0_106] : memref<1x4x192x5xf32, #tpu.memory_space<vmem>>, vector<1x1x128x5xf32>
    %90 = vector.shape_cast %89 : vector<1x1x128x5xf32> to vector<128x5xf32>
    %c15 = arith.constant 15 : index
    %c0_107 = arith.constant 0 : index
    %c0_108 = arith.constant 0 : index
    %91 = vector.load %arg4[%c15, %c0_107, %c0_108] : memref<49x5x9xf32, #tpu.memory_space<vmem>>, vector<1x5x9xf32>
    %92 = vector.shape_cast %91 : vector<1x5x9xf32> to vector<5x9xf32>
    %cst_109 = arith.constant dense<0.000000e+00> : vector<128x9xf32>
    %93 = tpu.matmul %90, %92, %cst_109 {dimension_numbers = #tpu.dot_dimension_numbers<[1], [0], [0], [1], [0, 0, 1, 1], [], []>} : vector<128x5xf32>, vector<5x9xf32>, vector<128x9xf32> -> vector<128x9xf32>
    %94 = arith.addf %88, %93 : vector<128x9xf32>
    %c0_110 = arith.constant 0 : index
    %c0_111 = arith.constant 0 : index
    %c17 = arith.constant 17 : index
    %c0_112 = arith.constant 0 : index
    %95 = vector.load %arg3[%c0_110, %c0_111, %c17, %c0_112] : memref<1x4x192x5xf32, #tpu.memory_space<vmem>>, vector<1x1x128x5xf32>
    %96 = vector.shape_cast %95 : vector<1x1x128x5xf32> to vector<128x5xf32>
    %c16_113 = arith.constant 16 : index
    %c0_114 = arith.constant 0 : index
    %c0_115 = arith.constant 0 : index
    %97 = vector.load %arg4[%c16_113, %c0_114, %c0_115] : memref<49x5x9xf32, #tpu.memory_space<vmem>>, vector<1x5x9xf32>
    %98 = vector.shape_cast %97 : vector<1x5x9xf32> to vector<5x9xf32>
    %cst_116 = arith.constant dense<0.000000e+00> : vector<128x9xf32>
    %99 = tpu.matmul %96, %98, %cst_116 {dimension_numbers = #tpu.dot_dimension_numbers<[1], [0], [0], [1], [0, 0, 1, 1], [], []>} : vector<128x5xf32>, vector<5x9xf32>, vector<128x9xf32> -> vector<128x9xf32>
    %100 = arith.addf %94, %99 : vector<128x9xf32>
    %c0_117 = arith.constant 0 : index
    %c1_118 = arith.constant 1 : index
    %c17_119 = arith.constant 17 : index
    %c0_120 = arith.constant 0 : index
    %101 = vector.load %arg3[%c0_117, %c1_118, %c17_119, %c0_120] : memref<1x4x192x5xf32, #tpu.memory_space<vmem>>, vector<1x1x128x5xf32>
    %102 = vector.shape_cast %101 : vector<1x1x128x5xf32> to vector<128x5xf32>
    %c17_121 = arith.constant 17 : index
    %c0_122 = arith.constant 0 : index
    %c0_123 = arith.constant 0 : index
    %103 = vector.load %arg4[%c17_121, %c0_122, %c0_123] : memref<49x5x9xf32, #tpu.memory_space<vmem>>, vector<1x5x9xf32>
    %104 = vector.shape_cast %103 : vector<1x5x9xf32> to vector<5x9xf32>
    %cst_124 = arith.constant dense<0.000000e+00> : vector<128x9xf32>
    %105 = tpu.matmul %102, %104, %cst_124 {dimension_numbers = #tpu.dot_dimension_numbers<[1], [0], [0], [1], [0, 0, 1, 1], [], []>} : vector<128x5xf32>, vector<5x9xf32>, vector<128x9xf32> -> vector<128x9xf32>
    %106 = arith.addf %100, %105 : vector<128x9xf32>
    %c0_125 = arith.constant 0 : index
    %c0_126 = arith.constant 0 : index
    %c18 = arith.constant 18 : index
    %c0_127 = arith.constant 0 : index
    %107 = vector.load %arg3[%c0_125, %c0_126, %c18, %c0_127] : memref<1x4x192x5xf32, #tpu.memory_space<vmem>>, vector<1x1x128x5xf32>
    %108 = vector.shape_cast %107 : vector<1x1x128x5xf32> to vector<128x5xf32>
    %c18_128 = arith.constant 18 : index
    %c0_129 = arith.constant 0 : index
    %c0_130 = arith.constant 0 : index
    %109 = vector.load %arg4[%c18_128, %c0_129, %c0_130] : memref<49x5x9xf32, #tpu.memory_space<vmem>>, vector<1x5x9xf32>
    %110 = vector.shape_cast %109 : vector<1x5x9xf32> to vector<5x9xf32>
    %cst_131 = arith.constant dense<0.000000e+00> : vector<128x9xf32>
    %111 = tpu.matmul %108, %110, %cst_131 {dimension_numbers = #tpu.dot_dimension_numbers<[1], [0], [0], [1], [0, 0, 1, 1], [], []>} : vector<128x5xf32>, vector<5x9xf32>, vector<128x9xf32> -> vector<128x9xf32>
    %112 = arith.addf %106, %111 : vector<128x9xf32>
    %c0_132 = arith.constant 0 : index
    %c1_133 = arith.constant 1 : index
    %c18_134 = arith.constant 18 : index
    %c0_135 = arith.constant 0 : index
    %113 = vector.load %arg3[%c0_132, %c1_133, %c18_134, %c0_135] : memref<1x4x192x5xf32, #tpu.memory_space<vmem>>, vector<1x1x128x5xf32>
    %114 = vector.shape_cast %113 : vector<1x1x128x5xf32> to vector<128x5xf32>
    %c19 = arith.constant 19 : index
    %c0_136 = arith.constant 0 : index
    %c0_137 = arith.constant 0 : index
    %115 = vector.load %arg4[%c19, %c0_136, %c0_137] : memref<49x5x9xf32, #tpu.memory_space<vmem>>, vector<1x5x9xf32>
    %116 = vector.shape_cast %115 : vector<1x5x9xf32> to vector<5x9xf32>
    %cst_138 = arith.constant dense<0.000000e+00> : vector<128x9xf32>
    %117 = tpu.matmul %114, %116, %cst_138 {dimension_numbers = #tpu.dot_dimension_numbers<[1], [0], [0], [1], [0, 0, 1, 1], [], []>} : vector<128x5xf32>, vector<5x9xf32>, vector<128x9xf32> -> vector<128x9xf32>
    %118 = arith.addf %112, %117 : vector<128x9xf32>
    %c0_139 = arith.constant 0 : index
    %c0_140 = arith.constant 0 : index
    %c19_141 = arith.constant 19 : index
    %c0_142 = arith.constant 0 : index
    %119 = vector.load %arg3[%c0_139, %c0_140, %c19_141, %c0_142] : memref<1x4x192x5xf32, #tpu.memory_space<vmem>>, vector<1x1x128x5xf32>
    %120 = vector.shape_cast %119 : vector<1x1x128x5xf32> to vector<128x5xf32>
    %c20 = arith.constant 20 : index
    %c0_143 = arith.constant 0 : index
    %c0_144 = arith.constant 0 : index
    %121 = vector.load %arg4[%c20, %c0_143, %c0_144] : memref<49x5x9xf32, #tpu.memory_space<vmem>>, vector<1x5x9xf32>
    %122 = vector.shape_cast %121 : vector<1x5x9xf32> to vector<5x9xf32>
    %cst_145 = arith.constant dense<0.000000e+00> : vector<128x9xf32>
    %123 = tpu.matmul %120, %122, %cst_145 {dimension_numbers = #tpu.dot_dimension_numbers<[1], [0], [0], [1], [0, 0, 1, 1], [], []>} : vector<128x5xf32>, vector<5x9xf32>, vector<128x9xf32> -> vector<128x9xf32>
    %124 = arith.addf %118, %123 : vector<128x9xf32>
    %c0_146 = arith.constant 0 : index
    %c2_147 = arith.constant 2 : index
    %c16_148 = arith.constant 16 : index
    %c0_149 = arith.constant 0 : index
    %125 = vector.load %arg3[%c0_146, %c2_147, %c16_148, %c0_149] : memref<1x4x192x5xf32, #tpu.memory_space<vmem>>, vector<1x1x128x5xf32>
    %126 = vector.shape_cast %125 : vector<1x1x128x5xf32> to vector<128x5xf32>
    %c21 = arith.constant 21 : index
    %c0_150 = arith.constant 0 : index
    %c0_151 = arith.constant 0 : index
    %127 = vector.load %arg4[%c21, %c0_150, %c0_151] : memref<49x5x9xf32, #tpu.memory_space<vmem>>, vector<1x5x9xf32>
    %128 = vector.shape_cast %127 : vector<1x5x9xf32> to vector<5x9xf32>
    %cst_152 = arith.constant dense<0.000000e+00> : vector<128x9xf32>
    %129 = tpu.matmul %126, %128, %cst_152 {dimension_numbers = #tpu.dot_dimension_numbers<[1], [0], [0], [1], [0, 0, 1, 1], [], []>} : vector<128x5xf32>, vector<5x9xf32>, vector<128x9xf32> -> vector<128x9xf32>
    %130 = arith.addf %124, %129 : vector<128x9xf32>
    %c0_153 = arith.constant 0 : index
    %c3_154 = arith.constant 3 : index
    %c16_155 = arith.constant 16 : index
    %c0_156 = arith.constant 0 : index
    %131 = vector.load %arg3[%c0_153, %c3_154, %c16_155, %c0_156] : memref<1x4x192x5xf32, #tpu.memory_space<vmem>>, vector<1x1x128x5xf32>
    %132 = vector.shape_cast %131 : vector<1x1x128x5xf32> to vector<128x5xf32>
    %c22 = arith.constant 22 : index
    %c0_157 = arith.constant 0 : index
    %c0_158 = arith.constant 0 : index
    %133 = vector.load %arg4[%c22, %c0_157, %c0_158] : memref<49x5x9xf32, #tpu.memory_space<vmem>>, vector<1x5x9xf32>
    %134 = vector.shape_cast %133 : vector<1x5x9xf32> to vector<5x9xf32>
    %cst_159 = arith.constant dense<0.000000e+00> : vector<128x9xf32>
    %135 = tpu.matmul %132, %134, %cst_159 {dimension_numbers = #tpu.dot_dimension_numbers<[1], [0], [0], [1], [0, 0, 1, 1], [], []>} : vector<128x5xf32>, vector<5x9xf32>, vector<128x9xf32> -> vector<128x9xf32>
    %136 = arith.addf %130, %135 : vector<128x9xf32>
    %c0_160 = arith.constant 0 : index
    %c2_161 = arith.constant 2 : index
    %c17_162 = arith.constant 17 : index
    %c0_163 = arith.constant 0 : index
    %137 = vector.load %arg3[%c0_160, %c2_161, %c17_162, %c0_163] : memref<1x4x192x5xf32, #tpu.memory_space<vmem>>, vector<1x1x128x5xf32>
    %138 = vector.shape_cast %137 : vector<1x1x128x5xf32> to vector<128x5xf32>
    %c23 = arith.constant 23 : index
    %c0_164 = arith.constant 0 : index
    %c0_165 = arith.constant 0 : index
    %139 = vector.load %arg4[%c23, %c0_164, %c0_165] : memref<49x5x9xf32, #tpu.memory_space<vmem>>, vector<1x5x9xf32>
    %140 = vector.shape_cast %139 : vector<1x5x9xf32> to vector<5x9xf32>
    %cst_166 = arith.constant dense<0.000000e+00> : vector<128x9xf32>
    %141 = tpu.matmul %138, %140, %cst_166 {dimension_numbers = #tpu.dot_dimension_numbers<[1], [0], [0], [1], [0, 0, 1, 1], [], []>} : vector<128x5xf32>, vector<5x9xf32>, vector<128x9xf32> -> vector<128x9xf32>
    %142 = arith.addf %136, %141 : vector<128x9xf32>
    %c0_167 = arith.constant 0 : index
    %c3_168 = arith.constant 3 : index
    %c17_169 = arith.constant 17 : index
    %c0_170 = arith.constant 0 : index
    %143 = vector.load %arg3[%c0_167, %c3_168, %c17_169, %c0_170] : memref<1x4x192x5xf32, #tpu.memory_space<vmem>>, vector<1x1x128x5xf32>
    %144 = vector.shape_cast %143 : vector<1x1x128x5xf32> to vector<128x5xf32>
    %c24 = arith.constant 24 : index
    %c0_171 = arith.constant 0 : index
    %c0_172 = arith.constant 0 : index
    %145 = vector.load %arg4[%c24, %c0_171, %c0_172] : memref<49x5x9xf32, #tpu.memory_space<vmem>>, vector<1x5x9xf32>
    %146 = vector.shape_cast %145 : vector<1x5x9xf32> to vector<5x9xf32>
    %cst_173 = arith.constant dense<0.000000e+00> : vector<128x9xf32>
    %147 = tpu.matmul %144, %146, %cst_173 {dimension_numbers = #tpu.dot_dimension_numbers<[1], [0], [0], [1], [0, 0, 1, 1], [], []>} : vector<128x5xf32>, vector<5x9xf32>, vector<128x9xf32> -> vector<128x9xf32>
    %148 = arith.addf %142, %147 : vector<128x9xf32>
    %c0_174 = arith.constant 0 : index
    %c2_175 = arith.constant 2 : index
    %c18_176 = arith.constant 18 : index
    %c0_177 = arith.constant 0 : index
    %149 = vector.load %arg3[%c0_174, %c2_175, %c18_176, %c0_177] : memref<1x4x192x5xf32, #tpu.memory_space<vmem>>, vector<1x1x128x5xf32>
    %150 = vector.shape_cast %149 : vector<1x1x128x5xf32> to vector<128x5xf32>
    %c25 = arith.constant 25 : index
    %c0_178 = arith.constant 0 : index
    %c0_179 = arith.constant 0 : index
    %151 = vector.load %arg4[%c25, %c0_178, %c0_179] : memref<49x5x9xf32, #tpu.memory_space<vmem>>, vector<1x5x9xf32>
    %152 = vector.shape_cast %151 : vector<1x5x9xf32> to vector<5x9xf32>
    %cst_180 = arith.constant dense<0.000000e+00> : vector<128x9xf32>
    %153 = tpu.matmul %150, %152, %cst_180 {dimension_numbers = #tpu.dot_dimension_numbers<[1], [0], [0], [1], [0, 0, 1, 1], [], []>} : vector<128x5xf32>, vector<5x9xf32>, vector<128x9xf32> -> vector<128x9xf32>
    %154 = arith.addf %148, %153 : vector<128x9xf32>
    %c0_181 = arith.constant 0 : index
    %c3_182 = arith.constant 3 : index
    %c18_183 = arith.constant 18 : index
    %c0_184 = arith.constant 0 : index
    %155 = vector.load %arg3[%c0_181, %c3_182, %c18_183, %c0_184] : memref<1x4x192x5xf32, #tpu.memory_space<vmem>>, vector<1x1x128x5xf32>
    %156 = vector.shape_cast %155 : vector<1x1x128x5xf32> to vector<128x5xf32>
    %c26 = arith.constant 26 : index
    %c0_185 = arith.constant 0 : index
    %c0_186 = arith.constant 0 : index
    %157 = vector.load %arg4[%c26, %c0_185, %c0_186] : memref<49x5x9xf32, #tpu.memory_space<vmem>>, vector<1x5x9xf32>
    %158 = vector.shape_cast %157 : vector<1x5x9xf32> to vector<5x9xf32>
    %cst_187 = arith.constant dense<0.000000e+00> : vector<128x9xf32>
    %159 = tpu.matmul %156, %158, %cst_187 {dimension_numbers = #tpu.dot_dimension_numbers<[1], [0], [0], [1], [0, 0, 1, 1], [], []>} : vector<128x5xf32>, vector<5x9xf32>, vector<128x9xf32> -> vector<128x9xf32>
    %160 = arith.addf %154, %159 : vector<128x9xf32>
    %c0_188 = arith.constant 0 : index
    %c2_189 = arith.constant 2 : index
    %c19_190 = arith.constant 19 : index
    %c0_191 = arith.constant 0 : index
    %161 = vector.load %arg3[%c0_188, %c2_189, %c19_190, %c0_191] : memref<1x4x192x5xf32, #tpu.memory_space<vmem>>, vector<1x1x128x5xf32>
    %162 = vector.shape_cast %161 : vector<1x1x128x5xf32> to vector<128x5xf32>
    %c27 = arith.constant 27 : index
    %c0_192 = arith.constant 0 : index
    %c0_193 = arith.constant 0 : index
    %163 = vector.load %arg4[%c27, %c0_192, %c0_193] : memref<49x5x9xf32, #tpu.memory_space<vmem>>, vector<1x5x9xf32>
    %164 = vector.shape_cast %163 : vector<1x5x9xf32> to vector<5x9xf32>
    %cst_194 = arith.constant dense<0.000000e+00> : vector<128x9xf32>
    %165 = tpu.matmul %162, %164, %cst_194 {dimension_numbers = #tpu.dot_dimension_numbers<[1], [0], [0], [1], [0, 0, 1, 1], [], []>} : vector<128x5xf32>, vector<5x9xf32>, vector<128x9xf32> -> vector<128x9xf32>
    %166 = arith.addf %160, %165 : vector<128x9xf32>
    %c0_195 = arith.constant 0 : index
    %c0_196 = arith.constant 0 : index
    %c32 = arith.constant 32 : index
    %c0_197 = arith.constant 0 : index
    %167 = vector.load %arg3[%c0_195, %c0_196, %c32, %c0_197] : memref<1x4x192x5xf32, #tpu.memory_space<vmem>>, vector<1x1x128x5xf32>
    %168 = vector.shape_cast %167 : vector<1x1x128x5xf32> to vector<128x5xf32>
    %c28 = arith.constant 28 : index
    %c0_198 = arith.constant 0 : index
    %c0_199 = arith.constant 0 : index
    %169 = vector.load %arg4[%c28, %c0_198, %c0_199] : memref<49x5x9xf32, #tpu.memory_space<vmem>>, vector<1x5x9xf32>
    %170 = vector.shape_cast %169 : vector<1x5x9xf32> to vector<5x9xf32>
    %cst_200 = arith.constant dense<0.000000e+00> : vector<128x9xf32>
    %171 = tpu.matmul %168, %170, %cst_200 {dimension_numbers = #tpu.dot_dimension_numbers<[1], [0], [0], [1], [0, 0, 1, 1], [], []>} : vector<128x5xf32>, vector<5x9xf32>, vector<128x9xf32> -> vector<128x9xf32>
    %172 = arith.addf %166, %171 : vector<128x9xf32>
    %c0_201 = arith.constant 0 : index
    %c1_202 = arith.constant 1 : index
    %c32_203 = arith.constant 32 : index
    %c0_204 = arith.constant 0 : index
    %173 = vector.load %arg3[%c0_201, %c1_202, %c32_203, %c0_204] : memref<1x4x192x5xf32, #tpu.memory_space<vmem>>, vector<1x1x128x5xf32>
    %174 = vector.shape_cast %173 : vector<1x1x128x5xf32> to vector<128x5xf32>
    %c29 = arith.constant 29 : index
    %c0_205 = arith.constant 0 : index
    %c0_206 = arith.constant 0 : index
    %175 = vector.load %arg4[%c29, %c0_205, %c0_206] : memref<49x5x9xf32, #tpu.memory_space<vmem>>, vector<1x5x9xf32>
    %176 = vector.shape_cast %175 : vector<1x5x9xf32> to vector<5x9xf32>
    %cst_207 = arith.constant dense<0.000000e+00> : vector<128x9xf32>
    %177 = tpu.matmul %174, %176, %cst_207 {dimension_numbers = #tpu.dot_dimension_numbers<[1], [0], [0], [1], [0, 0, 1, 1], [], []>} : vector<128x5xf32>, vector<5x9xf32>, vector<128x9xf32> -> vector<128x9xf32>
    %178 = arith.addf %172, %177 : vector<128x9xf32>
    %c0_208 = arith.constant 0 : index
    %c0_209 = arith.constant 0 : index
    %c33 = arith.constant 33 : index
    %c0_210 = arith.constant 0 : index
    %179 = vector.load %arg3[%c0_208, %c0_209, %c33, %c0_210] : memref<1x4x192x5xf32, #tpu.memory_space<vmem>>, vector<1x1x128x5xf32>
    %180 = vector.shape_cast %179 : vector<1x1x128x5xf32> to vector<128x5xf32>
    %c30 = arith.constant 30 : index
    %c0_211 = arith.constant 0 : index
    %c0_212 = arith.constant 0 : index
    %181 = vector.load %arg4[%c30, %c0_211, %c0_212] : memref<49x5x9xf32, #tpu.memory_space<vmem>>, vector<1x5x9xf32>
    %182 = vector.shape_cast %181 : vector<1x5x9xf32> to vector<5x9xf32>
    %cst_213 = arith.constant dense<0.000000e+00> : vector<128x9xf32>
    %183 = tpu.matmul %180, %182, %cst_213 {dimension_numbers = #tpu.dot_dimension_numbers<[1], [0], [0], [1], [0, 0, 1, 1], [], []>} : vector<128x5xf32>, vector<5x9xf32>, vector<128x9xf32> -> vector<128x9xf32>
    %184 = arith.addf %178, %183 : vector<128x9xf32>
    %c0_214 = arith.constant 0 : index
    %c1_215 = arith.constant 1 : index
    %c33_216 = arith.constant 33 : index
    %c0_217 = arith.constant 0 : index
    %185 = vector.load %arg3[%c0_214, %c1_215, %c33_216, %c0_217] : memref<1x4x192x5xf32, #tpu.memory_space<vmem>>, vector<1x1x128x5xf32>
    %186 = vector.shape_cast %185 : vector<1x1x128x5xf32> to vector<128x5xf32>
    %c31 = arith.constant 31 : index
    %c0_218 = arith.constant 0 : index
    %c0_219 = arith.constant 0 : index
    %187 = vector.load %arg4[%c31, %c0_218, %c0_219] : memref<49x5x9xf32, #tpu.memory_space<vmem>>, vector<1x5x9xf32>
    %188 = vector.shape_cast %187 : vector<1x5x9xf32> to vector<5x9xf32>
    %cst_220 = arith.constant dense<0.000000e+00> : vector<128x9xf32>
    %189 = tpu.matmul %186, %188, %cst_220 {dimension_numbers = #tpu.dot_dimension_numbers<[1], [0], [0], [1], [0, 0, 1, 1], [], []>} : vector<128x5xf32>, vector<5x9xf32>, vector<128x9xf32> -> vector<128x9xf32>
    %190 = arith.addf %184, %189 : vector<128x9xf32>
    %c0_221 = arith.constant 0 : index
    %c0_222 = arith.constant 0 : index
    %c34 = arith.constant 34 : index
    %c0_223 = arith.constant 0 : index
    %191 = vector.load %arg3[%c0_221, %c0_222, %c34, %c0_223] : memref<1x4x192x5xf32, #tpu.memory_space<vmem>>, vector<1x1x128x5xf32>
    %192 = vector.shape_cast %191 : vector<1x1x128x5xf32> to vector<128x5xf32>
    %c32_224 = arith.constant 32 : index
    %c0_225 = arith.constant 0 : index
    %c0_226 = arith.constant 0 : index
    %193 = vector.load %arg4[%c32_224, %c0_225, %c0_226] : memref<49x5x9xf32, #tpu.memory_space<vmem>>, vector<1x5x9xf32>
    %194 = vector.shape_cast %193 : vector<1x5x9xf32> to vector<5x9xf32>
    %cst_227 = arith.constant dense<0.000000e+00> : vector<128x9xf32>
    %195 = tpu.matmul %192, %194, %cst_227 {dimension_numbers = #tpu.dot_dimension_numbers<[1], [0], [0], [1], [0, 0, 1, 1], [], []>} : vector<128x5xf32>, vector<5x9xf32>, vector<128x9xf32> -> vector<128x9xf32>
    %196 = arith.addf %190, %195 : vector<128x9xf32>
    %c0_228 = arith.constant 0 : index
    %c1_229 = arith.constant 1 : index
    %c34_230 = arith.constant 34 : index
    %c0_231 = arith.constant 0 : index
    %197 = vector.load %arg3[%c0_228, %c1_229, %c34_230, %c0_231] : memref<1x4x192x5xf32, #tpu.memory_space<vmem>>, vector<1x1x128x5xf32>
    %198 = vector.shape_cast %197 : vector<1x1x128x5xf32> to vector<128x5xf32>
    %c33_232 = arith.constant 33 : index
    %c0_233 = arith.constant 0 : index
    %c0_234 = arith.constant 0 : index
    %199 = vector.load %arg4[%c33_232, %c0_233, %c0_234] : memref<49x5x9xf32, #tpu.memory_space<vmem>>, vector<1x5x9xf32>
    %200 = vector.shape_cast %199 : vector<1x5x9xf32> to vector<5x9xf32>
    %cst_235 = arith.constant dense<0.000000e+00> : vector<128x9xf32>
    %201 = tpu.matmul %198, %200, %cst_235 {dimension_numbers = #tpu.dot_dimension_numbers<[1], [0], [0], [1], [0, 0, 1, 1], [], []>} : vector<128x5xf32>, vector<5x9xf32>, vector<128x9xf32> -> vector<128x9xf32>
    %202 = arith.addf %196, %201 : vector<128x9xf32>
    %c0_236 = arith.constant 0 : index
    %c0_237 = arith.constant 0 : index
    %c35 = arith.constant 35 : index
    %c0_238 = arith.constant 0 : index
    %203 = vector.load %arg3[%c0_236, %c0_237, %c35, %c0_238] : memref<1x4x192x5xf32, #tpu.memory_space<vmem>>, vector<1x1x128x5xf32>
    %204 = vector.shape_cast %203 : vector<1x1x128x5xf32> to vector<128x5xf32>
    %c34_239 = arith.constant 34 : index
    %c0_240 = arith.constant 0 : index
    %c0_241 = arith.constant 0 : index
    %205 = vector.load %arg4[%c34_239, %c0_240, %c0_241] : memref<49x5x9xf32, #tpu.memory_space<vmem>>, vector<1x5x9xf32>
    %206 = vector.shape_cast %205 : vector<1x5x9xf32> to vector<5x9xf32>
    %cst_242 = arith.constant dense<0.000000e+00> : vector<128x9xf32>
    %207 = tpu.matmul %204, %206, %cst_242 {dimension_numbers = #tpu.dot_dimension_numbers<[1], [0], [0], [1], [0, 0, 1, 1], [], []>} : vector<128x5xf32>, vector<5x9xf32>, vector<128x9xf32> -> vector<128x9xf32>
    %208 = arith.addf %202, %207 : vector<128x9xf32>
    %c0_243 = arith.constant 0 : index
    %c2_244 = arith.constant 2 : index
    %c32_245 = arith.constant 32 : index
    %c0_246 = arith.constant 0 : index
    %209 = vector.load %arg3[%c0_243, %c2_244, %c32_245, %c0_246] : memref<1x4x192x5xf32, #tpu.memory_space<vmem>>, vector<1x1x128x5xf32>
    %210 = vector.shape_cast %209 : vector<1x1x128x5xf32> to vector<128x5xf32>
    %c35_247 = arith.constant 35 : index
    %c0_248 = arith.constant 0 : index
    %c0_249 = arith.constant 0 : index
    %211 = vector.load %arg4[%c35_247, %c0_248, %c0_249] : memref<49x5x9xf32, #tpu.memory_space<vmem>>, vector<1x5x9xf32>
    %212 = vector.shape_cast %211 : vector<1x5x9xf32> to vector<5x9xf32>
    %cst_250 = arith.constant dense<0.000000e+00> : vector<128x9xf32>
    %213 = tpu.matmul %210, %212, %cst_250 {dimension_numbers = #tpu.dot_dimension_numbers<[1], [0], [0], [1], [0, 0, 1, 1], [], []>} : vector<128x5xf32>, vector<5x9xf32>, vector<128x9xf32> -> vector<128x9xf32>
    %214 = arith.addf %208, %213 : vector<128x9xf32>
    %c0_251 = arith.constant 0 : index
    %c3_252 = arith.constant 3 : index
    %c32_253 = arith.constant 32 : index
    %c0_254 = arith.constant 0 : index
    %215 = vector.load %arg3[%c0_251, %c3_252, %c32_253, %c0_254] : memref<1x4x192x5xf32, #tpu.memory_space<vmem>>, vector<1x1x128x5xf32>
    %216 = vector.shape_cast %215 : vector<1x1x128x5xf32> to vector<128x5xf32>
    %c36 = arith.constant 36 : index
    %c0_255 = arith.constant 0 : index
    %c0_256 = arith.constant 0 : index
    %217 = vector.load %arg4[%c36, %c0_255, %c0_256] : memref<49x5x9xf32, #tpu.memory_space<vmem>>, vector<1x5x9xf32>
    %218 = vector.shape_cast %217 : vector<1x5x9xf32> to vector<5x9xf32>
    %cst_257 = arith.constant dense<0.000000e+00> : vector<128x9xf32>
    %219 = tpu.matmul %216, %218, %cst_257 {dimension_numbers = #tpu.dot_dimension_numbers<[1], [0], [0], [1], [0, 0, 1, 1], [], []>} : vector<128x5xf32>, vector<5x9xf32>, vector<128x9xf32> -> vector<128x9xf32>
    %220 = arith.addf %214, %219 : vector<128x9xf32>
    %c0_258 = arith.constant 0 : index
    %c2_259 = arith.constant 2 : index
    %c33_260 = arith.constant 33 : index
    %c0_261 = arith.constant 0 : index
    %221 = vector.load %arg3[%c0_258, %c2_259, %c33_260, %c0_261] : memref<1x4x192x5xf32, #tpu.memory_space<vmem>>, vector<1x1x128x5xf32>
    %222 = vector.shape_cast %221 : vector<1x1x128x5xf32> to vector<128x5xf32>
    %c37 = arith.constant 37 : index
    %c0_262 = arith.constant 0 : index
    %c0_263 = arith.constant 0 : index
    %223 = vector.load %arg4[%c37, %c0_262, %c0_263] : memref<49x5x9xf32, #tpu.memory_space<vmem>>, vector<1x5x9xf32>
    %224 = vector.shape_cast %223 : vector<1x5x9xf32> to vector<5x9xf32>
    %cst_264 = arith.constant dense<0.000000e+00> : vector<128x9xf32>
    %225 = tpu.matmul %222, %224, %cst_264 {dimension_numbers = #tpu.dot_dimension_numbers<[1], [0], [0], [1], [0, 0, 1, 1], [], []>} : vector<128x5xf32>, vector<5x9xf32>, vector<128x9xf32> -> vector<128x9xf32>
    %226 = arith.addf %220, %225 : vector<128x9xf32>
    %c0_265 = arith.constant 0 : index
    %c3_266 = arith.constant 3 : index
    %c33_267 = arith.constant 33 : index
    %c0_268 = arith.constant 0 : index
    %227 = vector.load %arg3[%c0_265, %c3_266, %c33_267, %c0_268] : memref<1x4x192x5xf32, #tpu.memory_space<vmem>>, vector<1x1x128x5xf32>
    %228 = vector.shape_cast %227 : vector<1x1x128x5xf32> to vector<128x5xf32>
    %c38 = arith.constant 38 : index
    %c0_269 = arith.constant 0 : index
    %c0_270 = arith.constant 0 : index
    %229 = vector.load %arg4[%c38, %c0_269, %c0_270] : memref<49x5x9xf32, #tpu.memory_space<vmem>>, vector<1x5x9xf32>
    %230 = vector.shape_cast %229 : vector<1x5x9xf32> to vector<5x9xf32>
    %cst_271 = arith.constant dense<0.000000e+00> : vector<128x9xf32>
    %231 = tpu.matmul %228, %230, %cst_271 {dimension_numbers = #tpu.dot_dimension_numbers<[1], [0], [0], [1], [0, 0, 1, 1], [], []>} : vector<128x5xf32>, vector<5x9xf32>, vector<128x9xf32> -> vector<128x9xf32>
    %232 = arith.addf %226, %231 : vector<128x9xf32>
    %c0_272 = arith.constant 0 : index
    %c2_273 = arith.constant 2 : index
    %c34_274 = arith.constant 34 : index
    %c0_275 = arith.constant 0 : index
    %233 = vector.load %arg3[%c0_272, %c2_273, %c34_274, %c0_275] : memref<1x4x192x5xf32, #tpu.memory_space<vmem>>, vector<1x1x128x5xf32>
    %234 = vector.shape_cast %233 : vector<1x1x128x5xf32> to vector<128x5xf32>
    %c39 = arith.constant 39 : index
    %c0_276 = arith.constant 0 : index
    %c0_277 = arith.constant 0 : index
    %235 = vector.load %arg4[%c39, %c0_276, %c0_277] : memref<49x5x9xf32, #tpu.memory_space<vmem>>, vector<1x5x9xf32>
    %236 = vector.shape_cast %235 : vector<1x5x9xf32> to vector<5x9xf32>
    %cst_278 = arith.constant dense<0.000000e+00> : vector<128x9xf32>
    %237 = tpu.matmul %234, %236, %cst_278 {dimension_numbers = #tpu.dot_dimension_numbers<[1], [0], [0], [1], [0, 0, 1, 1], [], []>} : vector<128x5xf32>, vector<5x9xf32>, vector<128x9xf32> -> vector<128x9xf32>
    %238 = arith.addf %232, %237 : vector<128x9xf32>
    %c0_279 = arith.constant 0 : index
    %c3_280 = arith.constant 3 : index
    %c34_281 = arith.constant 34 : index
    %c0_282 = arith.constant 0 : index
    %239 = vector.load %arg3[%c0_279, %c3_280, %c34_281, %c0_282] : memref<1x4x192x5xf32, #tpu.memory_space<vmem>>, vector<1x1x128x5xf32>
    %240 = vector.shape_cast %239 : vector<1x1x128x5xf32> to vector<128x5xf32>
    %c40 = arith.constant 40 : index
    %c0_283 = arith.constant 0 : index
    %c0_284 = arith.constant 0 : index
    %241 = vector.load %arg4[%c40, %c0_283, %c0_284] : memref<49x5x9xf32, #tpu.memory_space<vmem>>, vector<1x5x9xf32>
    %242 = vector.shape_cast %241 : vector<1x5x9xf32> to vector<5x9xf32>
    %cst_285 = arith.constant dense<0.000000e+00> : vector<128x9xf32>
    %243 = tpu.matmul %240, %242, %cst_285 {dimension_numbers = #tpu.dot_dimension_numbers<[1], [0], [0], [1], [0, 0, 1, 1], [], []>} : vector<128x5xf32>, vector<5x9xf32>, vector<128x9xf32> -> vector<128x9xf32>
    %244 = arith.addf %238, %243 : vector<128x9xf32>
    %c0_286 = arith.constant 0 : index
    %c2_287 = arith.constant 2 : index
    %c35_288 = arith.constant 35 : index
    %c0_289 = arith.constant 0 : index
    %245 = vector.load %arg3[%c0_286, %c2_287, %c35_288, %c0_289] : memref<1x4x192x5xf32, #tpu.memory_space<vmem>>, vector<1x1x128x5xf32>
    %246 = vector.shape_cast %245 : vector<1x1x128x5xf32> to vector<128x5xf32>
    %c41 = arith.constant 41 : index
    %c0_290 = arith.constant 0 : index
    %c0_291 = arith.constant 0 : index
    %247 = vector.load %arg4[%c41, %c0_290, %c0_291] : memref<49x5x9xf32, #tpu.memory_space<vmem>>, vector<1x5x9xf32>
    %248 = vector.shape_cast %247 : vector<1x5x9xf32> to vector<5x9xf32>
    %cst_292 = arith.constant dense<0.000000e+00> : vector<128x9xf32>
    %249 = tpu.matmul %246, %248, %cst_292 {dimension_numbers = #tpu.dot_dimension_numbers<[1], [0], [0], [1], [0, 0, 1, 1], [], []>} : vector<128x5xf32>, vector<5x9xf32>, vector<128x9xf32> -> vector<128x9xf32>
    %250 = arith.addf %244, %249 : vector<128x9xf32>
    %c0_293 = arith.constant 0 : index
    %c0_294 = arith.constant 0 : index
    %c48 = arith.constant 48 : index
    %c0_295 = arith.constant 0 : index
    %251 = vector.load %arg3[%c0_293, %c0_294, %c48, %c0_295] : memref<1x4x192x5xf32, #tpu.memory_space<vmem>>, vector<1x1x128x5xf32>
    %252 = vector.shape_cast %251 : vector<1x1x128x5xf32> to vector<128x5xf32>
    %c42 = arith.constant 42 : index
    %c0_296 = arith.constant 0 : index
    %c0_297 = arith.constant 0 : index
    %253 = vector.load %arg4[%c42, %c0_296, %c0_297] : memref<49x5x9xf32, #tpu.memory_space<vmem>>, vector<1x5x9xf32>
    %254 = vector.shape_cast %253 : vector<1x5x9xf32> to vector<5x9xf32>
    %cst_298 = arith.constant dense<0.000000e+00> : vector<128x9xf32>
    %255 = tpu.matmul %252, %254, %cst_298 {dimension_numbers = #tpu.dot_dimension_numbers<[1], [0], [0], [1], [0, 0, 1, 1], [], []>} : vector<128x5xf32>, vector<5x9xf32>, vector<128x9xf32> -> vector<128x9xf32>
    %256 = arith.addf %250, %255 : vector<128x9xf32>
    %c0_299 = arith.constant 0 : index
    %c1_300 = arith.constant 1 : index
    %c48_301 = arith.constant 48 : index
    %c0_302 = arith.constant 0 : index
    %257 = vector.load %arg3[%c0_299, %c1_300, %c48_301, %c0_302] : memref<1x4x192x5xf32, #tpu.memory_space<vmem>>, vector<1x1x128x5xf32>
    %258 = vector.shape_cast %257 : vector<1x1x128x5xf32> to vector<128x5xf32>
    %c43 = arith.constant 43 : index
    %c0_303 = arith.constant 0 : index
    %c0_304 = arith.constant 0 : index
    %259 = vector.load %arg4[%c43, %c0_303, %c0_304] : memref<49x5x9xf32, #tpu.memory_space<vmem>>, vector<1x5x9xf32>
    %260 = vector.shape_cast %259 : vector<1x5x9xf32> to vector<5x9xf32>
    %cst_305 = arith.constant dense<0.000000e+00> : vector<128x9xf32>
    %261 = tpu.matmul %258, %260, %cst_305 {dimension_numbers = #tpu.dot_dimension_numbers<[1], [0], [0], [1], [0, 0, 1, 1], [], []>} : vector<128x5xf32>, vector<5x9xf32>, vector<128x9xf32> -> vector<128x9xf32>
    %262 = arith.addf %256, %261 : vector<128x9xf32>
    %c0_306 = arith.constant 0 : index
    %c0_307 = arith.constant 0 : index
    %c49 = arith.constant 49 : index
    %c0_308 = arith.constant 0 : index
    %263 = vector.load %arg3[%c0_306, %c0_307, %c49, %c0_308] : memref<1x4x192x5xf32, #tpu.memory_space<vmem>>, vector<1x1x128x5xf32>
    %264 = vector.shape_cast %263 : vector<1x1x128x5xf32> to vector<128x5xf32>
    %c44 = arith.constant 44 : index
    %c0_309 = arith.constant 0 : index
    %c0_310 = arith.constant 0 : index
    %265 = vector.load %arg4[%c44, %c0_309, %c0_310] : memref<49x5x9xf32, #tpu.memory_space<vmem>>, vector<1x5x9xf32>
    %266 = vector.shape_cast %265 : vector<1x5x9xf32> to vector<5x9xf32>
    %cst_311 = arith.constant dense<0.000000e+00> : vector<128x9xf32>
    %267 = tpu.matmul %264, %266, %cst_311 {dimension_numbers = #tpu.dot_dimension_numbers<[1], [0], [0], [1], [0, 0, 1, 1], [], []>} : vector<128x5xf32>, vector<5x9xf32>, vector<128x9xf32> -> vector<128x9xf32>
    %268 = arith.addf %262, %267 : vector<128x9xf32>
    %c0_312 = arith.constant 0 : index
    %c1_313 = arith.constant 1 : index
    %c49_314 = arith.constant 49 : index
    %c0_315 = arith.constant 0 : index
    %269 = vector.load %arg3[%c0_312, %c1_313, %c49_314, %c0_315] : memref<1x4x192x5xf32, #tpu.memory_space<vmem>>, vector<1x1x128x5xf32>
    %270 = vector.shape_cast %269 : vector<1x1x128x5xf32> to vector<128x5xf32>
    %c45 = arith.constant 45 : index
    %c0_316 = arith.constant 0 : index
    %c0_317 = arith.constant 0 : index
    %271 = vector.load %arg4[%c45, %c0_316, %c0_317] : memref<49x5x9xf32, #tpu.memory_space<vmem>>, vector<1x5x9xf32>
    %272 = vector.shape_cast %271 : vector<1x5x9xf32> to vector<5x9xf32>
    %cst_318 = arith.constant dense<0.000000e+00> : vector<128x9xf32>
    %273 = tpu.matmul %270, %272, %cst_318 {dimension_numbers = #tpu.dot_dimension_numbers<[1], [0], [0], [1], [0, 0, 1, 1], [], []>} : vector<128x5xf32>, vector<5x9xf32>, vector<128x9xf32> -> vector<128x9xf32>
    %274 = arith.addf %268, %273 : vector<128x9xf32>
    %c0_319 = arith.constant 0 : index
    %c0_320 = arith.constant 0 : index
    %c50 = arith.constant 50 : index
    %c0_321 = arith.constant 0 : index
    %275 = vector.load %arg3[%c0_319, %c0_320, %c50, %c0_321] : memref<1x4x192x5xf32, #tpu.memory_space<vmem>>, vector<1x1x128x5xf32>
    %276 = vector.shape_cast %275 : vector<1x1x128x5xf32> to vector<128x5xf32>
    %c46 = arith.constant 46 : index
    %c0_322 = arith.constant 0 : index
    %c0_323 = arith.constant 0 : index
    %277 = vector.load %arg4[%c46, %c0_322, %c0_323] : memref<49x5x9xf32, #tpu.memory_space<vmem>>, vector<1x5x9xf32>
    %278 = vector.shape_cast %277 : vector<1x5x9xf32> to vector<5x9xf32>
    %cst_324 = arith.constant dense<0.000000e+00> : vector<128x9xf32>
    %279 = tpu.matmul %276, %278, %cst_324 {dimension_numbers = #tpu.dot_dimension_numbers<[1], [0], [0], [1], [0, 0, 1, 1], [], []>} : vector<128x5xf32>, vector<5x9xf32>, vector<128x9xf32> -> vector<128x9xf32>
    %280 = arith.addf %274, %279 : vector<128x9xf32>
    %c0_325 = arith.constant 0 : index
    %c1_326 = arith.constant 1 : index
    %c50_327 = arith.constant 50 : index
    %c0_328 = arith.constant 0 : index
    %281 = vector.load %arg3[%c0_325, %c1_326, %c50_327, %c0_328] : memref<1x4x192x5xf32, #tpu.memory_space<vmem>>, vector<1x1x128x5xf32>
    %282 = vector.shape_cast %281 : vector<1x1x128x5xf32> to vector<128x5xf32>
    %c47 = arith.constant 47 : index
    %c0_329 = arith.constant 0 : index
    %c0_330 = arith.constant 0 : index
    %283 = vector.load %arg4[%c47, %c0_329, %c0_330] : memref<49x5x9xf32, #tpu.memory_space<vmem>>, vector<1x5x9xf32>
    %284 = vector.shape_cast %283 : vector<1x5x9xf32> to vector<5x9xf32>
    %cst_331 = arith.constant dense<0.000000e+00> : vector<128x9xf32>
    %285 = tpu.matmul %282, %284, %cst_331 {dimension_numbers = #tpu.dot_dimension_numbers<[1], [0], [0], [1], [0, 0, 1, 1], [], []>} : vector<128x5xf32>, vector<5x9xf32>, vector<128x9xf32> -> vector<128x9xf32>
    %286 = arith.addf %280, %285 : vector<128x9xf32>
    %c0_332 = arith.constant 0 : index
    %c0_333 = arith.constant 0 : index
    %c51 = arith.constant 51 : index
    %c0_334 = arith.constant 0 : index
    %287 = vector.load %arg3[%c0_332, %c0_333, %c51, %c0_334] : memref<1x4x192x5xf32, #tpu.memory_space<vmem>>, vector<1x1x128x5xf32>
    %288 = vector.shape_cast %287 : vector<1x1x128x5xf32> to vector<128x5xf32>
    %c48_335 = arith.constant 48 : index
    %c0_336 = arith.constant 0 : index
    %c0_337 = arith.constant 0 : index
    %289 = vector.load %arg4[%c48_335, %c0_336, %c0_337] : memref<49x5x9xf32, #tpu.memory_space<vmem>>, vector<1x5x9xf32>
    %290 = vector.shape_cast %289 : vector<1x5x9xf32> to vector<5x9xf32>
    %cst_338 = arith.constant dense<0.000000e+00> : vector<128x9xf32>
    %291 = tpu.matmul %288, %290, %cst_338 {dimension_numbers = #tpu.dot_dimension_numbers<[1], [0], [0], [1], [0, 0, 1, 1], [], []>} : vector<128x5xf32>, vector<5x9xf32>, vector<128x9xf32> -> vector<128x9xf32>
    %292 = arith.addf %286, %291 : vector<128x9xf32>
    %c0_339 = arith.constant 0 : index
    %c0_340 = arith.constant 0 : index
    %293 = vector.load %arg5[%c0_339, %c0_340] : memref<1x9xf32, #tpu.memory_space<vmem>>, vector<1x9xf32>
    %294 = vector.broadcast %293 : vector<1x9xf32> to vector<128x9xf32>
    %295 = arith.addf %292, %294 : vector<128x9xf32>
    %cst_341 = arith.constant 0.000000e+00 : f32
    %296 = vector.broadcast %cst_341 : f32 to vector<128x9xf32>
    %297 = arith.maximumf %295, %296 : vector<128x9xf32>
    %c0_342 = arith.constant 0 : index
    %c0_343 = arith.constant 0 : index
    %c0_344 = arith.constant 0 : index
    %298 = vector.load %arg6[%c0_342, %c0_343, %c0_344] : memref<1x128x9xf32, #tpu.memory_space<vmem>>, vector<1x128x9xf32>
    %299 = vector.shape_cast %298 : vector<1x128x9xf32> to vector<128x9xf32>
    %300 = vector.shape_cast %297 : vector<128x9xf32> to vector<1x128x9xf32>
    tpu.vector_store %arg6[%c0_342, %c0_343, %c0_344], %300 {strides = array<i32>} : memref<1x128x9xf32, #tpu.memory_space<vmem>>, vector<1x128x9xf32>,
    return
  }
  func.func @transform_0(%arg0: i32, %arg1: i32, %arg2: i32) -> (i32, i32, i32, i32) {
    %c0_i32 = arith.constant 0 : i32
    %c0_i32_0 = arith.constant 0 : i32
    %c0_i32_1 = arith.constant 0 : i32
    %c0_i32_2 = arith.constant 0 : i32
    return %arg0, %c0_i32, %c0_i32_0, %c0_i32_1 : i32, i32, i32, i32
  }
  func.func @transform_1(%arg0: i32, %arg1: i32, %arg2: i32) -> (i32, i32, i32) {
    %c0_i32 = arith.constant 0 : i32
    %c0_i32_0 = arith.constant 0 : i32
    %c0_i32_1 = arith.constant 0 : i32
    return %c0_i32, %c0_i32_0, %arg2 : i32, i32, i32
  }
  func.func @transform_2(%arg0: i32, %arg1: i32, %arg2: i32) -> (i32, i32) {
    %c0_i32 = arith.constant 0 : i32
    %c0_i32_0 = arith.constant 0 : i32
    return %c0_i32, %arg2 : i32, i32
  }
  func.func @transform_3(%arg0: i32, %arg1: i32, %arg2: i32) -> (i32, i32, i32) {
    %c0_i32 = arith.constant 0 : i32
    return %arg0, %arg1, %arg2 : i32, i32, i32
  }
}

</mosaic_0001>

<bundles_post_ra>
// kernel: tpu_custom_call.1
= control target key start
LH: loop header
LB: loop body
LE: loop exit
PB: predicated region body
PF: predicated region fallthrough
CT: control target
= control target key end

     0   :  { %s16029_s12 = smov 0   ;;  %s16031_s13 = smov 0   ;;  %s18721_s0 = inlined_call_operand.vmem [shape: f32[2,4,192,5], index: 0, kind: input, shape index: {}]   ;;  %s18722_s1 = inlined_call_operand.vmem [shape: f32[49,5,9], index: 1, kind: input, shape index: {}]   ;;  %s18723_s2 = inlined_call_operand.vmem [shape: f32[1,9], index: 2, kind: input, shape index: {}]   ;;  %s18724_s3 = inlined_call_operand.vmem [shape: f32[2,128,9], index: 3, kind: output, shape index: {}]  }
   0x1   :  { %s16033_s14 = smov 0  }
   0x2 LB: > { %s32_s15 = sadd.s32 1, %s16003_s13  ;;  %p11665_p0 = scmp.ge.s32.totalorder %s16007_s14, 1  ;;  %s16007_s14 = sphi %s16033_s14, %s13_s14   ;;  %s16003_s13 = sphi %s16031_s13, %s18726_s13   ;;  %s15999_s12 = sphi %s16029_s12, %s18725_s12  }
   0x3   : > { %p34_p1 = scmp.ge.s32.totalorder %s32_s15, 2  ;;  %p177_p2 = scmp.lt.s32.totalorder %s16007_s14, 3 }
   0x5   : > { %s18728_s15 = smov (%p34_p1, %s32_s15), 0  ;;  %p178_p3 = pnand %p11665_p0, %p177_p2 }
   0x6   : > { %v11685_v0 = vld [vmem:[%s18722_s1 + $0x8] sm:$0x1f] (!%p178_p3)  ;;  %vm325_vm0 = vcmask (!%p178_p3), 1044480   ;;  %v12372_v1 = vld [vmem:[%s18722_s1 + $0xc0] sm:$0x1f] (!%p178_p3)  ;;  %p215_p4 = scmp.lt.s32.totalorder (!%p178_p3), %s15999_s12, 1 }
   0x7   : > { %181 = sbr.rel (%p178_p3) target bundleno = 1020 (0x3fc), region = 32  ;;  %13915 = vmatprep.subr.msk.mxu1 (!%p178_p3), %vm325_vm0, %v11685_v0  ;;  %14539 = vmatprep.subr.msk.mxu0 (!%p178_p3), %vm325_vm0, %v12372_v1  ;;  %v256_v2 = vld [vmem:[%s18722_s1] sm:$0x1f] (!%p178_p3)  ;;  %v12406_v3 = vld [vmem:[%s18722_s1 + $0xc8] sm:$0x1f] (!%p178_p3)  ;;  %vm276_vm1 = vcmask (!%p178_p3), 39936  }
   0x8   : > { %13916 = vmatpush3.msk.msra.mxu1 (!%p178_p3), %vm325_vm0, %v11685_v0  ;;  %14540 = vmatpush3.msk.msra.mxu0 (!%p178_p3), %vm325_vm0, %v12372_v1  ;;  %v12440_v10 = vld [vmem:[%s18722_s1 + $0xd0] sm:$0x1f] (!%p178_p3)  ;;  %v16148_v28 = vld [vmem:[%s18722_s1 + $0xd8] sm:$0x1f] (!%p178_p3)  ;;  %v16265_v62 = vld [vmem:[%s18722_s1 + $0xe0] sm:$0x1f] (!%p178_p3) }
   0x9   : > { %13941 = vmatprep.subr.msk.mxu1 (!%p178_p3), %vm325_vm0, %v256_v2  ;;  %14565 = vmatprep.subr.msk.mxu0 (!%p178_p3), %vm325_vm0, %v12406_v3  ;;  %v16089_v11 = vld [vmem:[%s18722_s1 + $0x10] sm:$0x1f] (!%p178_p3)  ;;  %v16205_v45 = vld [vmem:[%s18722_s1 + $0x18] sm:$0x1f] (!%p178_p3)  ;;  %vm11521_vm2 = vcmask (!%p178_p3), 72704  }
   0xe   : > { %s18730_s12 = smov (!%p215_p4, %s15999_s12), 1 }
   0xf   : > { %s15959_s24 = smul.u32 768, %s18730_s12  ;;  %s13081_s7 = sshll.u32 %s18730_s12, 7 }
  0x10   : > { %s18663_s9 = scalar_lea.vmem %s18724_s3, %s13081_s7 }
  0x11   : > { %s16071_s27 = scalar_lea.vmem %s18721_s0, %s15959_s24 }
  0x12   : > { %v11669_v4 = vld [vmem:[%s16071_s27 + $0xc0] sm:$0xff]  ;;  %v12356_v5 = vld [vmem:[%s16071_s27 + $0x251] sm:$0xff]  ;;  %v11670_v6 = vld [vmem:[%s16071_s27 + $0xc8] sm:$0xff] }
  0x13   : > { %13917 = vmatprep.mubr.msk.f32.mxu1 %vm276_vm1, %v11669_v4  ;;  %14541 = vmatprep.mubr.msk.f32.mxu0 %vm276_vm1, %v12356_v5  ;;  %v12357_v7 = vld [vmem:[%s16071_s27 + $0x259] sm:$0xff]  ;;  %v11671_v8 = vld [vmem:[%s16071_s27 + $0xd0] sm:$0xff]  ;;  %v12358_v9 = vld [vmem:[%s16071_s27 + $0x261] sm:$0xff] }
  0x14   : > { %13918 = vmatmul.mubr.msk.f32.vlgmr.msra.gmra.mrb[0].mxu1 %vm276_vm1, %v11670_v6  ;;  %14542 = vmatmul.mubr.msk.f32.vlgmr.msra.gmra.mrb[0].mxu0 %vm276_vm1, %v12357_v7  ;;  %v11672_v12 = vld [vmem:[%s16071_s27 + $0xd8] sm:$0xff]  ;;  %v12359_v13 = vld [vmem:[%s16071_s27 + $0x269] sm:$0xff]  ;;  %v16098_v14 = vld [vmem:[%s16071_s27 + $0xe0] sm:$0xff] }
  0x15   : > { %13942 = vmatpush3.msk.msra.mxu1 %vm325_vm0, %v256_v2  ;;  %14566 = vmatpush3.msk.msra.mxu0 %vm325_vm0, %v12406_v3  ;;  %v12360_v15 = vld [vmem:[%s16071_s27 + $0x271] sm:$0xff]  ;;  %v16110_v16 = vld [vmem:[%s16071_s27 + $0xe8] sm:$0xff]  ;;  %v12361_v17 = vld [vmem:[%s16071_s27 + $0x279] sm:$0xff] }
  0x16   : > { %13920 = vmatprep.mubr.msk.f32.mxu1 %vm276_vm1, %v11671_v8  ;;  %14544 = vmatprep.mubr.msk.f32.mxu0 %vm276_vm1, %v12358_v9  ;;  %v16114_v18 = vld [vmem:[%s16071_s27 + $0xf0] sm:$0xff]  ;;  %v12362_v19 = vld [vmem:[%s16071_s27 + $0x281] sm:$0xff]  ;;  %v16124_v20 = vld [vmem:[%s16071_s27 + $0xf8] sm:$0xff] }
  0x17   : > { %14591 = vmatprep.subr.msk.mxu0 %vm325_vm0, %v12440_v10  ;;  %13967 = vmatprep.subr.msk.mxu1 %vm325_vm0, %v16089_v11  ;;  %v12363_v21 = vld [vmem:[%s16071_s27 + $0x289] sm:$0xff]  ;;  %v16128_v22 = vld [vmem:[%s16071_s27 + $0x100] sm:$0xff]  ;;  %v12390_v23 = vld [vmem:[%s16071_s27 + $0x192] sm:$0xff] }
  0x18   : > { %13921 = vmatmul.mubr.msk.f32.gmra.mrb[2].mxu1 %vm276_vm1, %v11672_v12  ;;  %14545 = vmatmul.mubr.msk.f32.gmra.mrb[2].mxu0 %vm276_vm1, %v12359_v13  ;;  %v16138_v24 = vld [vmem:[%s16071_s27 + $0x108] sm:$0xff]  ;;  %v12391_v25 = vld [vmem:[%s16071_s27 + $0x19a] sm:$0xff]  ;;  %v16142_v26 = vld [vmem:[%s16071_s27 + $0x110] sm:$0xff] }
  0x19   : > { %13923 = vmatprep.mubr.msk.f32.mxu1 %vm276_vm1, %v16098_v14  ;;  %14547 = vmatprep.mubr.msk.f32.mxu0 %vm276_vm1, %v12360_v15  ;;  %v12392_v27 = vld [vmem:[%s16071_s27 + $0x1a2] sm:$0xff]  ;;  %v16157_v29 = vld [vmem:[%s16071_s27 + $0x118] sm:$0xff]  ;;  %v12393_v30 = vld [vmem:[%s16071_s27 + $0x1aa] sm:$0xff] }
  0x1a   : > { %v16162_v31 = vld [vmem:[%s16071_s27 + $0x120] sm:$0xff]  ;;  %v12394_v32 = vld [vmem:[%s16071_s27 + $0x1b2] sm:$0xff]  ;;  %v16174_v33 = vld [vmem:[%s16071_s27 + $0x128] sm:$0xff] }
  0x1b   : > { %v12395_v34 = vld [vmem:[%s16071_s27 + $0x1ba] sm:$0xff]  ;;  %v16178_v35 = vld [vmem:[%s16071_s27 + $0x130] sm:$0xff]  ;;  %v12396_v36 = vld [vmem:[%s16071_s27 + $0x1c2] sm:$0xff] }
  0x1c   : > { %13924 = vmatmul.mubr.msk.f32.gmra.mrb[4].mxu1 %vm276_vm1, %v16110_v16  ;;  %14548 = vmatmul.mubr.msk.f32.gmra.mrb[4].mxu0 %vm276_vm1, %v12361_v17  ;;  %v16188_v37 = vld [vmem:[%s16071_s27 + $0x138] sm:$0xff]  ;;  %v12397_v38 = vld [vmem:[%s16071_s27 + $0x1ca] sm:$0xff]  ;;  %v240_v39 = vld [vmem:[%s16071_s27] sm:$0xff] }
  0x1d   : > { %13926 = vmatprep.mubr.msk.f32.mxu1 %vm276_vm1, %v16114_v18  ;;  %14550 = vmatprep.mubr.msk.f32.mxu0 %vm276_vm1, %v12362_v19  ;;  %v12398_v40 = vld [vmem:[%s16071_s27 + $0x1d2] sm:$0xff]  ;;  %v241_v41 = vld [vmem:[%s16071_s27 + $0x8] sm:$0xff]  ;;  %v12399_v42 = vld [vmem:[%s16071_s27 + $0x1da] sm:$0xff] }
  0x1e   : > { %v242_v43 = vld [vmem:[%s16071_s27 + $0x10] sm:$0xff]  ;;  %v12400_v44 = vld [vmem:[%s16071_s27 + $0x1e2] sm:$0xff]  ;;  %v243_v46 = vld [vmem:[%s16071_s27 + $0x18] sm:$0xff] }
  0x1f   : > { %v12401_v47 = vld [vmem:[%s16071_s27 + $0x1ea] sm:$0xff]  ;;  %v16216_v48 = vld [vmem:[%s16071_s27 + $0x20] sm:$0xff]  ;;  %v12402_v49 = vld [vmem:[%s16071_s27 + $0x1f2] sm:$0xff] }
  0x20   : > { %13927 = vmatmul.mubr.msk.f32.gmra.mrb[6].mxu1 %vm276_vm1, %v16124_v20  ;;  %14551 = vmatmul.mubr.msk.f32.gmra.mrb[6].mxu0 %vm276_vm1, %v12363_v21  ;;  %v16227_v50 = vld [vmem:[%s16071_s27 + $0x28] sm:$0xff]  ;;  %v12403_v51 = vld [vmem:[%s16071_s27 + $0x1fa] sm:$0xff]  ;;  %v16231_v52 = vld [vmem:[%s16071_s27 + $0x30] sm:$0xff] }
  0x21   : > { %13929 = vmatprep.mubr.msk.f32.mxu1 %vm276_vm1, %v16128_v22  ;;  %14567 = vmatprep.mubr.msk.f32.mxu0 %vm276_vm1, %v12390_v23  ;;  %v12404_v53 = vld [vmem:[%s16071_s27 + $0x202] sm:$0xff]  ;;  %v16241_v54 = vld [vmem:[%s16071_s27 + $0x38] sm:$0xff]  ;;  %v12405_v55 = vld [vmem:[%s16071_s27 + $0x20a] sm:$0xff] }
  0x22   : > { %v16245_v56 = vld [vmem:[%s16071_s27 + $0x40] sm:$0xff]  ;;  %v12424_v57 = vld [vmem:[%s16071_s27 + $0x252] sm:$0xff]  ;;  %v16255_v58 = vld [vmem:[%s16071_s27 + $0x48] sm:$0xff] }
  0x23   : > { %v12425_v59 = vld [vmem:[%s16071_s27 + $0x25a] sm:$0xff]  ;;  %v16259_v60 = vld [vmem:[%s16071_s27 + $0x50] sm:$0xff]  ;;  %v12426_v61 = vld [vmem:[%s16071_s27 + $0x262] sm:$0xff] }
  0x24   : > { %13930 = vmatmul.mubr.msk.f32.gmra.mrb[8].mxu1 %vm276_vm1, %v16138_v24  ;;  %14568 = vmatmul.mubr.msk.f32.vlgmr.msra.gmra.mrb[0].mxu0 %vm276_vm1, %v12391_v25  ;;  %v16275_v63 = vld [vmem:[%s16071_s27 + $0x58] sm:$0xff]  ;;  %v12427_v0 = vld [vmem:[%s16071_s27 + $0x26a] sm:$0xff]  ;;  %v16280_v1 = vld [vmem:[%s16071_s27 + $0x60] sm:$0xff] }
  0x25   : > { %14592 = vmatpush3.msk.msra.mxu0 %vm325_vm0, %v12440_v10  ;;  %13932 = vmatprep.mubr.msk.f32.mxu1 %vm276_vm1, %v16142_v26  ;;  %v12428_v2 = vld [vmem:[%s16071_s27 + $0x272] sm:$0xff]  ;;  %v16292_v3 = vld [vmem:[%s16071_s27 + $0x68] sm:$0xff]  ;;  %v12429_v4 = vld [vmem:[%s16071_s27 + $0x27a] sm:$0xff] }
  0x26   : > { %14570 = vmatprep.mubr.msk.f32.mxu0 %vm276_vm1, %v12392_v27  ;;  %14617 = vmatprep.subr.msk.mxu0 %vm325_vm0, %v16148_v28  ;;  %v16296_v5 = vld [vmem:[%s16071_s27 + $0x70] sm:$0xff]  ;;  %v12430_v6 = vld [vmem:[%s16071_s27 + $0x282] sm:$0xff]  ;;  %v16306_v7 = vld [vmem:[%s16071_s27 + $0x78] sm:$0xff] }
  0x27   : > { %v12431_v8 = vld [vmem:[%s16071_s27 + $0x28a] sm:$0xff]  ;;  %v670_v9 = vld [vmem:[%s16071_s27 + $0x1] sm:$0xff]  ;;  %v12432_v10 = vld [vmem:[%s16071_s27 + $0x292] sm:$0xff] }
  0x28   : > { %13933 = vmatmul.mubr.msk.f32.gmra.mrb[10].mxu1 %vm276_vm1, %v16157_v29  ;;  %14571 = vmatmul.mubr.msk.f32.gmra.mrb[2].mxu0 %vm276_vm1, %v12393_v30  ;;  %v12433_v12 = vld [vmem:[%s16071_s27 + $0x29a] sm:$0xff]  ;;  %v672_v13 = vld [vmem:[%s16071_s27 + $0x11] sm:$0xff]  ;;  %v12434_v15 = vld [vmem:[%s16071_s27 + $0x2a2] sm:$0xff] }
  0x29   : > { %13935 = vmatprep.mubr.msk.f32.mxu1 %vm276_vm1, %v16162_v31  ;;  %14573 = vmatprep.mubr.msk.f32.mxu0 %vm276_vm1, %v12394_v32  ;;  %v16323_v17 = vld [vmem:[%s18722_s1 + $0x20] sm:$0x1f]  ;;  %v12435_v21 = vld [vmem:[%s16071_s27 + $0x2aa] sm:$0xff]  ;;  %v12436_v25 = vld [vmem:[%s16071_s27 + $0x2b2] sm:$0xff] }
  0x2a   : > { %v673_v19 = vld [vmem:[%s16071_s27 + $0x19] sm:$0xff]  ;;  %v16334_v23 = vld [vmem:[%s16071_s27 + $0x21] sm:$0xff]  ;;  %v16345_v27 = vld [vmem:[%s16071_s27 + $0x29] sm:$0xff] }
  0x2b   : > { %v16349_v30 = vld [vmem:[%s16071_s27 + $0x31] sm:$0xff]  ;;  %v12438_v32 = vld [vmem:[%s16071_s27 + $0x2c2] sm:$0xff] }
  0x2c   : > { %13936 = vmatmul.mubr.msk.f32.gmra.mrb[12].mxu1 %vm276_vm1, %v16174_v33  ;;  %14574 = vmatmul.mubr.msk.f32.gmra.mrb[4].mxu0 %vm276_vm1, %v12395_v34  ;;  %v16359_v34 = vld [vmem:[%s16071_s27 + $0x39] sm:$0xff] }
  0x2d   : > { %13938 = vmatprep.mubr.msk.f32.mxu1 %vm276_vm1, %v16178_v35  ;;  %14576 = vmatprep.mubr.msk.f32.mxu0 %vm276_vm1, %v12396_v36  ;;  %v12439_v36 = vld [vmem:[%s16071_s27 + $0x2ca] sm:$0xff] }
  0x30   : > { %13939 = vmatmul.mubr.msk.f32.gmra.mrb[14].mxu1 %vm276_vm1, %v16188_v37  ;;  %14577 = vmatmul.mubr.msk.f32.gmra.mrb[6].mxu0 %vm276_vm1, %v12397_v38  ;;  %v16363_v38 = vld [vmem:[%s16071_s27 + $0x41] sm:$0xff] }
  0x31   : > { %13943 = vmatprep.mubr.msk.f32.mxu1 %vm276_vm1, %v240_v39  ;;  %14579 = vmatprep.mubr.msk.f32.mxu0 %vm276_vm1, %v12398_v40  ;;  %v12458_v39 = vld [vmem:[%s16071_s27 + $0x193] sm:$0xff]  ;;  %v16373_v40 = vld [vmem:[%s16071_s27 + $0x49] sm:$0xff] }
  0x34   : > { %13944 = vmatmul.mubr.msk.f32.vlgmr.msra.gmra.mrb[0].mxu1 %vm276_vm1, %v241_v41  ;;  %14580 = vmatmul.mubr.msk.f32.gmra.mrb[8].mxu0 %vm276_vm1, %v12399_v42  ;;  %v12459_v41 = vld [vmem:[%s16071_s27 + $0x19b] sm:$0xff]  ;;  %v16377_v42 = vld [vmem:[%s16071_s27 + $0x51] sm:$0xff] }
  0x35   : > { %13968 = vmatpush3.msk.msra.mxu1 %vm325_vm0, %v16089_v11  ;;  %13946 = vmatprep.mubr.msk.f32.mxu1 %vm276_vm1, %v242_v43  ;;  %v671_v11 = vld [vmem:[%s16071_s27 + $0x9] sm:$0xff] }
  0x36   : > { %14582 = vmatprep.mubr.msk.f32.mxu0 %vm276_vm1, %v12400_v44  ;;  %13993 = vmatprep.subr.msk.mxu1 %vm325_vm0, %v16205_v45  ;;  %v12460_v43 = vld [vmem:[%s16071_s27 + $0x1a3] sm:$0xff] }
  0x37   : > { %v16383_v44 = vld [vmem:[%s18722_s1 + $0xe8] sm:$0x1f] }
  0x38   : > { %13947 = vmatmul.mubr.msk.f32.gmra.mrb[2].mxu1 %vm276_vm1, %v243_v46  ;;  %14583 = vmatmul.mubr.msk.f32.gmra.mrb[10].mxu0 %vm276_vm1, %v12401_v47  ;;  %v12461_v46 = vld [vmem:[%s16071_s27 + $0x1ab] sm:$0xff]  ;;  %v16398_v47 = vld [vmem:[%s16071_s27 + $0x61] sm:$0xff] }
  0x39   : > { %13949 = vmatprep.mubr.msk.f32.mxu1 %vm276_vm1, %v16216_v48  ;;  %14585 = vmatprep.mubr.msk.f32.mxu0 %vm276_vm1, %v12402_v49  ;;  %v12462_v49 = vld [vmem:[%s16071_s27 + $0x1b3] sm:$0xff] }
  0x3c   : > { %13950 = vmatmul.mubr.msk.f32.gmra.mrb[4].mxu1 %vm276_vm1, %v16227_v50  ;;  %14586 = vmatmul.mubr.msk.f32.gmra.mrb[12].mxu0 %vm276_vm1, %v12403_v51  ;;  %v16410_v51 = vld [vmem:[%s16071_s27 + $0x69] sm:$0xff] }
  0x3d   : > { %13952 = vmatprep.mubr.msk.f32.mxu1 %vm276_vm1, %v16231_v52  ;;  %14588 = vmatprep.mubr.msk.f32.mxu0 %vm276_vm1, %v12404_v53  ;;  %v12463_v53 = vld [vmem:[%s16071_s27 + $0x1bb] sm:$0xff] }
  0x40   : > { %13953 = vmatmul.mubr.msk.f32.gmra.mrb[6].mxu1 %vm276_vm1, %v16241_v54  ;;  %14589 = vmatmul.mubr.msk.f32.gmra.mrb[14].mxu0 %vm276_vm1, %v12405_v55  ;;  %v16414_v55 = vld [vmem:[%s16071_s27 + $0x71] sm:$0xff] }
  0x41   : > { %13955 = vmatprep.mubr.msk.f32.mxu1 %vm276_vm1, %v16245_v56  ;;  %14593 = vmatprep.mubr.msk.f32.mxu0 %vm276_vm1, %v12424_v57  ;;  %v12464_v57 = vld [vmem:[%s16071_s27 + $0x1c3] sm:$0xff] }
  0x44   : > { %13956 = vmatmul.mubr.msk.f32.gmra.mrb[8].mxu1 %vm276_vm1, %v16255_v58  ;;  %14594 = vmatmul.mubr.msk.f32.vlgmr.msra.gmra.mrb[0].mxu0 %vm276_vm1, %v12425_v59  ;;  %v16424_v59 = vld [vmem:[%s16071_s27 + $0x79] sm:$0xff] }
  0x45   : > { %14618 = vmatpush3.msk.msra.mxu0 %vm325_vm0, %v16148_v28  ;;  %13958 = vmatprep.mubr.msk.f32.mxu1 %vm276_vm1, %v16259_v60  ;;  %v12437_v28 = vld [vmem:[%s16071_s27 + $0x2ba] sm:$0xff] }
  0x46   : > { %14596 = vmatprep.mubr.msk.f32.mxu0 %vm276_vm1, %v12426_v61  ;;  %14643 = vmatprep.subr.msk.mxu0 %vm325_vm0, %v16265_v62  ;;  %v12465_v61 = vld [vmem:[%s16071_s27 + $0x1cb] sm:$0xff] }
  0x48   : > { %13959 = vmatmul.mubr.msk.f32.gmra.mrb[10].mxu1 %vm276_vm1, %v16275_v63  ;;  %14597 = vmatmul.mubr.msk.f32.gmra.mrb[2].mxu0 %vm276_vm1, %v12427_v0  ;;  %v12466_v0 = vld [vmem:[%s16071_s27 + $0x1d3] sm:$0xff] }
  0x49   : > { %13961 = vmatprep.mubr.msk.f32.mxu1 %vm276_vm1, %v16280_v1  ;;  %14599 = vmatprep.mubr.msk.f32.mxu0 %vm276_vm1, %v12428_v2  ;;  %v11739_v2 = vld [vmem:[%s16071_s27 + $0xc9] sm:$0xff] }
  0x4c   : > { %13962 = vmatmul.mubr.msk.f32.gmra.mrb[12].mxu1 %vm276_vm1, %v16292_v3  ;;  %14600 = vmatmul.mubr.msk.f32.gmra.mrb[4].mxu0 %vm276_vm1, %v12429_v4  ;;  %v12467_v4 = vld [vmem:[%s16071_s27 + $0x1db] sm:$0xff] }
  0x4d   : > { %13964 = vmatprep.mubr.msk.f32.mxu1 %vm276_vm1, %v16296_v5  ;;  %14602 = vmatprep.mubr.msk.f32.mxu0 %vm276_vm1, %v12430_v6  ;;  %v11740_v6 = vld [vmem:[%s16071_s27 + $0xd1] sm:$0xff] }
  0x50   : > { %13965 = vmatmul.mubr.msk.f32.gmra.mrb[14].mxu1 %vm276_vm1, %v16306_v7  ;;  %14603 = vmatmul.mubr.msk.f32.gmra.mrb[6].mxu0 %vm276_vm1, %v12431_v8  ;;  %v12468_v8 = vld [vmem:[%s16071_s27 + $0x1e3] sm:$0xff] }
  0x51   : > { %13969 = vmatprep.mubr.msk.f32.mxu1 %vm276_vm1, %v670_v9  ;;  %14605 = vmatprep.mubr.msk.f32.mxu0 %vm276_vm1, %v12432_v10  ;;  %v11806_v9 = vld [vmem:[%s18722_s1 + $0x28] sm:$0x1f]  ;;  %v11741_v10 = vld [vmem:[%s16071_s27 + $0xd9] sm:$0xff] }
  0x54   : > { %13970 = vmatmul.mubr.msk.f32.vlgmr.msra.gmra.mrb[0].mxu1 %vm276_vm1, %v671_v11  ;;  %14606 = vmatmul.mubr.msk.f32.gmra.mrb[8].mxu0 %vm276_vm1, %v12433_v12  ;;  %v12469_v11 = vld [vmem:[%s16071_s27 + $0x1eb] sm:$0xff]  ;;  %v16450_v12 = vld [vmem:[%s16071_s27 + $0xe1] sm:$0xff] }
  0x55   : > { %13994 = vmatpush3.msk.msra.mxu1 %vm325_vm0, %v16205_v45  ;;  %13972 = vmatprep.mubr.msk.f32.mxu1 %vm276_vm1, %v672_v13  ;;  %v16393_v45 = vld [vmem:[%s16071_s27 + $0x59] sm:$0xff] }
  0x56   : > { %14608 = vmatprep.mubr.msk.f32.mxu0 %vm276_vm1, %v12434_v15  ;;  %14019 = vmatprep.subr.msk.mxu1 %vm325_vm0, %v16323_v17  ;;  %v12470_v13 = vld [vmem:[%s16071_s27 + $0x1f3] sm:$0xff]  ;;  %v16460_v15 = vld [vmem:[%s16071_s27 + $0xe9] sm:$0xff] }
  0x58   : > { %13973 = vmatmul.mubr.msk.f32.gmra.mrb[2].mxu1 %vm276_vm1, %v673_v19  ;;  %14609 = vmatmul.mubr.msk.f32.gmra.mrb[10].mxu0 %vm276_vm1, %v12435_v21  ;;  %v16464_v19 = vld [vmem:[%s16071_s27 + $0xf1] sm:$0xff]  ;;  %v12472_v21 = vld [vmem:[%s16071_s27 + $0x203] sm:$0xff] }
  0x59   : > { %13975 = vmatprep.mubr.msk.f32.mxu1 %vm276_vm1, %v16334_v23  ;;  %14611 = vmatprep.mubr.msk.f32.mxu0 %vm276_vm1, %v12436_v25  ;;  %v16474_v25 = vld [vmem:[%s16071_s27 + $0xf9] sm:$0xff] }
  0x5c   : > { %13976 = vmatmul.mubr.msk.f32.gmra.mrb[4].mxu1 %vm276_vm1, %v16345_v27  ;;  %14612 = vmatmul.mubr.msk.f32.gmra.mrb[12].mxu0 %vm276_vm1, %v12437_v28  ;;  %v12473_v28 = vld [vmem:[%s16071_s27 + $0x20b] sm:$0xff] }
  0x5d   : > { %13978 = vmatprep.mubr.msk.f32.mxu1 %vm276_vm1, %v16349_v30  ;;  %14614 = vmatprep.mubr.msk.f32.mxu0 %vm276_vm1, %v12438_v32  ;;  %v16478_v32 = vld [vmem:[%s16071_s27 + $0x101] sm:$0xff] }
  0x60   : > { %13979 = vmatmul.mubr.msk.f32.gmra.mrb[6].mxu1 %vm276_vm1, %v16359_v34  ;;  %14615 = vmatmul.mubr.msk.f32.gmra.mrb[14].mxu0 %vm276_vm1, %v12439_v36  ;;  %v16488_v36 = vld [vmem:[%s16071_s27 + $0x109] sm:$0xff] }
  0x61   : > { %13981 = vmatprep.mubr.msk.f32.mxu1 %vm276_vm1, %v16363_v38  ;;  %14619 = vmatprep.mubr.msk.f32.mxu0 %vm276_vm1, %v12458_v39  ;;  %v16491_v39 = vld [vmem:[%s16071_s27 + $0x111] sm:$0xff] }
  0x64   : > { %13982 = vmatmul.mubr.msk.f32.gmra.mrb[8].mxu1 %vm276_vm1, %v16373_v40  ;;  %14620 = vmatmul.mubr.msk.f32.vlgmr.msra.gmra.mrb[0].mxu0 %vm276_vm1, %v12459_v41  ;;  %v12544_v41 = vld [vmem:[%s18722_s1 + $0xf0] sm:$0x1f] }
  0x65   : > { %14644 = vmatpush3.msk.msra.mxu0 %vm325_vm0, %v16265_v62  ;;  %13984 = vmatprep.mubr.msk.f32.mxu1 %vm276_vm1, %v16377_v42  ;;  %v11738_v62 = vld [vmem:[%s16071_s27 + $0xc1] sm:$0xff] }
  0x66   : > { %14622 = vmatprep.mubr.msk.f32.mxu0 %vm276_vm1, %v12460_v43  ;;  %14669 = vmatprep.subr.msk.mxu0 %vm325_vm0, %v16383_v44  ;;  %v16510_v43 = vld [vmem:[%s16071_s27 + $0x121] sm:$0xff] }
  0x68   : > { %13985 = vmatmul.mubr.msk.f32.gmra.mrb[10].mxu1 %vm276_vm1, %v16393_v45  ;;  %14623 = vmatmul.mubr.msk.f32.gmra.mrb[2].mxu0 %vm276_vm1, %v12461_v46  ;;  %v6664_v46 = vld [vmem:[%s16071_s27 + $0x80] sm:$0xff] }
  0x69   : > { %13987 = vmatprep.mubr.msk.f32.mxu1 %vm276_vm1, %v16398_v47  ;;  %14625 = vmatprep.mubr.msk.f32.mxu0 %vm276_vm1, %v12462_v49  ;;  %v16575_v49 = vld [vmem:[%s16071_s27 + $0x32] sm:$0xff] }
  0x6c   : > { %13988 = vmatmul.mubr.msk.f32.gmra.mrb[12].mxu1 %vm276_vm1, %v16410_v51  ;;  %14626 = vmatmul.mubr.msk.f32.gmra.mrb[4].mxu0 %vm276_vm1, %v12463_v53  ;;  %v6666_v53 = vld [vmem:[%s16071_s27 + $0x90] sm:$0xff] }
  0x6d   : > { %13990 = vmatprep.mubr.msk.f32.mxu1 %vm276_vm1, %v16414_v55  ;;  %14628 = vmatprep.mubr.msk.f32.mxu0 %vm276_vm1, %v12464_v57  ;;  %v6667_v57 = vld [vmem:[%s16071_s27 + $0x98] sm:$0xff] }
  0x70   : > { %13991 = vmatmul.mubr.msk.f32.gmra.mrb[14].mxu1 %vm276_vm1, %v16424_v59  ;;  %14629 = vmatmul.mubr.msk.f32.gmra.mrb[6].mxu0 %vm276_vm1, %v12465_v61  ;;  %v16589_v61 = vld [vmem:[%s16071_s27 + $0x42] sm:$0xff] }
  0x71   : > { %13995 = vmatprep.mubr.msk.f32.mxu1 %vm276_vm1, %v11738_v62  ;;  %14631 = vmatprep.mubr.msk.f32.mxu0 %vm276_vm1, %v12466_v0  ;;  %v16599_v62 = vld [vmem:[%s16071_s27 + $0x4a] sm:$0xff]  ;;  %v16602_v0 = vld [vmem:[%s16071_s27 + $0x52] sm:$0xff] }
  0x74   : > { %13996 = vmatmul.mubr.msk.f32.vlgmr.msra.gmra.mrb[0].mxu1 %vm276_vm1, %v11739_v2  ;;  %14632 = vmatmul.mubr.msk.f32.gmra.mrb[8].mxu0 %vm276_vm1, %v12467_v4  ;;  %v12578_v2 = vld [vmem:[%s18722_s1 + $0xf8] sm:$0x1f]  ;;  %v16620_v4 = vld [vmem:[%s16071_s27 + $0x62] sm:$0xff] }
  0x75   : > { %14020 = vmatpush3.msk.msra.mxu1 %vm325_vm0, %v16323_v17  ;;  %13998 = vmatprep.mubr.msk.f32.mxu1 %vm276_vm1, %v11740_v6  ;;  %v12471_v17 = vld [vmem:[%s16071_s27 + $0x1fb] sm:$0xff]  ;;  %v11792_v6 = vld [vmem:[%s16071_s27 + $0xd2] sm:$0xff] }
  0x76   : > { %14634 = vmatprep.mubr.msk.f32.mxu0 %vm276_vm1, %v12468_v8  ;;  %14045 = vmatprep.subr.msk.mxu1 %vm325_vm0, %v11806_v9  ;;  %v12522_v8 = vld [vmem:[%s16071_s27 + $0x140] sm:$0xff] }
  0x78   : > { %13999 = vmatmul.mubr.msk.f32.gmra.mrb[2].mxu1 %vm276_vm1, %v11741_v10  ;;  %14635 = vmatmul.mubr.msk.f32.gmra.mrb[10].mxu0 %vm276_vm1, %v12469_v11  ;;  %v12524_v10 = vld [vmem:[%s16071_s27 + $0x150] sm:$0xff]  ;;  %v12525_v11 = vld [vmem:[%s16071_s27 + $0x158] sm:$0xff] }
  0x79   : > { %14001 = vmatprep.mubr.msk.f32.mxu1 %vm276_vm1, %v16450_v12  ;;  %14637 = vmatprep.mubr.msk.f32.mxu0 %vm276_vm1, %v12470_v13  ;;  %v16699_v13 = vld [vmem:[%s16071_s27 + $0x102] sm:$0xff] }
  0x7c   : > { %14002 = vmatmul.mubr.msk.f32.gmra.mrb[4].mxu1 %vm276_vm1, %v16460_v15  ;;  %14638 = vmatmul.mubr.msk.f32.gmra.mrb[12].mxu0 %vm276_vm1, %v12471_v17  ;;  %v16709_v17 = vld [vmem:[%s16071_s27 + $0x10a] sm:$0xff] }
  0x7d   : > { %14004 = vmatprep.mubr.msk.f32.mxu1 %vm276_vm1, %v16464_v19  ;;  %14640 = vmatprep.mubr.msk.f32.mxu0 %vm276_vm1, %v12472_v21  ;;  %v16712_v21 = vld [vmem:[%s16071_s27 + $0x112] sm:$0xff] }
  0x80   : > { %14005 = vmatmul.mubr.msk.f32.gmra.mrb[6].mxu1 %vm276_vm1, %v16474_v25  ;;  %14641 = vmatmul.mubr.msk.f32.gmra.mrb[14].mxu0 %vm276_vm1, %v12473_v28  ;;  %v12596_v28 = vld [vmem:[%s18722_s1 + $0x100] sm:$0x1f] }
  0x81   : > { %14007 = vmatprep.mubr.msk.f32.mxu1 %vm276_vm1, %v16478_v32  ;;  %14645 = vmatprep.mubr.msk.f32.mxu0 %vm276_vm1, %v16216_v48  ;;  %v16505_v48 = vld [vmem:[%s16071_s27 + $0x119] sm:$0xff] }
  0x84   : > { %14008 = vmatmul.mubr.msk.f32.gmra.mrb[8].mxu1 %vm276_vm1, %v16488_v36  ;;  %14646 = vmatmul.mubr.msk.f32.vlgmr.msra.gmra.mrb[0].mxu0 %vm276_vm1, %v16227_v50  ;;  %v16522_v50 = vld [vmem:[%s16071_s27 + $0x129] sm:$0xff] }
  0x85   : > { %14670 = vmatpush3.msk.msra.mxu0 %vm325_vm0, %v16383_v44  ;;  %14010 = vmatprep.mubr.msk.f32.mxu1 %vm276_vm1, %v16491_v39  ;;  %v1132_v44 = vld [vmem:[%s16071_s27 + $0x12] sm:$0xff] }
  0x86   : > { %14648 = vmatprep.mubr.msk.f32.mxu0 %vm276_vm1, %v16231_v52  ;;  %14695 = vmatprep.subr.msk.mxu0 %vm325_vm0, %v12544_v41  ;;  %v16525_v52 = vld [vmem:[%s16071_s27 + $0x131] sm:$0xff] }
  0x88   : > { %14011 = vmatmul.mubr.msk.f32.gmra.mrb[10].mxu1 %vm276_vm1, %v16505_v48  ;;  %14649 = vmatmul.mubr.msk.f32.gmra.mrb[2].mxu0 %vm276_vm1, %v16241_v54  ;;  %v16536_v54 = vld [vmem:[%s16071_s27 + $0x139] sm:$0xff] }
  0x89   : > { %14013 = vmatprep.mubr.msk.f32.mxu1 %vm276_vm1, %v16510_v43  ;;  %14651 = vmatprep.mubr.msk.f32.mxu0 %vm276_vm1, %v16245_v56  ;;  %v1130_v56 = vld [vmem:[%s16071_s27 + $0x2] sm:$0xff] }
  0x8c   : > { %14014 = vmatmul.mubr.msk.f32.gmra.mrb[12].mxu1 %vm276_vm1, %v16522_v50  ;;  %14652 = vmatmul.mubr.msk.f32.gmra.mrb[4].mxu0 %vm276_vm1, %v16255_v58  ;;  %v1131_v58 = vld [vmem:[%s16071_s27 + $0xa] sm:$0xff] }
  0x8d   : > { %14016 = vmatprep.mubr.msk.f32.mxu1 %vm276_vm1, %v16525_v52  ;;  %14654 = vmatprep.mubr.msk.f32.mxu0 %vm276_vm1, %v16259_v60  ;;  %v11824_v60 = vld [vmem:[%s18722_s1 + $0x30] sm:$0x1f] }
  0x90   : > { %14017 = vmatmul.mubr.msk.f32.gmra.mrb[14].mxu1 %vm276_vm1, %v16536_v54  ;;  %14655 = vmatmul.mubr.msk.f32.gmra.mrb[6].mxu0 %vm276_vm1, %v16275_v63  ;;  %v1133_v63 = vld [vmem:[%s16071_s27 + $0x1a] sm:$0xff] }
  0x91   : > { %14021 = vmatprep.mubr.msk.f32.mxu1 %vm276_vm1, %v1130_v56  ;;  %14657 = vmatprep.mubr.msk.f32.mxu0 %vm276_vm1, %v16280_v1  ;;  %v16560_v1 = vld [vmem:[%s16071_s27 + $0x22] sm:$0xff]  ;;  %v1592_v56 = vld [vmem:[%s16071_s27 + $0x13] sm:$0xff] }
  0x94   : > { %14022 = vmatmul.mubr.msk.f32.vlgmr.msra.gmra.mrb[0].mxu1 %vm276_vm1, %v1131_v58  ;;  %14658 = vmatmul.mubr.msk.f32.gmra.mrb[8].mxu0 %vm276_vm1, %v16292_v3  ;;  %v16571_v3 = vld [vmem:[%s16071_s27 + $0x2a] sm:$0xff]  ;;  %v7124_v58 = vld [vmem:[%s16071_s27 + $0x81] sm:$0xff] }
  0x95   : > { %14046 = vmatpush3.msk.msra.mxu1 %vm325_vm0, %v11806_v9  ;;  %14024 = vmatprep.mubr.msk.f32.mxu1 %vm276_vm1, %v1132_v44  ;;  %v16685_v9 = vld [vmem:[%s16071_s27 + $0xf2] sm:$0xff] }
  0x96   : > { %14660 = vmatprep.mubr.msk.f32.mxu0 %vm276_vm1, %v16296_v5  ;;  %14071 = vmatprep.subr.msk.mxu1 %vm325_vm0, %v11824_v60  ;;  %v6665_v5 = vld [vmem:[%s16071_s27 + $0x88] sm:$0xff]  ;;  %v16795_v44 = vld [vmem:[%s16071_s27 + $0x33] sm:$0xff] }
  0x98   : > { %14025 = vmatmul.mubr.msk.f32.gmra.mrb[2].mxu1 %vm276_vm1, %v1133_v63  ;;  %14661 = vmatmul.mubr.msk.f32.gmra.mrb[10].mxu0 %vm276_vm1, %v16306_v7  ;;  %v16585_v7 = vld [vmem:[%s16071_s27 + $0x3a] sm:$0xff] }
  0x99   : > { %14027 = vmatprep.mubr.msk.f32.mxu1 %vm276_vm1, %v16560_v1  ;;  %14663 = vmatprep.mubr.msk.f32.mxu0 %vm276_vm1, %v6664_v46  ;;  %v7127_v63 = vld [vmem:[%s16071_s27 + $0x99] sm:$0xff]  ;;  %v16809_v46 = vld [vmem:[%s16071_s27 + $0x43] sm:$0xff] }
  0x9c   : > { %14028 = vmatmul.mubr.msk.f32.gmra.mrb[4].mxu1 %vm276_vm1, %v16571_v3  ;;  %14664 = vmatmul.mubr.msk.f32.gmra.mrb[12].mxu0 %vm276_vm1, %v6665_v5  ;;  %v16819_v5 = vld [vmem:[%s16071_s27 + $0x4b] sm:$0xff] }
  0x9d   : > { %14030 = vmatprep.mubr.msk.f32.mxu1 %vm276_vm1, %v16575_v49  ;;  %14666 = vmatprep.mubr.msk.f32.mxu0 %vm276_vm1, %v6666_v53  ;;  %v16822_v53 = vld [vmem:[%s16071_s27 + $0x53] sm:$0xff] }
  0xa0   : > { %14031 = vmatmul.mubr.msk.f32.gmra.mrb[6].mxu1 %vm276_vm1, %v16585_v7  ;;  %14667 = vmatmul.mubr.msk.f32.gmra.mrb[14].mxu0 %vm276_vm1, %v6667_v57  ;;  %v12630_v57 = vld [vmem:[%s18722_s1 + $0x108] sm:$0x1f] }
  0xa1   : > { %14033 = vmatprep.mubr.msk.f32.mxu1 %vm276_vm1, %v16589_v61  ;;  %14671 = vmatprep.mubr.msk.f32.mxu0 %vm276_vm1, %v16098_v14  ;;  %v16615_v14 = vld [vmem:[%s16071_s27 + $0x5a] sm:$0xff] }
  0xa4   : > { %14034 = vmatmul.mubr.msk.f32.gmra.mrb[8].mxu1 %vm276_vm1, %v16599_v62  ;;  %14672 = vmatmul.mubr.msk.f32.vlgmr.msra.gmra.mrb[0].mxu0 %vm276_vm1, %v16110_v16  ;;  %v16632_v16 = vld [vmem:[%s16071_s27 + $0x6a] sm:$0xff] }
  0xa5   : > { %14696 = vmatpush3.msk.msra.mxu0 %vm325_vm0, %v12544_v41  ;;  %14036 = vmatprep.mubr.msk.f32.mxu1 %vm276_vm1, %v16602_v0  ;;  %v16730_v41 = vld [vmem:[%s16071_s27 + $0x122] sm:$0xff] }
  0xa6   : > { %14674 = vmatprep.mubr.msk.f32.mxu0 %vm276_vm1, %v16114_v18  ;;  %14721 = vmatprep.subr.msk.mxu0 %vm325_vm0, %v12578_v2  ;;  %v16635_v18 = vld [vmem:[%s16071_s27 + $0x72] sm:$0xff] }
  0xa8   : > { %14037 = vmatmul.mubr.msk.f32.gmra.mrb[10].mxu1 %vm276_vm1, %v16615_v14  ;;  %14675 = vmatmul.mubr.msk.f32.gmra.mrb[2].mxu0 %vm276_vm1, %v16124_v20  ;;  %v16646_v20 = vld [vmem:[%s16071_s27 + $0x7a] sm:$0xff] }
  0xa9   : > { %14039 = vmatprep.mubr.msk.f32.mxu1 %vm276_vm1, %v16620_v4  ;;  %14677 = vmatprep.mubr.msk.f32.mxu0 %vm276_vm1, %v16128_v22  ;;  %v11790_v22 = vld [vmem:[%s16071_s27 + $0xc2] sm:$0xff] }
  0xac   : > { %14040 = vmatmul.mubr.msk.f32.gmra.mrb[12].mxu1 %vm276_vm1, %v16632_v16  ;;  %14678 = vmatmul.mubr.msk.f32.gmra.mrb[4].mxu0 %vm276_vm1, %v16138_v24  ;;  %v11791_v24 = vld [vmem:[%s16071_s27 + $0xca] sm:$0xff] }
  0xad   : > { %14042 = vmatprep.mubr.msk.f32.mxu1 %vm276_vm1, %v16635_v18  ;;  %14680 = vmatprep.mubr.msk.f32.mxu0 %vm276_vm1, %v16142_v26  ;;  %v11858_v26 = vld [vmem:[%s18722_s1 + $0x38] sm:$0x1f] }
  0xb0   : > { %14043 = vmatmul.mubr.msk.f32.gmra.mrb[14].mxu1 %vm276_vm1, %v16646_v20  ;;  %14681 = vmatmul.mubr.msk.f32.gmra.mrb[6].mxu0 %vm276_vm1, %v16157_v29  ;;  %v11793_v29 = vld [vmem:[%s16071_s27 + $0xda] sm:$0xff] }
  0xb1   : > { %14047 = vmatprep.mubr.msk.f32.mxu1 %vm276_vm1, %v11790_v22  ;;  %14683 = vmatprep.mubr.msk.f32.mxu0 %vm276_vm1, %v16162_v31  ;;  %v16670_v31 = vld [vmem:[%s16071_s27 + $0xe2] sm:$0xff]  ;;  %v11844_v22 = vld [vmem:[%s16071_s27 + $0x190] sm:$0xff] }
  0xb4   : > { %14048 = vmatmul.mubr.msk.f32.vlgmr.msra.gmra.mrb[0].mxu1 %vm276_vm1, %v11791_v24  ;;  %14684 = vmatmul.mubr.msk.f32.gmra.mrb[8].mxu0 %vm276_vm1, %v16174_v33  ;;  %v16681_v33 = vld [vmem:[%s16071_s27 + $0xea] sm:$0xff]  ;;  %v12574_v24 = vld [vmem:[%s16071_s27 + $0x141] sm:$0xff] }
  0xb5   : > { %14072 = vmatpush3.msk.msra.mxu1 %vm325_vm0, %v11824_v60  ;;  %14050 = vmatprep.mubr.msk.f32.mxu1 %vm276_vm1, %v11792_v6  ;;  %v7126_v60 = vld [vmem:[%s16071_s27 + $0x91] sm:$0xff] }
  0xb6   : > { %14686 = vmatprep.mubr.msk.f32.mxu0 %vm276_vm1, %v16178_v35  ;;  %14097 = vmatprep.subr.msk.mxu1 %vm325_vm0, %v11858_v26  ;;  %v12523_v35 = vld [vmem:[%s16071_s27 + $0x148] sm:$0xff]  ;;  %v16905_v6 = vld [vmem:[%s16071_s27 + $0x1b0] sm:$0xff] }
  0xb8   : > { %14051 = vmatmul.mubr.msk.f32.gmra.mrb[2].mxu1 %vm276_vm1, %v11793_v29  ;;  %14687 = vmatmul.mubr.msk.f32.gmra.mrb[10].mxu0 %vm276_vm1, %v16188_v37  ;;  %v16695_v37 = vld [vmem:[%s16071_s27 + $0xfa] sm:$0xff] }
  0xb9   : > { %14053 = vmatprep.mubr.msk.f32.mxu1 %vm276_vm1, %v16670_v31  ;;  %14689 = vmatprep.mubr.msk.f32.mxu0 %vm276_vm1, %v12522_v8  ;;  %v12577_v29 = vld [vmem:[%s16071_s27 + $0x159] sm:$0xff] }
  0xba   : > { %v16919_v8 = vld [vmem:[%s16071_s27 + $0x1c0] sm:$0xff] }
  0xbc   : > { %14054 = vmatmul.mubr.msk.f32.gmra.mrb[4].mxu1 %vm276_vm1, %v16681_v33  ;;  %14690 = vmatmul.mubr.msk.f32.gmra.mrb[12].mxu0 %vm276_vm1, %v12523_v35  ;;  %v16929_v35 = vld [vmem:[%s16071_s27 + $0x1c8] sm:$0xff] }
  0xbd   : > { %14056 = vmatprep.mubr.msk.f32.mxu1 %vm276_vm1, %v16685_v9  ;;  %14692 = vmatprep.mubr.msk.f32.mxu0 %vm276_vm1, %v12524_v10  ;;  %v16932_v10 = vld [vmem:[%s16071_s27 + $0x1d0] sm:$0xff] }
  0xc0   : > { %14057 = vmatmul.mubr.msk.f32.gmra.mrb[6].mxu1 %vm276_vm1, %v16695_v37  ;;  %14693 = vmatmul.mubr.msk.f32.gmra.mrb[14].mxu0 %vm276_vm1, %v12525_v11  ;;  %v12648_v11 = vld [vmem:[%s18722_s1 + $0x110] sm:$0x1f] }
  0xc1   : > { %14059 = vmatprep.mubr.msk.f32.mxu1 %vm276_vm1, %v16699_v13  ;;  %14697 = vmatprep.mubr.msk.f32.mxu0 %vm276_vm1, %v16334_v23  ;;  %v16725_v23 = vld [vmem:[%s16071_s27 + $0x11a] sm:$0xff] }
  0xc4   : > { %14060 = vmatmul.mubr.msk.f32.gmra.mrb[8].mxu1 %vm276_vm1, %v16709_v17  ;;  %14698 = vmatmul.mubr.msk.f32.vlgmr.msra.gmra.mrb[0].mxu0 %vm276_vm1, %v16345_v27  ;;  %v16742_v27 = vld [vmem:[%s16071_s27 + $0x12a] sm:$0xff] }
  0xc5   : > { %14722 = vmatpush3.msk.msra.mxu0 %vm325_vm0, %v12578_v2  ;;  %14062 = vmatprep.mubr.msk.f32.mxu1 %vm276_vm1, %v16712_v21  ;;  %v16840_v2 = vld [vmem:[%s16071_s27 + $0x63] sm:$0xff] }
  0xc6   : > { %14700 = vmatprep.mubr.msk.f32.mxu0 %vm276_vm1, %v16349_v30  ;;  %14747 = vmatprep.subr.msk.mxu0 %vm325_vm0, %v12596_v28  ;;  %v16745_v30 = vld [vmem:[%s16071_s27 + $0x132] sm:$0xff] }
  0xc8   : > { %14063 = vmatmul.mubr.msk.f32.gmra.mrb[10].mxu1 %vm276_vm1, %v16725_v23  ;;  %14701 = vmatmul.mubr.msk.f32.gmra.mrb[2].mxu0 %vm276_vm1, %v16359_v34  ;;  %v16756_v34 = vld [vmem:[%s16071_s27 + $0x13a] sm:$0xff] }
  0xc9   : > { %14065 = vmatprep.mubr.msk.f32.mxu1 %vm276_vm1, %v16730_v41  ;;  %14703 = vmatprep.mubr.msk.f32.mxu0 %vm276_vm1, %v16363_v38  ;;  %v1590_v38 = vld [vmem:[%s16071_s27 + $0x3] sm:$0xff] }
  0xcc   : > { %14066 = vmatmul.mubr.msk.f32.gmra.mrb[12].mxu1 %vm276_vm1, %v16742_v27  ;;  %14704 = vmatmul.mubr.msk.f32.gmra.mrb[4].mxu0 %vm276_vm1, %v16373_v40  ;;  %v1591_v40 = vld [vmem:[%s16071_s27 + $0xb] sm:$0xff] }
  0xcd   : > { %14068 = vmatprep.mubr.msk.f32.mxu1 %vm276_vm1, %v16745_v30  ;;  %14706 = vmatprep.mubr.msk.f32.mxu0 %vm276_vm1, %v16377_v42  ;;  %v11892_v42 = vld [vmem:[%s18722_s1 + $0x40] sm:$0x1f] }
  0xd0   : > { %14069 = vmatmul.mubr.msk.f32.gmra.mrb[14].mxu1 %vm276_vm1, %v16756_v34  ;;  %14707 = vmatmul.mubr.msk.f32.gmra.mrb[6].mxu0 %vm276_vm1, %v16393_v45  ;;  %v1593_v45 = vld [vmem:[%s16071_s27 + $0x1b] sm:$0xff] }
  0xd1   : > { %14073 = vmatprep.mubr.msk.f32.mxu1 %vm276_vm1, %v1590_v38  ;;  %14709 = vmatprep.mubr.msk.f32.mxu0 %vm276_vm1, %v16398_v47  ;;  %v16780_v47 = vld [vmem:[%s16071_s27 + $0x23] sm:$0xff]  ;;  %v11878_v38 = vld [vmem:[%s16071_s27 + $0x250] sm:$0xff] }
  0xd4   : > { %14074 = vmatmul.mubr.msk.f32.vlgmr.msra.gmra.mrb[0].mxu1 %vm276_vm1, %v1591_v40  ;;  %14710 = vmatmul.mubr.msk.f32.gmra.mrb[8].mxu0 %vm276_vm1, %v16410_v51  ;;  %v16791_v51 = vld [vmem:[%s16071_s27 + $0x2b] sm:$0xff]  ;;  %v7584_v40 = vld [vmem:[%s16071_s27 + $0x82] sm:$0xff] }
  0xd5   : > { %14098 = vmatpush3.msk.msra.mxu1 %vm325_vm0, %v11858_v26  ;;  %14076 = vmatprep.mubr.msk.f32.mxu1 %vm276_vm1, %v1592_v56  ;;  %v12576_v26 = vld [vmem:[%s16071_s27 + $0x151] sm:$0xff] }
  0xd6   : > { %14712 = vmatprep.mubr.msk.f32.mxu0 %vm276_vm1, %v16414_v55  ;;  %14123 = vmatprep.subr.msk.mxu1 %vm325_vm0, %v11892_v42  ;;  %v7125_v55 = vld [vmem:[%s16071_s27 + $0x89] sm:$0xff] }
  0xd7   : > { %v17015_v56 = vld [vmem:[%s16071_s27 + $0x270] sm:$0xff] }
  0xd8   : > { %14077 = vmatmul.mubr.msk.f32.gmra.mrb[2].mxu1 %vm276_vm1, %v1593_v45  ;;  %14713 = vmatmul.mubr.msk.f32.gmra.mrb[10].mxu0 %vm276_vm1, %v16424_v59  ;;  %v16805_v59 = vld [vmem:[%s16071_s27 + $0x3b] sm:$0xff] }
  0xd9   : > { %14079 = vmatprep.mubr.msk.f32.mxu1 %vm276_vm1, %v16780_v47  ;;  %14715 = vmatprep.mubr.msk.f32.mxu0 %vm276_vm1, %v7124_v58  ;;  %v7587_v45 = vld [vmem:[%s16071_s27 + $0x9a] sm:$0xff] }
  0xda   : > { %v17029_v58 = vld [vmem:[%s16071_s27 + $0x280] sm:$0xff] }
  0xdc   : > { %14080 = vmatmul.mubr.msk.f32.gmra.mrb[4].mxu1 %vm276_vm1, %v16791_v51  ;;  %14716 = vmatmul.mubr.msk.f32.gmra.mrb[12].mxu0 %vm276_vm1, %v7125_v55  ;;  %v17039_v55 = vld [vmem:[%s16071_s27 + $0x288] sm:$0xff] }
  0xdd   : > { %14082 = vmatprep.mubr.msk.f32.mxu1 %vm276_vm1, %v16795_v44  ;;  %14718 = vmatprep.mubr.msk.f32.mxu0 %vm276_vm1, %v7126_v60  ;;  %v17042_v60 = vld [vmem:[%s16071_s27 + $0x290] sm:$0xff] }
  0xe0   : > { %14083 = vmatmul.mubr.msk.f32.gmra.mrb[6].mxu1 %vm276_vm1, %v16805_v59  ;;  %14719 = vmatmul.mubr.msk.f32.gmra.mrb[14].mxu0 %vm276_vm1, %v7127_v63  ;;  %v12682_v63 = vld [vmem:[%s18722_s1 + $0x118] sm:$0x1f] }
  0xe1   : > { %14085 = vmatprep.mubr.msk.f32.mxu1 %vm276_vm1, %v16809_v46  ;;  %14723 = vmatprep.mubr.msk.f32.mxu0 %vm276_vm1, %v16450_v12  ;;  %v16835_v12 = vld [vmem:[%s16071_s27 + $0x5b] sm:$0xff] }
  0xe4   : > { %14086 = vmatmul.mubr.msk.f32.gmra.mrb[8].mxu1 %vm276_vm1, %v16819_v5  ;;  %14724 = vmatmul.mubr.msk.f32.vlgmr.msra.gmra.mrb[0].mxu0 %vm276_vm1, %v16460_v15  ;;  %v16852_v15 = vld [vmem:[%s16071_s27 + $0x6b] sm:$0xff] }
  0xe5   : > { %14748 = vmatpush3.msk.msra.mxu0 %vm325_vm0, %v12596_v28  ;;  %14088 = vmatprep.mubr.msk.f32.mxu1 %vm276_vm1, %v16822_v53  ;;  %v16950_v28 = vld [vmem:[%s16071_s27 + $0x1e0] sm:$0xff] }
  0xe6   : > { %14726 = vmatprep.mubr.msk.f32.mxu0 %vm276_vm1, %v16464_v19  ;;  %14773 = vmatprep.subr.msk.mxu0 %vm325_vm0, %v12630_v57  ;;  %v16855_v19 = vld [vmem:[%s16071_s27 + $0x73] sm:$0xff] }
  0xe8   : > { %14089 = vmatmul.mubr.msk.f32.gmra.mrb[10].mxu1 %vm276_vm1, %v16835_v12  ;;  %14727 = vmatmul.mubr.msk.f32.gmra.mrb[2].mxu0 %vm276_vm1, %v16474_v25  ;;  %v16866_v25 = vld [vmem:[%s16071_s27 + $0x7b] sm:$0xff] }
  0xe9   : > { %14091 = vmatprep.mubr.msk.f32.mxu1 %vm276_vm1, %v16840_v2  ;;  %14729 = vmatprep.mubr.msk.f32.mxu0 %vm276_vm1, %v16478_v32  ;;  %v11842_v32 = vld [vmem:[%s16071_s27 + $0x180] sm:$0xff] }
  0xec   : > { %14092 = vmatmul.mubr.msk.f32.gmra.mrb[12].mxu1 %vm276_vm1, %v16852_v15  ;;  %14730 = vmatmul.mubr.msk.f32.gmra.mrb[4].mxu0 %vm276_vm1, %v16488_v36  ;;  %v11843_v36 = vld [vmem:[%s16071_s27 + $0x188] sm:$0xff] }
  0xed   : > { %14094 = vmatprep.mubr.msk.f32.mxu1 %vm276_vm1, %v16855_v19  ;;  %14732 = vmatprep.mubr.msk.f32.mxu0 %vm276_vm1, %v16491_v39  ;;  %v11926_v39 = vld [vmem:[%s18722_s1 + $0x48] sm:$0x1f] }
  0xf0   : > { %14095 = vmatmul.mubr.msk.f32.gmra.mrb[14].mxu1 %vm276_vm1, %v16866_v25  ;;  %14733 = vmatmul.mubr.msk.f32.gmra.mrb[6].mxu0 %vm276_vm1, %v16505_v48  ;;  %v11845_v48 = vld [vmem:[%s16071_s27 + $0x198] sm:$0xff] }
  0xf1   : > { %14099 = vmatprep.mubr.msk.f32.mxu1 %vm276_vm1, %v11842_v32  ;;  %14735 = vmatprep.mubr.msk.f32.mxu0 %vm276_vm1, %v16510_v43  ;;  %v16890_v43 = vld [vmem:[%s16071_s27 + $0x1a0] sm:$0xff]  ;;  %v11912_v32 = vld [vmem:[%s16071_s27 + $0x191] sm:$0xff] }
  0xf4   : > { %14100 = vmatmul.mubr.msk.f32.vlgmr.msra.gmra.mrb[0].mxu1 %vm276_vm1, %v11843_v36  ;;  %14736 = vmatmul.mubr.msk.f32.gmra.mrb[8].mxu0 %vm276_vm1, %v16522_v50  ;;  %v16901_v50 = vld [vmem:[%s16071_s27 + $0x1a8] sm:$0xff] }
  0xf5   : > { %14124 = vmatpush3.msk.msra.mxu1 %vm325_vm0, %v11892_v42  ;;  %14102 = vmatprep.mubr.msk.f32.mxu1 %vm276_vm1, %v11844_v22  ;;  %v7586_v42 = vld [vmem:[%s16071_s27 + $0x92] sm:$0xff]  ;;  %v12626_v36 = vld [vmem:[%s16071_s27 + $0x142] sm:$0xff] }
  0xf6   : > { %14738 = vmatprep.mubr.msk.f32.mxu0 %vm276_vm1, %v16525_v52  ;;  %14149 = vmatprep.subr.msk.mxu1 %vm325_vm0, %v11926_v39  ;;  %v12575_v52 = vld [vmem:[%s16071_s27 + $0x149] sm:$0xff]  ;;  %v17125_v22 = vld [vmem:[%s16071_s27 + $0x1b1] sm:$0xff] }
  0xf8   : > { %14103 = vmatmul.mubr.msk.f32.gmra.mrb[2].mxu1 %vm276_vm1, %v11845_v48  ;;  %14739 = vmatmul.mubr.msk.f32.gmra.mrb[10].mxu0 %vm276_vm1, %v16536_v54  ;;  %v16915_v54 = vld [vmem:[%s16071_s27 + $0x1b8] sm:$0xff] }
  0xf9   : > { %14105 = vmatprep.mubr.msk.f32.mxu1 %vm276_vm1, %v16890_v43  ;;  %14741 = vmatprep.mubr.msk.f32.mxu0 %vm276_vm1, %v12574_v24  ;;  %v12629_v48 = vld [vmem:[%s16071_s27 + $0x15a] sm:$0xff] }
  0xfa   : > { %v17139_v24 = vld [vmem:[%s16071_s27 + $0x1c1] sm:$0xff] }
  0xfc   : > { %14106 = vmatmul.mubr.msk.f32.gmra.mrb[4].mxu1 %vm276_vm1, %v16901_v50  ;;  %14742 = vmatmul.mubr.msk.f32.gmra.mrb[12].mxu0 %vm276_vm1, %v12575_v52  ;;  %v17149_v52 = vld [vmem:[%s16071_s27 + $0x1c9] sm:$0xff] }
  0xfd   : > { %14108 = vmatprep.mubr.msk.f32.mxu1 %vm276_vm1, %v16905_v6  ;;  %14744 = vmatprep.mubr.msk.f32.mxu0 %vm276_vm1, %v12576_v26  ;;  %v17152_v26 = vld [vmem:[%s16071_s27 + $0x1d1] sm:$0xff] }
 0x100   : > { %14109 = vmatmul.mubr.msk.f32.gmra.mrb[6].mxu1 %vm276_vm1, %v16915_v54  ;;  %14745 = vmatmul.mubr.msk.f32.gmra.mrb[14].mxu0 %vm276_vm1, %v12577_v29  ;;  %v12716_v29 = vld [vmem:[%s18722_s1 + $0x120] sm:$0x1f] }
 0x101   : > { %14111 = vmatprep.mubr.msk.f32.mxu1 %vm276_vm1, %v16919_v8  ;;  %14749 = vmatprep.mubr.msk.f32.mxu0 %vm276_vm1, %v16560_v1  ;;  %v16945_v1 = vld [vmem:[%s16071_s27 + $0x1d8] sm:$0xff] }
 0x104   : > { %14112 = vmatmul.mubr.msk.f32.gmra.mrb[8].mxu1 %vm276_vm1, %v16929_v35  ;;  %14750 = vmatmul.mubr.msk.f32.vlgmr.msra.gmra.mrb[0].mxu0 %vm276_vm1, %v16571_v3  ;;  %v16962_v3 = vld [vmem:[%s16071_s27 + $0x1e8] sm:$0xff] }
 0x105   : > { %14774 = vmatpush3.msk.msra.mxu0 %vm325_vm0, %v12630_v57  ;;  %14114 = vmatprep.mubr.msk.f32.mxu1 %vm276_vm1, %v16932_v10  ;;  %v17060_v57 = vld [vmem:[%s16071_s27 + $0x2a0] sm:$0xff] }
 0x106   : > { %14752 = vmatprep.mubr.msk.f32.mxu0 %vm276_vm1, %v16575_v49  ;;  %14799 = vmatprep.subr.msk.mxu0 %vm325_vm0, %v12648_v11  ;;  %v16965_v49 = vld [vmem:[%s16071_s27 + $0x1f0] sm:$0xff] }
 0x108   : > { %14115 = vmatmul.mubr.msk.f32.gmra.mrb[10].mxu1 %vm276_vm1, %v16945_v1  ;;  %14753 = vmatmul.mubr.msk.f32.gmra.mrb[2].mxu0 %vm276_vm1, %v16585_v7  ;;  %v16976_v7 = vld [vmem:[%s16071_s27 + $0x1f8] sm:$0xff] }
 0x109   : > { %14117 = vmatprep.mubr.msk.f32.mxu1 %vm276_vm1, %v16950_v28  ;;  %14755 = vmatprep.mubr.msk.f32.mxu0 %vm276_vm1, %v16589_v61  ;;  %v11876_v61 = vld [vmem:[%s16071_s27 + $0x240] sm:$0xff] }
 0x10c   : > { %14118 = vmatmul.mubr.msk.f32.gmra.mrb[12].mxu1 %vm276_vm1, %v16962_v3  ;;  %14756 = vmatmul.mubr.msk.f32.gmra.mrb[4].mxu0 %vm276_vm1, %v16599_v62  ;;  %v11877_v62 = vld [vmem:[%s16071_s27 + $0x248] sm:$0xff] }
 0x10d   : > { %14120 = vmatprep.mubr.msk.f32.mxu1 %vm276_vm1, %v16965_v49  ;;  %14758 = vmatprep.mubr.msk.f32.mxu0 %vm276_vm1, %v16602_v0  ;;  %v11960_v0 = vld [vmem:[%s18722_s1 + $0x50] sm:$0x1f] }
 0x110   : > { %14121 = vmatmul.mubr.msk.f32.gmra.mrb[14].mxu1 %vm276_vm1, %v16976_v7  ;;  %14759 = vmatmul.mubr.msk.f32.gmra.mrb[6].mxu0 %vm276_vm1, %v16615_v14  ;;  %v11879_v14 = vld [vmem:[%s16071_s27 + $0x258] sm:$0xff] }
 0x111   : > { %14125 = vmatprep.mubr.msk.f32.mxu1 %vm276_vm1, %v11876_v61  ;;  %14761 = vmatprep.mubr.msk.f32.mxu0 %vm276_vm1, %v16620_v4  ;;  %v17000_v4 = vld [vmem:[%s16071_s27 + $0x260] sm:$0xff]  ;;  %v11946_v61 = vld [vmem:[%s16071_s27 + $0x251] sm:$0xff] }
 0x114   : > { %14126 = vmatmul.mubr.msk.f32.vlgmr.msra.gmra.mrb[0].mxu1 %vm276_vm1, %v11877_v62  ;;  %14762 = vmatmul.mubr.msk.f32.gmra.mrb[8].mxu0 %vm276_vm1, %v16632_v16  ;;  %v17011_v16 = vld [vmem:[%s16071_s27 + $0x268] sm:$0xff] }
 0x115   : > { %14150 = vmatpush3.msk.msra.mxu1 %vm325_vm0, %v11926_v39  ;;  %14128 = vmatprep.mubr.msk.f32.mxu1 %vm276_vm1, %v11878_v38  ;;  %v12628_v39 = vld [vmem:[%s16071_s27 + $0x152] sm:$0xff]  ;;  %v8044_v62 = vld [vmem:[%s16071_s27 + $0x83] sm:$0xff] }
 0x116   : > { %14764 = vmatprep.mubr.msk.f32.mxu0 %vm276_vm1, %v16635_v18  ;;  %14175 = vmatprep.subr.msk.mxu1 %vm325_vm0, %v11960_v0  ;;  %v7585_v18 = vld [vmem:[%s16071_s27 + $0x8a] sm:$0xff] }
 0x117   : > { %v17235_v38 = vld [vmem:[%s16071_s27 + $0x271] sm:$0xff] }
 0x118   : > { %14129 = vmatmul.mubr.msk.f32.gmra.mrb[2].mxu1 %vm276_vm1, %v11879_v14  ;;  %14765 = vmatmul.mubr.msk.f32.gmra.mrb[10].mxu0 %vm276_vm1, %v16646_v20  ;;  %v17025_v20 = vld [vmem:[%s16071_s27 + $0x278] sm:$0xff] }
 0x119   : > { %14131 = vmatprep.mubr.msk.f32.mxu1 %vm276_vm1, %v17000_v4  ;;  %14767 = vmatprep.mubr.msk.f32.mxu0 %vm276_vm1, %v7584_v40  ;;  %v8047_v14 = vld [vmem:[%s16071_s27 + $0x9b] sm:$0xff] }
 0x11a   : > { %v17249_v40 = vld [vmem:[%s16071_s27 + $0x281] sm:$0xff] }
 0x11c   : > { %14132 = vmatmul.mubr.msk.f32.gmra.mrb[4].mxu1 %vm276_vm1, %v17011_v16  ;;  %14768 = vmatmul.mubr.msk.f32.gmra.mrb[12].mxu0 %vm276_vm1, %v7585_v18  ;;  %v17259_v18 = vld [vmem:[%s16071_s27 + $0x289] sm:$0xff] }
 0x11d   : > { %14134 = vmatprep.mubr.msk.f32.mxu1 %vm276_vm1, %v17015_v56  ;;  %14770 = vmatprep.mubr.msk.f32.mxu0 %vm276_vm1, %v7586_v42  ;;  %v17262_v42 = vld [vmem:[%s16071_s27 + $0x291] sm:$0xff] }
 0x120   : > { %14135 = vmatmul.mubr.msk.f32.gmra.mrb[6].mxu1 %vm276_vm1, %v17025_v20  ;;  %14771 = vmatmul.mubr.msk.f32.gmra.mrb[14].mxu0 %vm276_vm1, %v7587_v45  ;;  %v12750_v45 = vld [vmem:[%s18722_s1 + $0x128] sm:$0x1f] }
 0x121   : > { %14137 = vmatprep.mubr.msk.f32.mxu1 %vm276_vm1, %v17029_v58  ;;  %14775 = vmatprep.mubr.msk.f32.mxu0 %vm276_vm1, %v16670_v31  ;;  %v17055_v31 = vld [vmem:[%s16071_s27 + $0x298] sm:$0xff] }
 0x124   : > { %14138 = vmatmul.mubr.msk.f32.gmra.mrb[8].mxu1 %vm276_vm1, %v17039_v55  ;;  %14776 = vmatmul.mubr.msk.f32.vlgmr.msra.gmra.mrb[0].mxu0 %vm276_vm1, %v16681_v33  ;;  %v17072_v33 = vld [vmem:[%s16071_s27 + $0x2a8] sm:$0xff] }
 0x125   : > { %14800 = vmatpush3.msk.msra.mxu0 %vm325_vm0, %v12648_v11  ;;  %14140 = vmatprep.mubr.msk.f32.mxu1 %vm276_vm1, %v17042_v60  ;;  %v17170_v11 = vld [vmem:[%s16071_s27 + $0x1e1] sm:$0xff] }
 0x126   : > { %14778 = vmatprep.mubr.msk.f32.mxu0 %vm276_vm1, %v16685_v9  ;;  %14825 = vmatprep.subr.msk.mxu0 %vm325_vm0, %v12682_v63  ;;  %v17075_v9 = vld [vmem:[%s16071_s27 + $0x2b0] sm:$0xff] }
 0x128   : > { %14141 = vmatmul.mubr.msk.f32.gmra.mrb[10].mxu1 %vm276_vm1, %v17055_v31  ;;  %14779 = vmatmul.mubr.msk.f32.gmra.mrb[2].mxu0 %vm276_vm1, %v16695_v37  ;;  %v17086_v37 = vld [vmem:[%s16071_s27 + $0x2b8] sm:$0xff] }
 0x129   : > { %14143 = vmatprep.mubr.msk.f32.mxu1 %vm276_vm1, %v17060_v57  ;;  %14781 = vmatprep.mubr.msk.f32.mxu0 %vm276_vm1, %v16699_v13  ;;  %v11910_v13 = vld [vmem:[%s16071_s27 + $0x181] sm:$0xff] }
 0x12c   : > { %14144 = vmatmul.mubr.msk.f32.gmra.mrb[12].mxu1 %vm276_vm1, %v17072_v33  ;;  %14782 = vmatmul.mubr.msk.f32.gmra.mrb[4].mxu0 %vm276_vm1, %v16709_v17  ;;  %v11911_v17 = vld [vmem:[%s16071_s27 + $0x189] sm:$0xff] }
 0x12d   : > { %14146 = vmatprep.mubr.msk.f32.mxu1 %vm276_vm1, %v17075_v9  ;;  %14784 = vmatprep.mubr.msk.f32.mxu0 %vm276_vm1, %v16712_v21  ;;  %v11994_v21 = vld [vmem:[%s18722_s1 + $0x58] sm:$0x1f] }
 0x130   : > { %14147 = vmatmul.mubr.msk.f32.gmra.mrb[14].mxu1 %vm276_vm1, %v17086_v37  ;;  %14785 = vmatmul.mubr.msk.f32.gmra.mrb[6].mxu0 %vm276_vm1, %v16725_v23  ;;  %v11913_v23 = vld [vmem:[%s16071_s27 + $0x199] sm:$0xff] }
 0x131   : > { %14151 = vmatprep.mubr.msk.f32.mxu1 %vm276_vm1, %v11910_v13  ;;  %14787 = vmatprep.mubr.msk.f32.mxu0 %vm276_vm1, %v16730_v41  ;;  %v17110_v41 = vld [vmem:[%s16071_s27 + $0x1a1] sm:$0xff]  ;;  %v11980_v13 = vld [vmem:[%s16071_s27 + $0x192] sm:$0xff] }
 0x134   : > { %14152 = vmatmul.mubr.msk.f32.vlgmr.msra.gmra.mrb[0].mxu1 %vm276_vm1, %v11911_v17  ;;  %14788 = vmatmul.mubr.msk.f32.gmra.mrb[8].mxu0 %vm276_vm1, %v16742_v27  ;;  %v17121_v27 = vld [vmem:[%s16071_s27 + $0x1a9] sm:$0xff]  ;;  %v12678_v17 = vld [vmem:[%s16071_s27 + $0x200] sm:$0xff] }
 0x135   : > { %14176 = vmatpush3.msk.msra.mxu1 %vm325_vm0, %v11960_v0  ;;  %14154 = vmatprep.mubr.msk.f32.mxu1 %vm276_vm1, %v11912_v32  ;;  %v8046_v0 = vld [vmem:[%s16071_s27 + $0x93] sm:$0xff] }
 0x136   : > { %14790 = vmatprep.mubr.msk.f32.mxu0 %vm276_vm1, %v16745_v30  ;;  %14201 = vmatprep.subr.msk.mxu1 %vm325_vm0, %v11994_v21  ;;  %v12627_v30 = vld [vmem:[%s16071_s27 + $0x14a] sm:$0xff]  ;;  %v17345_v32 = vld [vmem:[%s16071_s27 + $0x1b2] sm:$0xff] }
 0x138   : > { %14155 = vmatmul.mubr.msk.f32.gmra.mrb[2].mxu1 %vm276_vm1, %v11913_v23  ;;  %14791 = vmatmul.mubr.msk.f32.gmra.mrb[10].mxu0 %vm276_vm1, %v16756_v34  ;;  %v17135_v34 = vld [vmem:[%s16071_s27 + $0x1b9] sm:$0xff] }
 0x139   : > { %14157 = vmatprep.mubr.msk.f32.mxu1 %vm276_vm1, %v17110_v41  ;;  %14793 = vmatprep.mubr.msk.f32.mxu0 %vm276_vm1, %v12626_v36  ;;  %v12681_v23 = vld [vmem:[%s16071_s27 + $0x218] sm:$0xff]  ;;  %v17359_v36 = vld [vmem:[%s16071_s27 + $0x1c2] sm:$0xff] }
 0x13c   : > { %14158 = vmatmul.mubr.msk.f32.gmra.mrb[4].mxu1 %vm276_vm1, %v17121_v27  ;;  %14794 = vmatmul.mubr.msk.f32.gmra.mrb[12].mxu0 %vm276_vm1, %v12627_v30  ;;  %v17369_v30 = vld [vmem:[%s16071_s27 + $0x1ca] sm:$0xff] }
 0x13d   : > { %14160 = vmatprep.mubr.msk.f32.mxu1 %vm276_vm1, %v17125_v22  ;;  %14796 = vmatprep.mubr.msk.f32.mxu0 %vm276_vm1, %v12628_v39  ;;  %v17372_v39 = vld [vmem:[%s16071_s27 + $0x1d2] sm:$0xff] }
 0x140   : > { %14161 = vmatmul.mubr.msk.f32.gmra.mrb[6].mxu1 %vm276_vm1, %v17135_v34  ;;  %14797 = vmatmul.mubr.msk.f32.gmra.mrb[14].mxu0 %vm276_vm1, %v12629_v48  ;;  %v12784_v48 = vld [vmem:[%s18722_s1 + $0x130] sm:$0x1f] }
 0x141   : > { %14163 = vmatprep.mubr.msk.f32.mxu1 %vm276_vm1, %v17139_v24  ;;  %14801 = vmatprep.mubr.msk.f32.mxu0 %vm276_vm1, %v16780_v47  ;;  %v17165_v47 = vld [vmem:[%s16071_s27 + $0x1d9] sm:$0xff] }
 0x144   : > { %14164 = vmatmul.mubr.msk.f32.gmra.mrb[8].mxu1 %vm276_vm1, %v17149_v52  ;;  %14802 = vmatmul.mubr.msk.f32.vlgmr.msra.gmra.mrb[0].mxu0 %vm276_vm1, %v16791_v51  ;;  %v17182_v51 = vld [vmem:[%s16071_s27 + $0x1e9] sm:$0xff] }
 0x145   : > { %14826 = vmatpush3.msk.msra.mxu0 %vm325_vm0, %v12682_v63  ;;  %14166 = vmatprep.mubr.msk.f32.mxu1 %vm276_vm1, %v17152_v26  ;;  %v17280_v63 = vld [vmem:[%s16071_s27 + $0x2a1] sm:$0xff] }
 0x146   : > { %14804 = vmatprep.mubr.msk.f32.mxu0 %vm276_vm1, %v16795_v44  ;;  %14851 = vmatprep.subr.msk.mxu0 %vm325_vm0, %v12716_v29  ;;  %v17185_v44 = vld [vmem:[%s16071_s27 + $0x1f1] sm:$0xff] }
 0x148   : > { %14167 = vmatmul.mubr.msk.f32.gmra.mrb[10].mxu1 %vm276_vm1, %v17165_v47  ;;  %14805 = vmatmul.mubr.msk.f32.gmra.mrb[2].mxu0 %vm276_vm1, %v16805_v59  ;;  %v17196_v59 = vld [vmem:[%s16071_s27 + $0x1f9] sm:$0xff] }
 0x149   : > { %14169 = vmatprep.mubr.msk.f32.mxu1 %vm276_vm1, %v17170_v11  ;;  %14807 = vmatprep.mubr.msk.f32.mxu0 %vm276_vm1, %v16809_v46  ;;  %v11944_v46 = vld [vmem:[%s16071_s27 + $0x241] sm:$0xff] }
 0x14c   : > { %14170 = vmatmul.mubr.msk.f32.gmra.mrb[12].mxu1 %vm276_vm1, %v17182_v51  ;;  %14808 = vmatmul.mubr.msk.f32.gmra.mrb[4].mxu0 %vm276_vm1, %v16819_v5  ;;  %v11945_v5 = vld [vmem:[%s16071_s27 + $0x249] sm:$0xff] }
 0x14d   : > { %14172 = vmatprep.mubr.msk.f32.mxu1 %vm276_vm1, %v17185_v44  ;;  %14810 = vmatprep.mubr.msk.f32.mxu0 %vm276_vm1, %v16822_v53  ;;  %v12028_v53 = vld [vmem:[%s18722_s1 + $0x60] sm:$0x1f] }
 0x150   : > { %14173 = vmatmul.mubr.msk.f32.gmra.mrb[14].mxu1 %vm276_vm1, %v17196_v59  ;;  %14811 = vmatmul.mubr.msk.f32.gmra.mrb[6].mxu0 %vm276_vm1, %v16835_v12  ;;  %v11947_v12 = vld [vmem:[%s16071_s27 + $0x259] sm:$0xff] }
 0x151   : > { %14177 = vmatprep.mubr.msk.f32.mxu1 %vm276_vm1, %v11944_v46  ;;  %14813 = vmatprep.mubr.msk.f32.mxu0 %vm276_vm1, %v16840_v2  ;;  %v17220_v2 = vld [vmem:[%s16071_s27 + $0x261] sm:$0xff]  ;;  %v12014_v46 = vld [vmem:[%s16071_s27 + $0x252] sm:$0xff] }
 0x154   : > { %14178 = vmatmul.mubr.msk.f32.vlgmr.msra.gmra.mrb[0].mxu1 %vm276_vm1, %v11945_v5  ;;  %14814 = vmatmul.mubr.msk.f32.gmra.mrb[8].mxu0 %vm276_vm1, %v16852_v15  ;;  %v17231_v15 = vld [vmem:[%s16071_s27 + $0x269] sm:$0xff]  ;;  %v12712_v5 = vld [vmem:[%s16071_s27 + $0x2c0] sm:$0xff] }
 0x155   : > { %14202 = vmatpush3.msk.msra.mxu1 %vm325_vm0, %v11994_v21  ;;  %14180 = vmatprep.mubr.msk.f32.mxu1 %vm276_vm1, %v11946_v61  ;;  %v12680_v21 = vld [vmem:[%s16071_s27 + $0x210] sm:$0xff] }
 0x156   : > { %14816 = vmatprep.mubr.msk.f32.mxu0 %vm276_vm1, %v16855_v19  ;;  %14227 = vmatprep.subr.msk.mxu1 %vm325_vm0, %v12028_v53  ;;  %v8045_v19 = vld [vmem:[%s16071_s27 + $0x8b] sm:$0xff] }
 0x157   : > { %v17455_v61 = vld [vmem:[%s16071_s27 + $0x272] sm:$0xff] }
 0x158   : > { %14181 = vmatmul.mubr.msk.f32.gmra.mrb[2].mxu1 %vm276_vm1, %v11947_v12  ;;  %14817 = vmatmul.mubr.msk.f32.gmra.mrb[10].mxu0 %vm276_vm1, %v16866_v25  ;;  %v17245_v25 = vld [vmem:[%s16071_s27 + $0x279] sm:$0xff] }
 0x159   : > { %14183 = vmatprep.mubr.msk.f32.mxu1 %vm276_vm1, %v17220_v2  ;;  %14819 = vmatprep.mubr.msk.f32.mxu0 %vm276_vm1, %v8044_v62  ;;  %v12715_v12 = vld [vmem:[%s16071_s27 + $0x2d8] sm:$0xff]  ;;  %v17469_v62 = vld [vmem:[%s16071_s27 + $0x282] sm:$0xff] }
 0x15c   : > { %14184 = vmatmul.mubr.msk.f32.gmra.mrb[4].mxu1 %vm276_vm1, %v17231_v15  ;;  %14820 = vmatmul.mubr.msk.f32.gmra.mrb[12].mxu0 %vm276_vm1, %v8045_v19  ;;  %v17479_v19 = vld [vmem:[%s16071_s27 + $0x28a] sm:$0xff] }
 0x15d   : > { %14186 = vmatprep.mubr.msk.f32.mxu1 %vm276_vm1, %v17235_v38  ;;  %14822 = vmatprep.mubr.msk.f32.mxu0 %vm276_vm1, %v8046_v0  ;;  %v17482_v0 = vld [vmem:[%s16071_s27 + $0x292] sm:$0xff] }
 0x160   : > { %14187 = vmatmul.mubr.msk.f32.gmra.mrb[6].mxu1 %vm276_vm1, %v17245_v25  ;;  %14823 = vmatmul.mubr.msk.f32.gmra.mrb[14].mxu0 %vm276_vm1, %v8047_v14  ;;  %v12818_v14 = vld [vmem:[%s18722_s1 + $0x138] sm:$0x1f] }
 0x161   : > { %14189 = vmatprep.mubr.msk.f32.mxu1 %vm276_vm1, %v17249_v40  ;;  %14827 = vmatprep.mubr.msk.f32.mxu0 %vm276_vm1, %v16890_v43  ;;  %v17275_v43 = vld [vmem:[%s16071_s27 + $0x299] sm:$0xff] }
 0x164   : > { %14190 = vmatmul.mubr.msk.f32.gmra.mrb[8].mxu1 %vm276_vm1, %v17259_v18  ;;  %14828 = vmatmul.mubr.msk.f32.vlgmr.msra.gmra.mrb[0].mxu0 %vm276_vm1, %v16901_v50  ;;  %v17292_v50 = vld [vmem:[%s16071_s27 + $0x2a9] sm:$0xff] }
 0x165   : > { %14852 = vmatpush3.msk.msra.mxu0 %vm325_vm0, %v12716_v29  ;;  %14192 = vmatprep.mubr.msk.f32.mxu1 %vm276_vm1, %v17262_v42  ;;  %v17390_v29 = vld [vmem:[%s16071_s27 + $0x1e2] sm:$0xff] }
 0x166   : > { %14830 = vmatprep.mubr.msk.f32.mxu0 %vm276_vm1, %v16905_v6  ;;  %14877 = vmatprep.subr.msk.mxu0 %vm325_vm0, %v12750_v45  ;;  %v17295_v6 = vld [vmem:[%s16071_s27 + $0x2b1] sm:$0xff] }
 0x168   : > { %14193 = vmatmul.mubr.msk.f32.gmra.mrb[10].mxu1 %vm276_vm1, %v17275_v43  ;;  %14831 = vmatmul.mubr.msk.f32.gmra.mrb[2].mxu0 %vm276_vm1, %v16915_v54  ;;  %v17306_v54 = vld [vmem:[%s16071_s27 + $0x2b9] sm:$0xff] }
 0x169   : > { %14195 = vmatprep.mubr.msk.f32.mxu1 %vm276_vm1, %v17280_v63  ;;  %14833 = vmatprep.mubr.msk.f32.mxu0 %vm276_vm1, %v16919_v8  ;;  %v11978_v8 = vld [vmem:[%s16071_s27 + $0x182] sm:$0xff] }
 0x16c   : > { %14196 = vmatmul.mubr.msk.f32.gmra.mrb[12].mxu1 %vm276_vm1, %v17292_v50  ;;  %14834 = vmatmul.mubr.msk.f32.gmra.mrb[4].mxu0 %vm276_vm1, %v16929_v35  ;;  %v11979_v35 = vld [vmem:[%s16071_s27 + $0x18a] sm:$0xff] }
 0x16d   : > { %14198 = vmatprep.mubr.msk.f32.mxu1 %vm276_vm1, %v17295_v6  ;;  %14836 = vmatprep.mubr.msk.f32.mxu0 %vm276_vm1, %v16932_v10  ;;  %v12062_v10 = vld [vmem:[%s18722_s1 + $0x68] sm:$0x1f] }
 0x170   : > { %14199 = vmatmul.mubr.msk.f32.gmra.mrb[14].mxu1 %vm276_vm1, %v17306_v54  ;;  %14837 = vmatmul.mubr.msk.f32.gmra.mrb[6].mxu0 %vm276_vm1, %v16945_v1  ;;  %v11981_v1 = vld [vmem:[%s16071_s27 + $0x19a] sm:$0xff] }
 0x171   : > { %14203 = vmatprep.mubr.msk.f32.mxu1 %vm276_vm1, %v11978_v8  ;;  %14839 = vmatprep.mubr.msk.f32.mxu0 %vm276_vm1, %v16950_v28  ;;  %v17330_v28 = vld [vmem:[%s16071_s27 + $0x1a2] sm:$0xff]  ;;  %v12048_v8 = vld [vmem:[%s16071_s27 + $0x193] sm:$0xff] }
 0x174   : > { %14204 = vmatmul.mubr.msk.f32.vlgmr.msra.gmra.mrb[0].mxu1 %vm276_vm1, %v11979_v35  ;;  %14840 = vmatmul.mubr.msk.f32.gmra.mrb[8].mxu0 %vm276_vm1, %v16962_v3  ;;  %v17341_v3 = vld [vmem:[%s16071_s27 + $0x1aa] sm:$0xff]  ;;  %v12746_v35 = vld [vmem:[%s16071_s27 + $0x201] sm:$0xff] }
 0x175   : > { %14228 = vmatpush3.msk.msra.mxu1 %vm325_vm0, %v12028_v53  ;;  %14206 = vmatprep.mubr.msk.f32.mxu1 %vm276_vm1, %v11980_v13  ;;  %v12714_v53 = vld [vmem:[%s16071_s27 + $0x2d0] sm:$0xff] }
 0x176   : > { %14842 = vmatprep.mubr.msk.f32.mxu0 %vm276_vm1, %v16965_v49  ;;  %14253 = vmatprep.subr.msk.mxu1 %vm325_vm0, %v12062_v10  ;;  %v12679_v49 = vld [vmem:[%s16071_s27 + $0x208] sm:$0xff]  ;;  %v17565_v13 = vld [vmem:[%s16071_s27 + $0x1b3] sm:$0xff] }
 0x178   : > { %14207 = vmatmul.mubr.msk.f32.gmra.mrb[2].mxu1 %vm276_vm1, %v11981_v1  ;;  %14843 = vmatmul.mubr.msk.f32.gmra.mrb[10].mxu0 %vm276_vm1, %v16976_v7  ;;  %v17355_v7 = vld [vmem:[%s16071_s27 + $0x1ba] sm:$0xff] }
 0x179   : > { %14209 = vmatprep.mubr.msk.f32.mxu1 %vm276_vm1, %v17330_v28  ;;  %14845 = vmatprep.mubr.msk.f32.mxu0 %vm276_vm1, %v12678_v17  ;;  %v12749_v1 = vld [vmem:[%s16071_s27 + $0x219] sm:$0xff]  ;;  %v17579_v17 = vld [vmem:[%s16071_s27 + $0x1c3] sm:$0xff] }
 0x17c   : > { %14210 = vmatmul.mubr.msk.f32.gmra.mrb[4].mxu1 %vm276_vm1, %v17341_v3  ;;  %14846 = vmatmul.mubr.msk.f32.gmra.mrb[12].mxu0 %vm276_vm1, %v12679_v49  ;;  %v17589_v49 = vld [vmem:[%s16071_s27 + $0x1cb] sm:$0xff] }
 0x17d   : > { %14212 = vmatprep.mubr.msk.f32.mxu1 %vm276_vm1, %v17345_v32  ;;  %14848 = vmatprep.mubr.msk.f32.mxu0 %vm276_vm1, %v12680_v21  ;;  %v17592_v21 = vld [vmem:[%s16071_s27 + $0x1d3] sm:$0xff] }
 0x180   : > { %14213 = vmatmul.mubr.msk.f32.gmra.mrb[6].mxu1 %vm276_vm1, %v17355_v7  ;;  %14849 = vmatmul.mubr.msk.f32.gmra.mrb[14].mxu0 %vm276_vm1, %v12681_v23  ;;  %v12852_v23 = vld [vmem:[%s18722_s1 + $0x140] sm:$0x1f] }
 0x181   : > { %14215 = vmatprep.mubr.msk.f32.mxu1 %vm276_vm1, %v17359_v36  ;;  %14853 = vmatprep.mubr.msk.f32.mxu0 %vm276_vm1, %v17000_v4  ;;  %v17385_v4 = vld [vmem:[%s16071_s27 + $0x1da] sm:$0xff] }
 0x184   : > { %14216 = vmatmul.mubr.msk.f32.gmra.mrb[8].mxu1 %vm276_vm1, %v17369_v30  ;;  %14854 = vmatmul.mubr.msk.f32.vlgmr.msra.gmra.mrb[0].mxu0 %vm276_vm1, %v17011_v16  ;;  %v17402_v16 = vld [vmem:[%s16071_s27 + $0x1ea] sm:$0xff] }
 0x185   : > { %14878 = vmatpush3.msk.msra.mxu0 %vm325_vm0, %v12750_v45  ;;  %14218 = vmatprep.mubr.msk.f32.mxu1 %vm276_vm1, %v17372_v39  ;;  %v17500_v45 = vld [vmem:[%s16071_s27 + $0x2a2] sm:$0xff] }
 0x186   : > { %14856 = vmatprep.mubr.msk.f32.mxu0 %vm276_vm1, %v17015_v56  ;;  %14903 = vmatprep.subr.msk.mxu0 %vm325_vm0, %v12784_v48  ;;  %v17405_v56 = vld [vmem:[%s16071_s27 + $0x1f2] sm:$0xff] }
 0x188   : > { %14219 = vmatmul.mubr.msk.f32.gmra.mrb[10].mxu1 %vm276_vm1, %v17385_v4  ;;  %14857 = vmatmul.mubr.msk.f32.gmra.mrb[2].mxu0 %vm276_vm1, %v17025_v20  ;;  %v17416_v20 = vld [vmem:[%s16071_s27 + $0x1fa] sm:$0xff] }
 0x189   : > { %14221 = vmatprep.mubr.msk.f32.mxu1 %vm276_vm1, %v17390_v29  ;;  %14859 = vmatprep.mubr.msk.f32.mxu0 %vm276_vm1, %v17029_v58  ;;  %v12012_v58 = vld [vmem:[%s16071_s27 + $0x242] sm:$0xff] }
 0x18c   : > { %14222 = vmatmul.mubr.msk.f32.gmra.mrb[12].mxu1 %vm276_vm1, %v17402_v16  ;;  %14860 = vmatmul.mubr.msk.f32.gmra.mrb[4].mxu0 %vm276_vm1, %v17039_v55  ;;  %v12013_v55 = vld [vmem:[%s16071_s27 + $0x24a] sm:$0xff] }
 0x18d   : > { %14224 = vmatprep.mubr.msk.f32.mxu1 %vm276_vm1, %v17405_v56  ;;  %14862 = vmatprep.mubr.msk.f32.mxu0 %vm276_vm1, %v17042_v60  ;;  %v12080_v60 = vld [vmem:[%s18722_s1 + $0x70] sm:$0x1f] }
 0x190   : > { %14225 = vmatmul.mubr.msk.f32.gmra.mrb[14].mxu1 %vm276_vm1, %v17416_v20  ;;  %14863 = vmatmul.mubr.msk.f32.gmra.mrb[6].mxu0 %vm276_vm1, %v17055_v31  ;;  %v12015_v31 = vld [vmem:[%s16071_s27 + $0x25a] sm:$0xff] }
 0x191   : > { %14229 = vmatprep.mubr.msk.f32.mxu1 %vm276_vm1, %v12012_v58  ;;  %14865 = vmatprep.mubr.msk.f32.mxu0 %vm276_vm1, %v17060_v57  ;;  %v17440_v57 = vld [vmem:[%s16071_s27 + $0x262] sm:$0xff] }
 0x192   : > { %v3434_v58 = vld [vmem:[%s16071_s27 + $0x20] sm:$0xff] }
 0x194   : > { %14230 = vmatmul.mubr.msk.f32.vlgmr.msra.gmra.mrb[0].mxu1 %vm276_vm1, %v12013_v55  ;;  %14866 = vmatmul.mubr.msk.f32.gmra.mrb[8].mxu0 %vm276_vm1, %v17072_v33  ;;  %v17451_v33 = vld [vmem:[%s16071_s27 + $0x26a] sm:$0xff]  ;;  %v12780_v55 = vld [vmem:[%s16071_s27 + $0x2c1] sm:$0xff] }
 0x195   : > { %14254 = vmatpush3.msk.msra.mxu1 %vm325_vm0, %v12062_v10  ;;  %14232 = vmatprep.mubr.msk.f32.mxu1 %vm276_vm1, %v12014_v46  ;;  %v12748_v10 = vld [vmem:[%s16071_s27 + $0x211] sm:$0xff]  ;;  %v17675_v46 = vld [vmem:[%s16071_s27 + $0x40] sm:$0xff] }
 0x196   : > { %14868 = vmatprep.mubr.msk.f32.mxu0 %vm276_vm1, %v17075_v9  ;;  %14279 = vmatprep.subr.msk.mxu1 %vm325_vm0, %v12080_v60  ;;  %v12713_v9 = vld [vmem:[%s16071_s27 + $0x2c8] sm:$0xff] }
 0x198   : > { %14233 = vmatmul.mubr.msk.f32.gmra.mrb[2].mxu1 %vm276_vm1, %v12015_v31  ;;  %14869 = vmatmul.mubr.msk.f32.gmra.mrb[10].mxu0 %vm276_vm1, %v17086_v37  ;;  %v17465_v37 = vld [vmem:[%s16071_s27 + $0x27a] sm:$0xff] }
 0x199   : > { %14235 = vmatprep.mubr.msk.f32.mxu1 %vm276_vm1, %v17440_v57  ;;  %14871 = vmatprep.mubr.msk.f32.mxu0 %vm276_vm1, %v12712_v5  ;;  %v12783_v31 = vld [vmem:[%s16071_s27 + $0x2d9] sm:$0xff]  ;;  %v17689_v5 = vld [vmem:[%s16071_s27 + $0x50] sm:$0xff] }
 0x19c   : > { %14236 = vmatmul.mubr.msk.f32.gmra.mrb[4].mxu1 %vm276_vm1, %v17451_v33  ;;  %14872 = vmatmul.mubr.msk.f32.gmra.mrb[12].mxu0 %vm276_vm1, %v12713_v9  ;;  %v17699_v9 = vld [vmem:[%s16071_s27 + $0x58] sm:$0xff] }
 0x19d   : > { %14238 = vmatprep.mubr.msk.f32.mxu1 %vm276_vm1, %v17455_v61  ;;  %14874 = vmatprep.mubr.msk.f32.mxu0 %vm276_vm1, %v12714_v53  ;;  %v17702_v53 = vld [vmem:[%s16071_s27 + $0x60] sm:$0xff] }
 0x1a0   : > { %14239 = vmatmul.mubr.msk.f32.gmra.mrb[6].mxu1 %vm276_vm1, %v17465_v37  ;;  %14875 = vmatmul.mubr.msk.f32.gmra.mrb[14].mxu0 %vm276_vm1, %v12715_v12  ;;  %v12886_v12 = vld [vmem:[%s18722_s1 + $0x148] sm:$0x1f] }
 0x1a1   : > { %14241 = vmatprep.mubr.msk.f32.mxu1 %vm276_vm1, %v17469_v62  ;;  %14879 = vmatprep.mubr.msk.f32.mxu0 %vm276_vm1, %v17110_v41  ;;  %v17495_v41 = vld [vmem:[%s16071_s27 + $0x29a] sm:$0xff] }
 0x1a4   : > { %14242 = vmatmul.mubr.msk.f32.gmra.mrb[8].mxu1 %vm276_vm1, %v17479_v19  ;;  %14880 = vmatmul.mubr.msk.f32.vlgmr.msra.gmra.mrb[0].mxu0 %vm276_vm1, %v17121_v27  ;;  %v17512_v27 = vld [vmem:[%s16071_s27 + $0x2aa] sm:$0xff] }
 0x1a5   : > { %14904 = vmatpush3.msk.msra.mxu0 %vm325_vm0, %v12784_v48  ;;  %14244 = vmatprep.mubr.msk.f32.mxu1 %vm276_vm1, %v17482_v0  ;;  %v17610_v48 = vld [vmem:[%s16071_s27 + $0x1e3] sm:$0xff] }
 0x1a6   : > { %14882 = vmatprep.mubr.msk.f32.mxu0 %vm276_vm1, %v17125_v22  ;;  %14929 = vmatprep.subr.msk.mxu0 %vm325_vm0, %v12818_v14  ;;  %v17515_v22 = vld [vmem:[%s16071_s27 + $0x2b2] sm:$0xff] }
 0x1a8   : > { %14245 = vmatmul.mubr.msk.f32.gmra.mrb[10].mxu1 %vm276_vm1, %v17495_v41  ;;  %14883 = vmatmul.mubr.msk.f32.gmra.mrb[2].mxu0 %vm276_vm1, %v17135_v34  ;;  %v17526_v34 = vld [vmem:[%s16071_s27 + $0x2ba] sm:$0xff] }
 0x1a9   : > { %14247 = vmatprep.mubr.msk.f32.mxu1 %vm276_vm1, %v17500_v45  ;;  %14885 = vmatprep.mubr.msk.f32.mxu0 %vm276_vm1, %v17139_v24  ;;  %v12046_v24 = vld [vmem:[%s16071_s27 + $0x183] sm:$0xff] }
 0x1ac   : > { %14248 = vmatmul.mubr.msk.f32.gmra.mrb[12].mxu1 %vm276_vm1, %v17512_v27  ;;  %14886 = vmatmul.mubr.msk.f32.gmra.mrb[4].mxu0 %vm276_vm1, %v17149_v52  ;;  %v12047_v52 = vld [vmem:[%s16071_s27 + $0x18b] sm:$0xff] }
 0x1ad   : > { %14250 = vmatprep.mubr.msk.f32.mxu1 %vm276_vm1, %v17515_v22  ;;  %14888 = vmatprep.mubr.msk.f32.mxu0 %vm276_vm1, %v17152_v26  ;;  %v12114_v26 = vld [vmem:[%s18722_s1 + $0x78] sm:$0x1f] }
 0x1b0   : > { %14251 = vmatmul.mubr.msk.f32.gmra.mrb[14].mxu1 %vm276_vm1, %v17526_v34  ;;  %14889 = vmatmul.mubr.msk.f32.gmra.mrb[6].mxu0 %vm276_vm1, %v17165_v47  ;;  %v12049_v47 = vld [vmem:[%s16071_s27 + $0x19b] sm:$0xff] }
 0x1b1   : > { %14255 = vmatprep.mubr.msk.f32.mxu1 %vm276_vm1, %v12046_v24  ;;  %14891 = vmatprep.mubr.msk.f32.mxu0 %vm276_vm1, %v17170_v11  ;;  %v17550_v11 = vld [vmem:[%s16071_s27 + $0x1a3] sm:$0xff] }
 0x1b2   : > { %v12100_v24 = vld [vmem:[%s16071_s27 + $0xe0] sm:$0xff] }
 0x1b4   : > { %14256 = vmatmul.mubr.msk.f32.vlgmr.msra.gmra.mrb[0].mxu1 %vm276_vm1, %v12047_v52  ;;  %14892 = vmatmul.mubr.msk.f32.gmra.mrb[8].mxu0 %vm276_vm1, %v17182_v51  ;;  %v17561_v51 = vld [vmem:[%s16071_s27 + $0x1ab] sm:$0xff]  ;;  %v12814_v52 = vld [vmem:[%s16071_s27 + $0x202] sm:$0xff] }
 0x1b5   : > { %14280 = vmatpush3.msk.msra.mxu1 %vm325_vm0, %v12080_v60  ;;  %14258 = vmatprep.mubr.msk.f32.mxu1 %vm276_vm1, %v12048_v8  ;;  %v12782_v60 = vld [vmem:[%s16071_s27 + $0x2d1] sm:$0xff]  ;;  %v17785_v8 = vld [vmem:[%s16071_s27 + $0x100] sm:$0xff] }
 0x1b6   : > { %14894 = vmatprep.mubr.msk.f32.mxu0 %vm276_vm1, %v17185_v44  ;;  %14305 = vmatprep.subr.msk.mxu1 %vm325_vm0, %v12114_v26  ;;  %v12747_v44 = vld [vmem:[%s16071_s27 + $0x209] sm:$0xff] }
 0x1b8   : > { %14259 = vmatmul.mubr.msk.f32.gmra.mrb[2].mxu1 %vm276_vm1, %v12049_v47  ;;  %14895 = vmatmul.mubr.msk.f32.gmra.mrb[10].mxu0 %vm276_vm1, %v17196_v59  ;;  %v17575_v59 = vld [vmem:[%s16071_s27 + $0x1bb] sm:$0xff] }
 0x1b9   : > { %14261 = vmatprep.mubr.msk.f32.mxu1 %vm276_vm1, %v17550_v11  ;;  %14897 = vmatprep.mubr.msk.f32.mxu0 %vm276_vm1, %v12746_v35  ;;  %v12817_v47 = vld [vmem:[%s16071_s27 + $0x21a] sm:$0xff]  ;;  %v17799_v35 = vld [vmem:[%s16071_s27 + $0x110] sm:$0xff] }
 0x1bc   : > { %14262 = vmatmul.mubr.msk.f32.gmra.mrb[4].mxu1 %vm276_vm1, %v17561_v51  ;;  %14898 = vmatmul.mubr.msk.f32.gmra.mrb[12].mxu0 %vm276_vm1, %v12747_v44  ;;  %v17809_v44 = vld [vmem:[%s16071_s27 + $0x118] sm:$0xff] }
 0x1bd   : > { %14264 = vmatprep.mubr.msk.f32.mxu1 %vm276_vm1, %v17565_v13  ;;  %14900 = vmatprep.mubr.msk.f32.mxu0 %vm276_vm1, %v12748_v10  ;;  %v17812_v10 = vld [vmem:[%s16071_s27 + $0x120] sm:$0xff] }
 0x1c0   : > { %14265 = vmatmul.mubr.msk.f32.gmra.mrb[6].mxu1 %vm276_vm1, %v17575_v59  ;;  %14901 = vmatmul.mubr.msk.f32.gmra.mrb[14].mxu0 %vm276_vm1, %v12749_v1  ;;  %v12904_v1 = vld [vmem:[%s18722_s1 + $0x150] sm:$0x1f] }
 0x1c1   : > { %14267 = vmatprep.mubr.msk.f32.mxu1 %vm276_vm1, %v17579_v17  ;;  %14905 = vmatprep.mubr.msk.f32.mxu0 %vm276_vm1, %v17220_v2  ;;  %v17605_v2 = vld [vmem:[%s16071_s27 + $0x1db] sm:$0xff] }
 0x1c4   : > { %14268 = vmatmul.mubr.msk.f32.gmra.mrb[8].mxu1 %vm276_vm1, %v17589_v49  ;;  %14906 = vmatmul.mubr.msk.f32.vlgmr.msra.gmra.mrb[0].mxu0 %vm276_vm1, %v17231_v15  ;;  %v17622_v15 = vld [vmem:[%s16071_s27 + $0x1eb] sm:$0xff] }
 0x1c5   : > { %14930 = vmatpush3.msk.msra.mxu0 %vm325_vm0, %v12818_v14  ;;  %14270 = vmatprep.mubr.msk.f32.mxu1 %vm276_vm1, %v17592_v21  ;;  %v17720_v14 = vld [vmem:[%s16071_s27 + $0x70] sm:$0xff] }
 0x1c6   : > { %14908 = vmatprep.mubr.msk.f32.mxu0 %vm276_vm1, %v17235_v38  ;;  %14955 = vmatprep.subr.msk.mxu0 %vm325_vm0, %v12852_v23  ;;  %v17625_v38 = vld [vmem:[%s16071_s27 + $0x1f3] sm:$0xff] }
 0x1c8   : > { %14271 = vmatmul.mubr.msk.f32.gmra.mrb[10].mxu1 %vm276_vm1, %v17605_v2  ;;  %14909 = vmatmul.mubr.msk.f32.gmra.mrb[2].mxu0 %vm276_vm1, %v17245_v25  ;;  %v17636_v25 = vld [vmem:[%s16071_s27 + $0x1fb] sm:$0xff] }
 0x1c9   : > { %14273 = vmatprep.mubr.msk.f32.mxu1 %vm276_vm1, %v17610_v48  ;;  %14911 = vmatprep.mubr.msk.f32.mxu0 %vm276_vm1, %v17249_v40  ;;  %v3432_v40 = vld [vmem:[%s16071_s27 + $0x10] sm:$0xff] }
 0x1cc   : > { %14274 = vmatmul.mubr.msk.f32.gmra.mrb[12].mxu1 %vm276_vm1, %v17622_v15  ;;  %14912 = vmatmul.mubr.msk.f32.gmra.mrb[4].mxu0 %vm276_vm1, %v17259_v18  ;;  %v3433_v18 = vld [vmem:[%s16071_s27 + $0x18] sm:$0xff] }
 0x1cd   : > { %14276 = vmatprep.mubr.msk.f32.mxu1 %vm276_vm1, %v17625_v38  ;;  %14914 = vmatprep.mubr.msk.f32.mxu0 %vm276_vm1, %v17262_v42  ;;  %v12132_v42 = vld [vmem:[%s18722_s1 + $0x80] sm:$0x1f] }
 0x1d0   : > { %14277 = vmatmul.mubr.msk.f32.gmra.mrb[14].mxu1 %vm276_vm1, %v17636_v25  ;;  %14915 = vmatmul.mubr.msk.f32.gmra.mrb[6].mxu0 %vm276_vm1, %v17275_v43  ;;  %v3435_v43 = vld [vmem:[%s16071_s27 + $0x28] sm:$0xff] }
 0x1d1   : > { %14281 = vmatprep.mubr.msk.f32.mxu1 %vm276_vm1, %v3432_v40  ;;  %14917 = vmatprep.mubr.msk.f32.mxu0 %vm276_vm1, %v17280_v63  ;;  %v17660_v63 = vld [vmem:[%s16071_s27 + $0x30] sm:$0xff]  ;;  %v3894_v40 = vld [vmem:[%s16071_s27 + $0x21] sm:$0xff] }
 0x1d4   : > { %14282 = vmatmul.mubr.msk.f32.vlgmr.msra.gmra.mrb[0].mxu1 %vm276_vm1, %v3433_v18  ;;  %14918 = vmatmul.mubr.msk.f32.gmra.mrb[8].mxu0 %vm276_vm1, %v17292_v50  ;;  %v17671_v50 = vld [vmem:[%s16071_s27 + $0x38] sm:$0xff]  ;;  %v12848_v18 = vld [vmem:[%s16071_s27 + $0x2c2] sm:$0xff] }
 0x1d5   : > { %14306 = vmatpush3.msk.msra.mxu1 %vm325_vm0, %v12114_v26  ;;  %14284 = vmatprep.mubr.msk.f32.mxu1 %vm276_vm1, %v3434_v58  ;;  %v12816_v26 = vld [vmem:[%s16071_s27 + $0x212] sm:$0xff]  ;;  %v17895_v58 = vld [vmem:[%s16071_s27 + $0x41] sm:$0xff] }
 0x1d6   : > { %14920 = vmatprep.mubr.msk.f32.mxu0 %vm276_vm1, %v17295_v6  ;;  %14331 = vmatprep.subr.msk.mxu1 %vm325_vm0, %v12132_v42  ;;  %v12781_v6 = vld [vmem:[%s16071_s27 + $0x2c9] sm:$0xff] }
 0x1d8   : > { %14285 = vmatmul.mubr.msk.f32.gmra.mrb[2].mxu1 %vm276_vm1, %v3435_v43  ;;  %14921 = vmatmul.mubr.msk.f32.gmra.mrb[10].mxu0 %vm276_vm1, %v17306_v54  ;;  %v17685_v54 = vld [vmem:[%s16071_s27 + $0x48] sm:$0xff]  ;;  %v12851_v43 = vld [vmem:[%s16071_s27 + $0x2da] sm:$0xff] }
 0x1d9   : > { %14287 = vmatprep.mubr.msk.f32.mxu1 %vm276_vm1, %v17660_v63  ;;  %14923 = vmatprep.mubr.msk.f32.mxu0 %vm276_vm1, %v12780_v55  ;;  %v17909_v55 = vld [vmem:[%s16071_s27 + $0x51] sm:$0xff] }
 0x1dc   : > { %14288 = vmatmul.mubr.msk.f32.gmra.mrb[4].mxu1 %vm276_vm1, %v17671_v50  ;;  %14924 = vmatmul.mubr.msk.f32.gmra.mrb[12].mxu0 %vm276_vm1, %v12781_v6  ;;  %v17919_v6 = vld [vmem:[%s16071_s27 + $0x59] sm:$0xff] }
 0x1dd   : > { %14290 = vmatprep.mubr.msk.f32.mxu1 %vm276_vm1, %v17675_v46  ;;  %14926 = vmatprep.mubr.msk.f32.mxu0 %vm276_vm1, %v12782_v60  ;;  %v17922_v60 = vld [vmem:[%s16071_s27 + $0x61] sm:$0xff] }
 0x1e0   : > { %14291 = vmatmul.mubr.msk.f32.gmra.mrb[6].mxu1 %vm276_vm1, %v17685_v54  ;;  %14927 = vmatmul.mubr.msk.f32.gmra.mrb[14].mxu0 %vm276_vm1, %v12783_v31  ;;  %v12938_v31 = vld [vmem:[%s18722_s1 + $0x158] sm:$0x1f] }
 0x1e1   : > { %14293 = vmatprep.mubr.msk.f32.mxu1 %vm276_vm1, %v17689_v5  ;;  %14931 = vmatprep.mubr.msk.f32.mxu0 %vm276_vm1, %v17330_v28  ;;  %v17715_v28 = vld [vmem:[%s16071_s27 + $0x68] sm:$0xff] }
 0x1e4   : > { %14294 = vmatmul.mubr.msk.f32.gmra.mrb[8].mxu1 %vm276_vm1, %v17699_v9  ;;  %14932 = vmatmul.mubr.msk.f32.vlgmr.msra.gmra.mrb[0].mxu0 %vm276_vm1, %v17341_v3  ;;  %v17732_v3 = vld [vmem:[%s16071_s27 + $0x78] sm:$0xff] }
 0x1e5   : > { %14956 = vmatpush3.msk.msra.mxu0 %vm325_vm0, %v12852_v23  ;;  %14296 = vmatprep.mubr.msk.f32.mxu1 %vm276_vm1, %v17702_v53  ;;  %v17830_v23 = vld [vmem:[%s16071_s27 + $0x130] sm:$0xff] }
 0x1e6   : > { %14934 = vmatprep.mubr.msk.f32.mxu0 %vm276_vm1, %v17345_v32  ;;  %14981 = vmatprep.subr.msk.mxu0 %vm325_vm0, %v12886_v12  ;;  %v17735_v32 = vld [vmem:[%s16071_s27 + $0x80] sm:$0xff] }
 0x1e8   : > { %14297 = vmatmul.mubr.msk.f32.gmra.mrb[10].mxu1 %vm276_vm1, %v17715_v28  ;;  %14935 = vmatmul.mubr.msk.f32.gmra.mrb[2].mxu0 %vm276_vm1, %v17355_v7  ;;  %v17746_v7 = vld [vmem:[%s16071_s27 + $0x88] sm:$0xff] }
 0x1e9   : > { %14299 = vmatprep.mubr.msk.f32.mxu1 %vm276_vm1, %v17720_v14  ;;  %14937 = vmatprep.mubr.msk.f32.mxu0 %vm276_vm1, %v17359_v36  ;;  %v12098_v36 = vld [vmem:[%s16071_s27 + $0xd0] sm:$0xff] }
 0x1ec   : > { %14300 = vmatmul.mubr.msk.f32.gmra.mrb[12].mxu1 %vm276_vm1, %v17732_v3  ;;  %14938 = vmatmul.mubr.msk.f32.gmra.mrb[4].mxu0 %vm276_vm1, %v17369_v30  ;;  %v12099_v30 = vld [vmem:[%s16071_s27 + $0xd8] sm:$0xff] }
 0x1ed   : > { %14302 = vmatprep.mubr.msk.f32.mxu1 %vm276_vm1, %v17735_v32  ;;  %14940 = vmatprep.mubr.msk.f32.mxu0 %vm276_vm1, %v17372_v39  ;;  %v12166_v39 = vld [vmem:[%s18722_s1 + $0x88] sm:$0x1f] }
 0x1f0   : > { %14303 = vmatmul.mubr.msk.f32.gmra.mrb[14].mxu1 %vm276_vm1, %v17746_v7  ;;  %14941 = vmatmul.mubr.msk.f32.gmra.mrb[6].mxu0 %vm276_vm1, %v17385_v4  ;;  %v12101_v4 = vld [vmem:[%s16071_s27 + $0xe8] sm:$0xff] }
 0x1f1   : > { %14307 = vmatprep.mubr.msk.f32.mxu1 %vm276_vm1, %v12098_v36  ;;  %14943 = vmatprep.mubr.msk.f32.mxu0 %vm276_vm1, %v17390_v29  ;;  %v17770_v29 = vld [vmem:[%s16071_s27 + $0xf0] sm:$0xff]  ;;  %v12152_v36 = vld [vmem:[%s16071_s27 + $0xe1] sm:$0xff] }
 0x1f4   : > { %14308 = vmatmul.mubr.msk.f32.vlgmr.msra.gmra.mrb[0].mxu1 %vm276_vm1, %v12099_v30  ;;  %14944 = vmatmul.mubr.msk.f32.gmra.mrb[8].mxu0 %vm276_vm1, %v17402_v16  ;;  %v17781_v16 = vld [vmem:[%s16071_s27 + $0xf8] sm:$0xff]  ;;  %v12882_v30 = vld [vmem:[%s16071_s27 + $0x203] sm:$0xff] }
 0x1f5   : > { %14332 = vmatpush3.msk.msra.mxu1 %vm325_vm0, %v12132_v42  ;;  %14310 = vmatprep.mubr.msk.f32.mxu1 %vm276_vm1, %v12100_v24  ;;  %v12850_v42 = vld [vmem:[%s16071_s27 + $0x2d2] sm:$0xff]  ;;  %v18005_v24 = vld [vmem:[%s16071_s27 + $0x101] sm:$0xff] }
 0x1f6   : > { %14946 = vmatprep.mubr.msk.f32.mxu0 %vm276_vm1, %v17405_v56  ;;  %14357 = vmatprep.subr.msk.mxu1 %vm325_vm0, %v12166_v39  ;;  %v12815_v56 = vld [vmem:[%s16071_s27 + $0x20a] sm:$0xff] }
 0x1f8   : > { %14311 = vmatmul.mubr.msk.f32.gmra.mrb[2].mxu1 %vm276_vm1, %v12101_v4  ;;  %14947 = vmatmul.mubr.msk.f32.gmra.mrb[10].mxu0 %vm276_vm1, %v17416_v20  ;;  %v17795_v20 = vld [vmem:[%s16071_s27 + $0x108] sm:$0xff]  ;;  %v12885_v4 = vld [vmem:[%s16071_s27 + $0x21b] sm:$0xff] }
 0x1f9   : > { %14313 = vmatprep.mubr.msk.f32.mxu1 %vm276_vm1, %v17770_v29  ;;  %14949 = vmatprep.mubr.msk.f32.mxu0 %vm276_vm1, %v12814_v52  ;;  %v18019_v52 = vld [vmem:[%s16071_s27 + $0x111] sm:$0xff] }
 0x1fc   : > { %14314 = vmatmul.mubr.msk.f32.gmra.mrb[4].mxu1 %vm276_vm1, %v17781_v16  ;;  %14950 = vmatmul.mubr.msk.f32.gmra.mrb[12].mxu0 %vm276_vm1, %v12815_v56  ;;  %v18029_v56 = vld [vmem:[%s16071_s27 + $0x119] sm:$0xff] }
 0x1fd   : > { %14316 = vmatprep.mubr.msk.f32.mxu1 %vm276_vm1, %v17785_v8  ;;  %14952 = vmatprep.mubr.msk.f32.mxu0 %vm276_vm1, %v12816_v26  ;;  %v18032_v26 = vld [vmem:[%s16071_s27 + $0x121] sm:$0xff] }
 0x200   : > { %14317 = vmatmul.mubr.msk.f32.gmra.mrb[6].mxu1 %vm276_vm1, %v17795_v20  ;;  %14953 = vmatmul.mubr.msk.f32.gmra.mrb[14].mxu0 %vm276_vm1, %v12817_v47  ;;  %v12956_v47 = vld [vmem:[%s18722_s1 + $0x160] sm:$0x1f] }
 0x201   : > { %14319 = vmatprep.mubr.msk.f32.mxu1 %vm276_vm1, %v17799_v35  ;;  %14957 = vmatprep.mubr.msk.f32.mxu0 %vm276_vm1, %v17440_v57  ;;  %v17825_v57 = vld [vmem:[%s16071_s27 + $0x128] sm:$0xff] }
 0x204   : > { %14320 = vmatmul.mubr.msk.f32.gmra.mrb[8].mxu1 %vm276_vm1, %v17809_v44  ;;  %14958 = vmatmul.mubr.msk.f32.vlgmr.msra.gmra.mrb[0].mxu0 %vm276_vm1, %v17451_v33  ;;  %v17842_v33 = vld [vmem:[%s16071_s27 + $0x138] sm:$0xff] }
 0x205   : > { %14982 = vmatpush3.msk.msra.mxu0 %vm325_vm0, %v12886_v12  ;;  %14322 = vmatprep.mubr.msk.f32.mxu1 %vm276_vm1, %v17812_v10  ;;  %v17940_v12 = vld [vmem:[%s16071_s27 + $0x71] sm:$0xff] }
 0x206   : > { %14960 = vmatprep.mubr.msk.f32.mxu0 %vm276_vm1, %v17455_v61  ;;  %15007 = vmatprep.subr.msk.mxu0 %vm325_vm0, %v12904_v1  ;;  %v17845_v61 = vld [vmem:[%s16071_s27 + $0x140] sm:$0xff] }
 0x208   : > { %14323 = vmatmul.mubr.msk.f32.gmra.mrb[10].mxu1 %vm276_vm1, %v17825_v57  ;;  %14961 = vmatmul.mubr.msk.f32.gmra.mrb[2].mxu0 %vm276_vm1, %v17465_v37  ;;  %v17856_v37 = vld [vmem:[%s16071_s27 + $0x148] sm:$0xff] }
 0x209   : > { %14325 = vmatprep.mubr.msk.f32.mxu1 %vm276_vm1, %v17830_v23  ;;  %14963 = vmatprep.mubr.msk.f32.mxu0 %vm276_vm1, %v17469_v62  ;;  %v3892_v62 = vld [vmem:[%s16071_s27 + $0x11] sm:$0xff] }
 0x20c   : > { %14326 = vmatmul.mubr.msk.f32.gmra.mrb[12].mxu1 %vm276_vm1, %v17842_v33  ;;  %14964 = vmatmul.mubr.msk.f32.gmra.mrb[4].mxu0 %vm276_vm1, %v17479_v19  ;;  %v3893_v19 = vld [vmem:[%s16071_s27 + $0x19] sm:$0xff] }
 0x20d   : > { %14328 = vmatprep.mubr.msk.f32.mxu1 %vm276_vm1, %v17845_v61  ;;  %14966 = vmatprep.mubr.msk.f32.mxu0 %vm276_vm1, %v17482_v0  ;;  %v12184_v0 = vld [vmem:[%s18722_s1 + $0x90] sm:$0x1f] }
 0x210   : > { %14329 = vmatmul.mubr.msk.f32.gmra.mrb[14].mxu1 %vm276_vm1, %v17856_v37  ;;  %14967 = vmatmul.mubr.msk.f32.gmra.mrb[6].mxu0 %vm276_vm1, %v17495_v41  ;;  %v3895_v41 = vld [vmem:[%s16071_s27 + $0x29] sm:$0xff] }
 0x211   : > { %14333 = vmatprep.mubr.msk.f32.mxu1 %vm276_vm1, %v3892_v62  ;;  %14969 = vmatprep.mubr.msk.f32.mxu0 %vm276_vm1, %v17500_v45  ;;  %v17880_v45 = vld [vmem:[%s16071_s27 + $0x31] sm:$0xff]  ;;  %v4354_v62 = vld [vmem:[%s16071_s27 + $0x22] sm:$0xff] }
 0x214   : > { %14334 = vmatmul.mubr.msk.f32.vlgmr.msra.gmra.mrb[0].mxu1 %vm276_vm1, %v3893_v19  ;;  %14970 = vmatmul.mubr.msk.f32.gmra.mrb[8].mxu0 %vm276_vm1, %v17512_v27  ;;  %v17891_v27 = vld [vmem:[%s16071_s27 + $0x39] sm:$0xff]  ;;  %v9884_v19 = vld [vmem:[%s16071_s27 + $0x90] sm:$0xff] }
 0x215   : > { %14358 = vmatpush3.msk.msra.mxu1 %vm325_vm0, %v12166_v39  ;;  %14336 = vmatprep.mubr.msk.f32.mxu1 %vm276_vm1, %v3894_v40  ;;  %v12884_v39 = vld [vmem:[%s16071_s27 + $0x213] sm:$0xff]  ;;  %v18115_v40 = vld [vmem:[%s16071_s27 + $0x42] sm:$0xff] }
 0x216   : > { %14972 = vmatprep.mubr.msk.f32.mxu0 %vm276_vm1, %v17515_v22  ;;  %14383 = vmatprep.subr.msk.mxu1 %vm325_vm0, %v12184_v0  ;;  %v12849_v22 = vld [vmem:[%s16071_s27 + $0x2ca] sm:$0xff] }
 0x218   : > { %14337 = vmatmul.mubr.msk.f32.gmra.mrb[2].mxu1 %vm276_vm1, %v3895_v41  ;;  %14973 = vmatmul.mubr.msk.f32.gmra.mrb[10].mxu0 %vm276_vm1, %v17526_v34  ;;  %v17905_v34 = vld [vmem:[%s16071_s27 + $0x49] sm:$0xff] }
 0x219   : > { %14339 = vmatprep.mubr.msk.f32.mxu1 %vm276_vm1, %v17880_v45  ;;  %14975 = vmatprep.mubr.msk.f32.mxu0 %vm276_vm1, %v12848_v18  ;;  %v9887_v41 = vld [vmem:[%s16071_s27 + $0xa8] sm:$0xff]  ;;  %v18129_v18 = vld [vmem:[%s16071_s27 + $0x52] sm:$0xff] }
 0x21c   : > { %14340 = vmatmul.mubr.msk.f32.gmra.mrb[4].mxu1 %vm276_vm1, %v17891_v27  ;;  %14976 = vmatmul.mubr.msk.f32.gmra.mrb[12].mxu0 %vm276_vm1, %v12849_v22  ;;  %v18139_v22 = vld [vmem:[%s16071_s27 + $0x5a] sm:$0xff] }
 0x21d   : > { %14342 = vmatprep.mubr.msk.f32.mxu1 %vm276_vm1, %v17895_v58  ;;  %14978 = vmatprep.mubr.msk.f32.mxu0 %vm276_vm1, %v12850_v42  ;;  %v18142_v42 = vld [vmem:[%s16071_s27 + $0x62] sm:$0xff] }
 0x220   : > { %14343 = vmatmul.mubr.msk.f32.gmra.mrb[6].mxu1 %vm276_vm1, %v17905_v34  ;;  %14979 = vmatmul.mubr.msk.f32.gmra.mrb[14].mxu0 %vm276_vm1, %v12851_v43  ;;  %v12990_v43 = vld [vmem:[%s18722_s1 + $0x168] sm:$0x1f] }
 0x221   : > { %14345 = vmatprep.mubr.msk.f32.mxu1 %vm276_vm1, %v17909_v55  ;;  %14983 = vmatprep.mubr.msk.f32.mxu0 %vm276_vm1, %v17550_v11  ;;  %v17935_v11 = vld [vmem:[%s16071_s27 + $0x69] sm:$0xff] }
 0x224   : > { %14346 = vmatmul.mubr.msk.f32.gmra.mrb[8].mxu1 %vm276_vm1, %v17919_v6  ;;  %14984 = vmatmul.mubr.msk.f32.vlgmr.msra.gmra.mrb[0].mxu0 %vm276_vm1, %v17561_v51  ;;  %v17952_v51 = vld [vmem:[%s16071_s27 + $0x79] sm:$0xff] }
 0x225   : > { %15008 = vmatpush3.msk.msra.mxu0 %vm325_vm0, %v12904_v1  ;;  %14348 = vmatprep.mubr.msk.f32.mxu1 %vm276_vm1, %v17922_v60  ;;  %v18050_v1 = vld [vmem:[%s16071_s27 + $0x131] sm:$0xff] }
 0x226   : > { %14986 = vmatprep.mubr.msk.f32.mxu0 %vm276_vm1, %v17565_v13  ;;  %15033 = vmatprep.subr.msk.mxu0 %vm325_vm0, %v12938_v31  ;;  %v17955_v13 = vld [vmem:[%s16071_s27 + $0x81] sm:$0xff] }
 0x228   : > { %14349 = vmatmul.mubr.msk.f32.gmra.mrb[10].mxu1 %vm276_vm1, %v17935_v11  ;;  %14987 = vmatmul.mubr.msk.f32.gmra.mrb[2].mxu0 %vm276_vm1, %v17575_v59  ;;  %v17966_v59 = vld [vmem:[%s16071_s27 + $0x89] sm:$0xff] }
 0x229   : > { %14351 = vmatprep.mubr.msk.f32.mxu1 %vm276_vm1, %v17940_v12  ;;  %14989 = vmatprep.mubr.msk.f32.mxu0 %vm276_vm1, %v17579_v17  ;;  %v12150_v17 = vld [vmem:[%s16071_s27 + $0xd1] sm:$0xff] }
 0x22c   : > { %14352 = vmatmul.mubr.msk.f32.gmra.mrb[12].mxu1 %vm276_vm1, %v17952_v51  ;;  %14990 = vmatmul.mubr.msk.f32.gmra.mrb[4].mxu0 %vm276_vm1, %v17589_v49  ;;  %v12151_v49 = vld [vmem:[%s16071_s27 + $0xd9] sm:$0xff] }
 0x22d   : > { %14354 = vmatprep.mubr.msk.f32.mxu1 %vm276_vm1, %v17955_v13  ;;  %14992 = vmatprep.mubr.msk.f32.mxu0 %vm276_vm1, %v17592_v21  ;;  %v12218_v21 = vld [vmem:[%s18722_s1 + $0x98] sm:$0x1f] }
 0x230   : > { %14355 = vmatmul.mubr.msk.f32.gmra.mrb[14].mxu1 %vm276_vm1, %v17966_v59  ;;  %14993 = vmatmul.mubr.msk.f32.gmra.mrb[6].mxu0 %vm276_vm1, %v17605_v2  ;;  %v12153_v2 = vld [vmem:[%s16071_s27 + $0xe9] sm:$0xff] }
 0x231   : > { %14359 = vmatprep.mubr.msk.f32.mxu1 %vm276_vm1, %v12150_v17  ;;  %14995 = vmatprep.mubr.msk.f32.mxu0 %vm276_vm1, %v17610_v48  ;;  %v17990_v48 = vld [vmem:[%s16071_s27 + $0xf1] sm:$0xff]  ;;  %v12204_v17 = vld [vmem:[%s16071_s27 + $0xe2] sm:$0xff] }
 0x234   : > { %14360 = vmatmul.mubr.msk.f32.vlgmr.msra.gmra.mrb[0].mxu1 %vm276_vm1, %v12151_v49  ;;  %14996 = vmatmul.mubr.msk.f32.gmra.mrb[8].mxu0 %vm276_vm1, %v17622_v15  ;;  %v18001_v15 = vld [vmem:[%s16071_s27 + $0xf9] sm:$0xff]  ;;  %v12934_v49 = vld [vmem:[%s16071_s27 + $0x150] sm:$0xff] }
 0x235   : > { %14384 = vmatpush3.msk.msra.mxu1 %vm325_vm0, %v12184_v0  ;;  %14362 = vmatprep.mubr.msk.f32.mxu1 %vm276_vm1, %v12152_v36  ;;  %v9886_v0 = vld [vmem:[%s16071_s27 + $0xa0] sm:$0xff] }
 0x236   : > { %14998 = vmatprep.mubr.msk.f32.mxu0 %vm276_vm1, %v17625_v38  ;;  %14409 = vmatprep.subr.msk.mxu1 %vm325_vm0, %v12218_v21  ;;  %v12883_v38 = vld [vmem:[%s16071_s27 + $0x20b] sm:$0xff]  ;;  %v18225_v36 = vld [vmem:[%s16071_s27 + $0x102] sm:$0xff] }
 0x238   : > { %14363 = vmatmul.mubr.msk.f32.gmra.mrb[2].mxu1 %vm276_vm1, %v12153_v2  ;;  %14999 = vmatmul.mubr.msk.f32.gmra.mrb[10].mxu0 %vm276_vm1, %v17636_v25  ;;  %v18015_v25 = vld [vmem:[%s16071_s27 + $0x109] sm:$0xff] }
 0x239   : > { %14365 = vmatprep.mubr.msk.f32.mxu1 %vm276_vm1, %v17990_v48  ;;  %15001 = vmatprep.mubr.msk.f32.mxu0 %vm276_vm1, %v12882_v30  ;;  %v12937_v2 = vld [vmem:[%s16071_s27 + $0x168] sm:$0xff]  ;;  %v18239_v30 = vld [vmem:[%s16071_s27 + $0x112] sm:$0xff] }
 0x23c   : > { %14366 = vmatmul.mubr.msk.f32.gmra.mrb[4].mxu1 %vm276_vm1, %v18001_v15  ;;  %15002 = vmatmul.mubr.msk.f32.gmra.mrb[12].mxu0 %vm276_vm1, %v12883_v38  ;;  %v18249_v38 = vld [vmem:[%s16071_s27 + $0x11a] sm:$0xff] }
 0x23d   : > { %14368 = vmatprep.mubr.msk.f32.mxu1 %vm276_vm1, %v18005_v24  ;;  %15004 = vmatprep.mubr.msk.f32.mxu0 %vm276_vm1, %v12884_v39  ;;  %v18252_v39 = vld [vmem:[%s16071_s27 + $0x122] sm:$0xff] }
 0x240   : > { %14369 = vmatmul.mubr.msk.f32.gmra.mrb[6].mxu1 %vm276_vm1, %v18015_v25  ;;  %15005 = vmatmul.mubr.msk.f32.gmra.mrb[14].mxu0 %vm276_vm1, %v12885_v4  ;;  %v13008_v4 = vld [vmem:[%s18722_s1 + $0x170] sm:$0x1f] }
 0x241   : > { %14371 = vmatprep.mubr.msk.f32.mxu1 %vm276_vm1, %v18019_v52  ;;  %15009 = vmatprep.mubr.msk.f32.mxu0 %vm276_vm1, %v17660_v63  ;;  %v18045_v63 = vld [vmem:[%s16071_s27 + $0x129] sm:$0xff] }
 0x244   : > { %14372 = vmatmul.mubr.msk.f32.gmra.mrb[8].mxu1 %vm276_vm1, %v18029_v56  ;;  %15010 = vmatmul.mubr.msk.f32.vlgmr.msra.gmra.mrb[0].mxu0 %vm276_vm1, %v17671_v50  ;;  %v18062_v50 = vld [vmem:[%s16071_s27 + $0x139] sm:$0xff] }
 0x245   : > { %15034 = vmatpush3.msk.msra.mxu0 %vm325_vm0, %v12938_v31  ;;  %14374 = vmatprep.mubr.msk.f32.mxu1 %vm276_vm1, %v18032_v26  ;;  %v18160_v31 = vld [vmem:[%s16071_s27 + $0x72] sm:$0xff] }
 0x246   : > { %15012 = vmatprep.mubr.msk.f32.mxu0 %vm276_vm1, %v17675_v46  ;;  %15059 = vmatprep.subr.msk.mxu0 %vm325_vm0, %v12956_v47  ;;  %v18065_v46 = vld [vmem:[%s16071_s27 + $0x141] sm:$0xff] }
 0x248   : > { %14375 = vmatmul.mubr.msk.f32.gmra.mrb[10].mxu1 %vm276_vm1, %v18045_v63  ;;  %15013 = vmatmul.mubr.msk.f32.gmra.mrb[2].mxu0 %vm276_vm1, %v17685_v54  ;;  %v18076_v54 = vld [vmem:[%s16071_s27 + $0x149] sm:$0xff] }
 0x249   : > { %14377 = vmatprep.mubr.msk.f32.mxu1 %vm276_vm1, %v18050_v1  ;;  %15015 = vmatprep.mubr.msk.f32.mxu0 %vm276_vm1, %v17689_v5  ;;  %v4352_v5 = vld [vmem:[%s16071_s27 + $0x12] sm:$0xff] }
 0x24c   : > { %14378 = vmatmul.mubr.msk.f32.gmra.mrb[12].mxu1 %vm276_vm1, %v18062_v50  ;;  %15016 = vmatmul.mubr.msk.f32.gmra.mrb[4].mxu0 %vm276_vm1, %v17699_v9  ;;  %v4353_v9 = vld [vmem:[%s16071_s27 + $0x1a] sm:$0xff] }
 0x24d   : > { %14380 = vmatprep.mubr.msk.f32.mxu1 %vm276_vm1, %v18065_v46  ;;  %15018 = vmatprep.mubr.msk.f32.mxu0 %vm276_vm1, %v17702_v53  ;;  %v12236_v53 = vld [vmem:[%s18722_s1 + $0xa0] sm:$0x1f] }
 0x250   : > { %14381 = vmatmul.mubr.msk.f32.gmra.mrb[14].mxu1 %vm276_vm1, %v18076_v54  ;;  %15019 = vmatmul.mubr.msk.f32.gmra.mrb[6].mxu0 %vm276_vm1, %v17715_v28  ;;  %v4355_v28 = vld [vmem:[%s16071_s27 + $0x2a] sm:$0xff] }
 0x251   : > { %14385 = vmatprep.mubr.msk.f32.mxu1 %vm276_vm1, %v4352_v5  ;;  %15021 = vmatprep.mubr.msk.f32.mxu0 %vm276_vm1, %v17720_v14  ;;  %v18100_v14 = vld [vmem:[%s16071_s27 + $0x32] sm:$0xff]  ;;  %v4814_v5 = vld [vmem:[%s16071_s27 + $0x23] sm:$0xff] }
 0x254   : > { %14386 = vmatmul.mubr.msk.f32.vlgmr.msra.gmra.mrb[0].mxu1 %vm276_vm1, %v4353_v9  ;;  %15022 = vmatmul.mubr.msk.f32.gmra.mrb[8].mxu0 %vm276_vm1, %v17732_v3  ;;  %v18111_v3 = vld [vmem:[%s16071_s27 + $0x3a] sm:$0xff]  ;;  %v10344_v9 = vld [vmem:[%s16071_s27 + $0x91] sm:$0xff] }
 0x255   : > { %14410 = vmatpush3.msk.msra.mxu1 %vm325_vm0, %v12218_v21  ;;  %14388 = vmatprep.mubr.msk.f32.mxu1 %vm276_vm1, %v4354_v62  ;;  %v12936_v21 = vld [vmem:[%s16071_s27 + $0x160] sm:$0xff] }
 0x256   : > { %15024 = vmatprep.mubr.msk.f32.mxu0 %vm276_vm1, %v17735_v32  ;;  %14435 = vmatprep.subr.msk.mxu1 %vm325_vm0, %v12236_v53  ;;  %v9885_v32 = vld [vmem:[%s16071_s27 + $0x98] sm:$0xff]  ;;  %v18335_v62 = vld [vmem:[%s16071_s27 + $0x43] sm:$0xff] }
 0x258   : > { %14389 = vmatmul.mubr.msk.f32.gmra.mrb[2].mxu1 %vm276_vm1, %v4355_v28  ;;  %15025 = vmatmul.mubr.msk.f32.gmra.mrb[10].mxu0 %vm276_vm1, %v17746_v7  ;;  %v18125_v7 = vld [vmem:[%s16071_s27 + $0x4a] sm:$0xff] }
 0x259   : > { %14391 = vmatprep.mubr.msk.f32.mxu1 %vm276_vm1, %v18100_v14  ;;  %15027 = vmatprep.mubr.msk.f32.mxu0 %vm276_vm1, %v9884_v19  ;;  %v10347_v28 = vld [vmem:[%s16071_s27 + $0xa9] sm:$0xff]  ;;  %v18349_v19 = vld [vmem:[%s16071_s27 + $0x53] sm:$0xff] }
 0x25c   : > { %14392 = vmatmul.mubr.msk.f32.gmra.mrb[4].mxu1 %vm276_vm1, %v18111_v3  ;;  %15028 = vmatmul.mubr.msk.f32.gmra.mrb[12].mxu0 %vm276_vm1, %v9885_v32  ;;  %v18359_v32 = vld [vmem:[%s16071_s27 + $0x5b] sm:$0xff] }
 0x25d   : > { %14394 = vmatprep.mubr.msk.f32.mxu1 %vm276_vm1, %v18115_v40  ;;  %15030 = vmatprep.mubr.msk.f32.mxu0 %vm276_vm1, %v9886_v0  ;;  %v18362_v0 = vld [vmem:[%s16071_s27 + $0x63] sm:$0xff] }
 0x260   : > { %14395 = vmatmul.mubr.msk.f32.gmra.mrb[6].mxu1 %vm276_vm1, %v18125_v7  ;;  %15031 = vmatmul.mubr.msk.f32.gmra.mrb[14].mxu0 %vm276_vm1, %v9887_v41  ;;  %v13042_v41 = vld [vmem:[%s18722_s1 + $0x178] sm:$0x1f] }
 0x261   : > { %14397 = vmatprep.mubr.msk.f32.mxu1 %vm276_vm1, %v18129_v18  ;;  %15035 = vmatprep.mubr.msk.f32.mxu0 %vm276_vm1, %v17770_v29  ;;  %v18155_v29 = vld [vmem:[%s16071_s27 + $0x6a] sm:$0xff] }
 0x264   : > { %14398 = vmatmul.mubr.msk.f32.gmra.mrb[8].mxu1 %vm276_vm1, %v18139_v22  ;;  %15036 = vmatmul.mubr.msk.f32.vlgmr.msra.gmra.mrb[0].mxu0 %vm276_vm1, %v17781_v16  ;;  %v18172_v16 = vld [vmem:[%s16071_s27 + $0x7a] sm:$0xff] }
 0x265   : > { %15060 = vmatpush3.msk.msra.mxu0 %vm325_vm0, %v12956_v47  ;;  %14400 = vmatprep.mubr.msk.f32.mxu1 %vm276_vm1, %v18142_v42  ;;  %v18270_v47 = vld [vmem:[%s16071_s27 + $0x132] sm:$0xff] }
 0x266   : > { %15038 = vmatprep.mubr.msk.f32.mxu0 %vm276_vm1, %v17785_v8  ;;  %15085 = vmatprep.subr.msk.mxu0 %vm325_vm0, %v12990_v43  ;;  %v18175_v8 = vld [vmem:[%s16071_s27 + $0x82] sm:$0xff] }
 0x268   : > { %14401 = vmatmul.mubr.msk.f32.gmra.mrb[10].mxu1 %vm276_vm1, %v18155_v29  ;;  %15039 = vmatmul.mubr.msk.f32.gmra.mrb[2].mxu0 %vm276_vm1, %v17795_v20  ;;  %v18186_v20 = vld [vmem:[%s16071_s27 + $0x8a] sm:$0xff] }
 0x269   : > { %14403 = vmatprep.mubr.msk.f32.mxu1 %vm276_vm1, %v18160_v31  ;;  %15041 = vmatprep.mubr.msk.f32.mxu0 %vm276_vm1, %v17799_v35  ;;  %v12202_v35 = vld [vmem:[%s16071_s27 + $0xd2] sm:$0xff] }
 0x26c   : > { %14404 = vmatmul.mubr.msk.f32.gmra.mrb[12].mxu1 %vm276_vm1, %v18172_v16  ;;  %15042 = vmatmul.mubr.msk.f32.gmra.mrb[4].mxu0 %vm276_vm1, %v17809_v44  ;;  %v12203_v44 = vld [vmem:[%s16071_s27 + $0xda] sm:$0xff] }
 0x26d   : > { %14406 = vmatprep.mubr.msk.f32.mxu1 %vm276_vm1, %v18175_v8  ;;  %15044 = vmatprep.mubr.msk.f32.mxu0 %vm276_vm1, %v17812_v10  ;;  %v12270_v10 = vld [vmem:[%s18722_s1 + $0xa8] sm:$0x1f] }
 0x270   : > { %14407 = vmatmul.mubr.msk.f32.gmra.mrb[14].mxu1 %vm276_vm1, %v18186_v20  ;;  %15045 = vmatmul.mubr.msk.f32.gmra.mrb[6].mxu0 %vm276_vm1, %v17825_v57  ;;  %v12205_v57 = vld [vmem:[%s16071_s27 + $0xea] sm:$0xff] }
 0x271   : > { %14411 = vmatprep.mubr.msk.f32.mxu1 %vm276_vm1, %v12202_v35  ;;  %15047 = vmatprep.mubr.msk.f32.mxu0 %vm276_vm1, %v17830_v23  ;;  %v18210_v23 = vld [vmem:[%s16071_s27 + $0xf2] sm:$0xff]  ;;  %v12256_v35 = vld [vmem:[%s16071_s27 + $0x1a0] sm:$0xff] }
 0x274   : > { %14412 = vmatmul.mubr.msk.f32.vlgmr.msra.gmra.mrb[0].mxu1 %vm276_vm1, %v12203_v44  ;;  %15048 = vmatmul.mubr.msk.f32.gmra.mrb[8].mxu0 %vm276_vm1, %v17842_v33  ;;  %v18221_v33 = vld [vmem:[%s16071_s27 + $0xfa] sm:$0xff]  ;;  %v12986_v44 = vld [vmem:[%s16071_s27 + $0x151] sm:$0xff] }
 0x275   : > { %14436 = vmatpush3.msk.msra.mxu1 %vm325_vm0, %v12236_v53  ;;  %14414 = vmatprep.mubr.msk.f32.mxu1 %vm276_vm1, %v12204_v17  ;;  %v10346_v53 = vld [vmem:[%s16071_s27 + $0xa1] sm:$0xff] }
 0x276   : > { %15050 = vmatprep.mubr.msk.f32.mxu0 %vm276_vm1, %v17845_v61  ;;  %14461 = vmatprep.subr.msk.mxu1 %vm325_vm0, %v12270_v10  ;;  %v12935_v61 = vld [vmem:[%s16071_s27 + $0x158] sm:$0xff]  ;;  %v12260_v17 = vld [vmem:[%s16071_s27 + $0x1c0] sm:$0xff] }
 0x278   : > { %14415 = vmatmul.mubr.msk.f32.gmra.mrb[2].mxu1 %vm276_vm1, %v12205_v57  ;;  %15051 = vmatmul.mubr.msk.f32.gmra.mrb[10].mxu0 %vm276_vm1, %v17856_v37  ;;  %v18235_v37 = vld [vmem:[%s16071_s27 + $0x10a] sm:$0xff] }
 0x279   : > { %14417 = vmatprep.mubr.msk.f32.mxu1 %vm276_vm1, %v18210_v23  ;;  %15053 = vmatprep.mubr.msk.f32.mxu0 %vm276_vm1, %v12934_v49  ;;  %v12989_v57 = vld [vmem:[%s16071_s27 + $0x169] sm:$0xff] }
 0x27a   : > { %v12262_v49 = vld [vmem:[%s16071_s27 + $0x1d0] sm:$0xff] }
 0x27c   : > { %14418 = vmatmul.mubr.msk.f32.gmra.mrb[4].mxu1 %vm276_vm1, %v18221_v33  ;;  %15054 = vmatmul.mubr.msk.f32.gmra.mrb[12].mxu0 %vm276_vm1, %v12935_v61  ;;  %v12263_v61 = vld [vmem:[%s16071_s27 + $0x1d8] sm:$0xff] }
 0x27d   : > { %14420 = vmatprep.mubr.msk.f32.mxu1 %vm276_vm1, %v18225_v36  ;;  %15056 = vmatprep.mubr.msk.f32.mxu0 %vm276_vm1, %v12936_v21  ;;  %v12264_v21 = vld [vmem:[%s16071_s27 + $0x1e0] sm:$0xff] }
 0x280   : > { %14421 = vmatmul.mubr.msk.f32.gmra.mrb[6].mxu1 %vm276_vm1, %v18235_v37  ;;  %15057 = vmatmul.mubr.msk.f32.gmra.mrb[14].mxu0 %vm276_vm1, %v12937_v2  ;;  %v13060_v2 = vld [vmem:[%s18722_s1 + $0x180] sm:$0x1f] }
 0x281   : > { %14423 = vmatprep.mubr.msk.f32.mxu1 %vm276_vm1, %v18239_v30  ;;  %15061 = vmatprep.mubr.msk.f32.mxu0 %vm276_vm1, %v17880_v45  ;;  %v18265_v45 = vld [vmem:[%s16071_s27 + $0x12a] sm:$0xff] }
 0x284   : > { %14424 = vmatmul.mubr.msk.f32.gmra.mrb[8].mxu1 %vm276_vm1, %v18249_v38  ;;  %15062 = vmatmul.mubr.msk.f32.vlgmr.msra.gmra.mrb[0].mxu0 %vm276_vm1, %v17891_v27  ;;  %v18282_v27 = vld [vmem:[%s16071_s27 + $0x13a] sm:$0xff] }
 0x285   : > { %15086 = vmatpush3.msk.msra.mxu0 %vm325_vm0, %v12990_v43  ;;  %14426 = vmatprep.mubr.msk.f32.mxu1 %vm276_vm1, %v18252_v39  ;;  %v18380_v43 = vld [vmem:[%s16071_s27 + $0x73] sm:$0xff] }
 0x286   : > { %15064 = vmatprep.mubr.msk.f32.mxu0 %vm276_vm1, %v17895_v58  ;;  %15111 = vmatprep.subr.msk.mxu0 %vm325_vm0, %v13008_v4  ;;  %v18285_v58 = vld [vmem:[%s16071_s27 + $0x142] sm:$0xff] }
 0x288   : > { %14427 = vmatmul.mubr.msk.f32.gmra.mrb[10].mxu1 %vm276_vm1, %v18265_v45  ;;  %15065 = vmatmul.mubr.msk.f32.gmra.mrb[2].mxu0 %vm276_vm1, %v17905_v34  ;;  %v18296_v34 = vld [vmem:[%s16071_s27 + $0x14a] sm:$0xff] }
 0x289   : > { %14429 = vmatprep.mubr.msk.f32.mxu1 %vm276_vm1, %v18270_v47  ;;  %15067 = vmatprep.mubr.msk.f32.mxu0 %vm276_vm1, %v17909_v55  ;;  %v4812_v55 = vld [vmem:[%s16071_s27 + $0x13] sm:$0xff] }
 0x28c   : > { %14430 = vmatmul.mubr.msk.f32.gmra.mrb[12].mxu1 %vm276_vm1, %v18282_v27  ;;  %15068 = vmatmul.mubr.msk.f32.gmra.mrb[4].mxu0 %vm276_vm1, %v17919_v6  ;;  %v4813_v6 = vld [vmem:[%s16071_s27 + $0x1b] sm:$0xff] }
 0x28d   : > { %14432 = vmatprep.mubr.msk.f32.mxu1 %vm276_vm1, %v18285_v58  ;;  %15070 = vmatprep.mubr.msk.f32.mxu0 %vm276_vm1, %v17922_v60  ;;  %v12304_v60 = vld [vmem:[%s18722_s1 + $0xb0] sm:$0x1f] }
 0x290   : > { %14433 = vmatmul.mubr.msk.f32.gmra.mrb[14].mxu1 %vm276_vm1, %v18296_v34  ;;  %15071 = vmatmul.mubr.msk.f32.gmra.mrb[6].mxu0 %vm276_vm1, %v17935_v11  ;;  %v4815_v11 = vld [vmem:[%s16071_s27 + $0x2b] sm:$0xff] }
 0x291   : > { %14437 = vmatprep.mubr.msk.f32.mxu1 %vm276_vm1, %v4812_v55  ;;  %15073 = vmatprep.mubr.msk.f32.mxu0 %vm276_vm1, %v17940_v12  ;;  %v18320_v12 = vld [vmem:[%s16071_s27 + $0x33] sm:$0xff]  ;;  %v12268_v55 = vld [vmem:[%s16071_s27 + $0x200] sm:$0xff] }
 0x294   : > { %14438 = vmatmul.mubr.msk.f32.vlgmr.msra.gmra.mrb[0].mxu1 %vm276_vm1, %v4813_v6  ;;  %15074 = vmatmul.mubr.msk.f32.gmra.mrb[8].mxu0 %vm276_vm1, %v17952_v51  ;;  %v18331_v51 = vld [vmem:[%s16071_s27 + $0x3b] sm:$0xff] }
 0x295   : > { %14462 = vmatpush3.msk.msra.mxu1 %vm325_vm0, %v12270_v10  ;;  %14440 = vmatprep.mubr.msk.f32.mxu1 %vm276_vm1, %v4814_v5  ;;  %v12988_v10 = vld [vmem:[%s16071_s27 + $0x161] sm:$0xff] }
 0x296   : > { %15076 = vmatprep.mubr.msk.f32.mxu0 %vm276_vm1, %v17955_v13  ;;  %14487 = vmatprep.subr.msk.mxu1 %vm325_vm0, %v12304_v60  ;;  %v10345_v13 = vld [vmem:[%s16071_s27 + $0x99] sm:$0xff] }
 0x297   : > { %v15984_v6 = vld [vmem:[%s18722_s1 + $0xc0] sm:$0x1f] }
 0x298   : > { %14441 = vmatmul.mubr.msk.f32.gmra.mrb[2].mxu1 %vm276_vm1, %v4815_v11  ;;  %15077 = vmatmul.mubr.msk.f32.gmra.mrb[10].mxu0 %vm276_vm1, %v17966_v59  ;;  %v18345_v59 = vld [vmem:[%s16071_s27 + $0x4b] sm:$0xff]  ;;  %v12294_v5 = vld [vmem:[%s16071_s27 + $0x280] sm:$0xff] }
 0x299   : > { %14443 = vmatprep.mubr.msk.f32.mxu1 %vm276_vm1, %v18320_v12  ;;  %15079 = vmatprep.mubr.msk.f32.mxu0 %vm276_vm1, %v10344_v9  ;;  %v10807_v11 = vld [vmem:[%s16071_s27 + $0xaa] sm:$0xff] }
 0x29a   : > { %v12296_v9 = vld [vmem:[%s16071_s27 + $0x290] sm:$0xff] }
 0x29c   : > { %14444 = vmatmul.mubr.msk.f32.gmra.mrb[4].mxu1 %vm276_vm1, %v18331_v51  ;;  %15080 = vmatmul.mubr.msk.f32.gmra.mrb[12].mxu0 %vm276_vm1, %v10345_v13  ;;  %v12297_v13 = vld [vmem:[%s16071_s27 + $0x298] sm:$0xff] }
 0x29d   : > { %14446 = vmatprep.mubr.msk.f32.mxu1 %vm276_vm1, %v18335_v62  ;;  %15082 = vmatprep.mubr.msk.f32.mxu0 %vm276_vm1, %v10346_v53  ;;  %v12298_v53 = vld [vmem:[%s16071_s27 + $0x2a0] sm:$0xff] }
 0x2a0   : > { %14447 = vmatmul.mubr.msk.f32.gmra.mrb[6].mxu1 %vm276_vm1, %v18345_v59  ;;  %15083 = vmatmul.mubr.msk.f32.gmra.mrb[14].mxu0 %vm276_vm1, %v10347_v28  ;;  %v12299_v28 = vld [vmem:[%s16071_s27 + $0x2a8] sm:$0xff] }
 0x2a1   : > { %14449 = vmatprep.mubr.msk.f32.mxu1 %vm276_vm1, %v18349_v19  ;;  %15087 = vmatprep.mubr.msk.f32.mxu0 %vm276_vm1, %v17990_v48  ;;  %v18375_v48 = vld [vmem:[%s16071_s27 + $0x6b] sm:$0xff] }
 0x2a4   : > { %14450 = vmatmul.mubr.msk.f32.gmra.mrb[8].mxu1 %vm276_vm1, %v18359_v32  ;;  %15088 = vmatmul.mubr.msk.f32.vlgmr.msra.gmra.mrb[0].mxu0 %vm276_vm1, %v18001_v15  ;;  %v18392_v15 = vld [vmem:[%s16071_s27 + $0x7b] sm:$0xff] }
 0x2a5   : > { %15112 = vmatpush3.msk.msra.mxu0 %vm325_vm0, %v13008_v4  ;;  %14452 = vmatprep.mubr.msk.f32.mxu1 %vm276_vm1, %v18362_v0  ;;  %v12266_v4 = vld [vmem:[%s16071_s27 + $0x1f0] sm:$0xff] }
 0x2a6   : > { %15090 = vmatprep.mubr.msk.f32.mxu0 %vm276_vm1, %v18005_v24  ;;  %15137 = vmatprep.subr.msk.mxu0 %vm325_vm0, %v13042_v41  ;;  %v18395_v24 = vld [vmem:[%s16071_s27 + $0x83] sm:$0xff] }
 0x2a8   : > { %14453 = vmatmul.mubr.msk.f32.gmra.mrb[10].mxu1 %vm276_vm1, %v18375_v48  ;;  %15091 = vmatmul.mubr.msk.f32.gmra.mrb[2].mxu0 %vm276_vm1, %v18015_v25  ;;  %v18406_v25 = vld [vmem:[%s16071_s27 + $0x8b] sm:$0xff] }
 0x2a9   : > { %14455 = vmatprep.mubr.msk.f32.mxu1 %vm276_vm1, %v18380_v43  ;;  %15093 = vmatprep.mubr.msk.f32.mxu0 %vm276_vm1, %v18019_v52  ;;  %v12254_v52 = vld [vmem:[%s16071_s27 + $0x190] sm:$0xff] }
 0x2ac   : > { %14456 = vmatmul.mubr.msk.f32.gmra.mrb[12].mxu1 %vm276_vm1, %v18392_v15  ;;  %15094 = vmatmul.mubr.msk.f32.gmra.mrb[4].mxu0 %vm276_vm1, %v18029_v56  ;;  %v12255_v56 = vld [vmem:[%s16071_s27 + $0x198] sm:$0xff] }
 0x2ad   : > { %14458 = vmatprep.mubr.msk.f32.mxu1 %vm276_vm1, %v18395_v24  ;;  %15096 = vmatprep.mubr.msk.f32.mxu0 %vm276_vm1, %v18032_v26  ;;  %v12338_v26 = vld [vmem:[%s18722_s1 + $0xb8] sm:$0x1f] }
 0x2b0   : > { %14459 = vmatmul.mubr.msk.f32.gmra.mrb[14].mxu1 %vm276_vm1, %v18406_v25  ;;  %15097 = vmatmul.mubr.msk.f32.gmra.mrb[6].mxu0 %vm276_vm1, %v18045_v63  ;;  %v12257_v63 = vld [vmem:[%s16071_s27 + $0x1a8] sm:$0xff] }
 0x2b1   : > { %14463 = vmatprep.mubr.msk.f32.mxu1 %vm276_vm1, %v12254_v52  ;;  %15099 = vmatprep.mubr.msk.f32.mxu0 %vm276_vm1, %v18050_v1  ;;  %v12258_v1 = vld [vmem:[%s16071_s27 + $0x1b0] sm:$0xff]  ;;  %v13039_v52 = vld [vmem:[%s16071_s27 + $0x15a] sm:$0xff] }
 0x2b4   : > { %14464 = vmatmul.mubr.msk.f32.vlgmr.msra.gmra.mrb[0].mxu1 %vm276_vm1, %v12255_v56  ;;  %15100 = vmatmul.mubr.msk.f32.gmra.mrb[8].mxu0 %vm276_vm1, %v18062_v50  ;;  %v12259_v50 = vld [vmem:[%s16071_s27 + $0x1b8] sm:$0xff]  ;;  %v12328_v56 = vld [vmem:[%s16071_s27 + $0x1c1] sm:$0xff] }
 0x2b5   : > { %14488 = vmatpush3.msk.msra.mxu1 %vm325_vm0, %v12304_v60  ;;  %14466 = vmatprep.mubr.msk.f32.mxu1 %vm276_vm1, %v12256_v35  ;;  %v10806_v60 = vld [vmem:[%s16071_s27 + $0xa2] sm:$0xff] }
 0x2b6   : > { %15102 = vmatprep.mubr.msk.f32.mxu0 %vm276_vm1, %v18065_v46  ;;  %14513 = vmatprep.subr.msk.mxu1 %vm325_vm0, %v12338_v26  ;;  %v12987_v46 = vld [vmem:[%s16071_s27 + $0x159] sm:$0xff]  ;;  %v13040_v35 = vld [vmem:[%s16071_s27 + $0x162] sm:$0xff] }
 0x2b8   : > { %14467 = vmatmul.mubr.msk.f32.gmra.mrb[2].mxu1 %vm276_vm1, %v12257_v63  ;;  %15103 = vmatmul.mubr.msk.f32.gmra.mrb[10].mxu0 %vm276_vm1, %v18076_v54  ;;  %v12261_v54 = vld [vmem:[%s16071_s27 + $0x1c8] sm:$0xff]  ;;  %v12331_v63 = vld [vmem:[%s16071_s27 + $0x1d9] sm:$0xff] }
 0x2b9   : > { %14469 = vmatprep.mubr.msk.f32.mxu1 %vm276_vm1, %v12258_v1  ;;  %15105 = vmatprep.mubr.msk.f32.mxu0 %vm276_vm1, %v12986_v44  ;;  %v12332_v1 = vld [vmem:[%s16071_s27 + $0x1e1] sm:$0xff]  ;;  %v12333_v44 = vld [vmem:[%s16071_s27 + $0x1e9] sm:$0xff] }
 0x2bc   : > { %14470 = vmatmul.mubr.msk.f32.gmra.mrb[4].mxu1 %vm276_vm1, %v12259_v50  ;;  %15106 = vmatmul.mubr.msk.f32.gmra.mrb[12].mxu0 %vm276_vm1, %v12987_v46  ;;  %v12334_v50 = vld [vmem:[%s16071_s27 + $0x1f1] sm:$0xff] }
 0x2bd   : > { %14472 = vmatprep.mubr.msk.f32.mxu1 %vm276_vm1, %v12260_v17  ;;  %15108 = vmatprep.mubr.msk.f32.mxu0 %vm276_vm1, %v12988_v10  ;;  %v11264_v46 = vld [vmem:[%s16071_s27 + $0x93] sm:$0xff]  ;;  %v12370_v17 = vld [vmem:[%s16071_s27 + $0x2c1] sm:$0xff] }
 0x2be   : > { %v11266_v10 = vld [vmem:[%s16071_s27 + $0xa3] sm:$0xff] }
 0x2c0   : > { %14473 = vmatmul.mubr.msk.f32.gmra.mrb[6].mxu1 %vm276_vm1, %v12261_v54  ;;  %15109 = vmatmul.mubr.msk.f32.gmra.mrb[14].mxu0 %vm276_vm1, %v12989_v57  ;;  %v11267_v54 = vld [vmem:[%s16071_s27 + $0xab] sm:$0xff] }
 0x2c1   : > { %14475 = vmatprep.mubr.msk.f32.mxu1 %vm276_vm1, %v12262_v49  ;;  %15113 = vmatprep.mubr.msk.f32.mxu0 %vm276_vm1, %v18100_v14  ;;  %v12265_v14 = vld [vmem:[%s16071_s27 + $0x1e8] sm:$0xff] }
 0x2c4   : > { %14476 = vmatmul.mubr.msk.f32.gmra.mrb[8].mxu1 %vm276_vm1, %v12263_v61  ;;  %15114 = vmatmul.mubr.msk.f32.vlgmr.msra.gmra.mrb[0].mxu0 %vm276_vm1, %v18111_v3  ;;  %v12267_v3 = vld [vmem:[%s16071_s27 + $0x1f8] sm:$0xff] }
 0x2c5   : > { %15138 = vmatpush3.msk.msra.mxu0 %vm325_vm0, %v13042_v41  ;;  %14478 = vmatprep.mubr.msk.f32.mxu1 %vm276_vm1, %v12264_v21  ;;  %v12300_v41 = vld [vmem:[%s16071_s27 + $0x2b0] sm:$0xff] }
 0x2c6   : > { %15116 = vmatprep.mubr.msk.f32.mxu0 %vm276_vm1, %v18115_v40  ;;  %15163 = vmatprep.subr.msk.mxu0 %vm325_vm0, %v13060_v2  ;;  %v12269_v40 = vld [vmem:[%s16071_s27 + $0x208] sm:$0xff] }
 0x2c8   : > { %14479 = vmatmul.mubr.msk.f32.gmra.mrb[10].mxu1 %vm276_vm1, %v12265_v14  ;;  %15117 = vmatmul.mubr.msk.f32.gmra.mrb[2].mxu0 %vm276_vm1, %v18125_v7  ;;  %v12288_v7 = vld [vmem:[%s16071_s27 + $0x250] sm:$0xff] }
 0x2c9   : > { %14481 = vmatprep.mubr.msk.f32.mxu1 %vm276_vm1, %v12266_v4  ;;  %15119 = vmatprep.mubr.msk.f32.mxu0 %vm276_vm1, %v18129_v18  ;;  %v12289_v18 = vld [vmem:[%s16071_s27 + $0x258] sm:$0xff] }
 0x2cc   : > { %14482 = vmatmul.mubr.msk.f32.gmra.mrb[12].mxu1 %vm276_vm1, %v12267_v3  ;;  %15120 = vmatmul.mubr.msk.f32.gmra.mrb[4].mxu0 %vm276_vm1, %v18139_v22  ;;  %v12290_v22 = vld [vmem:[%s16071_s27 + $0x260] sm:$0xff] }
 0x2cd   : > { %14484 = vmatprep.mubr.msk.f32.mxu1 %vm276_vm1, %v12268_v55  ;;  %15122 = vmatprep.mubr.msk.f32.mxu0 %vm276_vm1, %v18142_v42  ;;  %v12291_v42 = vld [vmem:[%s16071_s27 + $0x268] sm:$0xff]  ;;  %v18656_v55 = vld [vmem:[%s18723_s2] ss:$0 sm:$0xff] }
 0x2d0   : > { %14485 = vmatmul.mubr.msk.f32.gmra.mrb[14].mxu1 %vm276_vm1, %v12269_v40  ;;  %15123 = vmatmul.mubr.msk.f32.gmra.mrb[6].mxu0 %vm276_vm1, %v18155_v29  ;;  %v12292_v29 = vld [vmem:[%s16071_s27 + $0x270] sm:$0xff] }
 0x2d1   : > { %14489 = vmatprep.mubr.msk.f32.mxu1 %vm276_vm1, %v12288_v7  ;;  %15125 = vmatprep.mubr.msk.f32.mxu0 %vm276_vm1, %v18160_v31  ;;  %v10804_v31 = vld [vmem:[%s16071_s27 + $0x92] sm:$0xff] }
 0x2d4   : > { %14490 = vmatmul.mubr.msk.f32.vlgmr.msra.gmra.mrb[0].mxu1 %vm276_vm1, %v12289_v18  ;;  %15126 = vmatmul.mubr.msk.f32.gmra.mrb[8].mxu0 %vm276_vm1, %v18172_v16  ;;  %v12293_v16 = vld [vmem:[%s16071_s27 + $0x278] sm:$0xff] }
 0x2d5   : > { %14514 = vmatpush3.msk.msra.mxu1 %vm325_vm0, %v12338_v26  ;;  %14492 = vmatprep.mubr.msk.f32.mxu1 %vm276_vm1, %v12290_v22  ;;  %v12330_v26 = vld [vmem:[%s16071_s27 + $0x1d1] sm:$0xff] }
 0x2d6   : > { %15128 = vmatprep.mubr.msk.f32.mxu0 %vm276_vm1, %v18175_v8  ;;  %15189 = vmatprep.subr.msk.mxu1 %vm325_vm0, %v15984_v6  ;;  %v10805_v8 = vld [vmem:[%s16071_s27 + $0x9a] sm:$0xff] }
 0x2d8   : > { %14493 = vmatmul.mubr.msk.f32.gmra.mrb[2].mxu1 %vm276_vm1, %v12291_v42  ;;  %15129 = vmatmul.mubr.msk.f32.gmra.mrb[10].mxu0 %vm276_vm1, %v18186_v20  ;;  %v12295_v20 = vld [vmem:[%s16071_s27 + $0x288] sm:$0xff] }
 0x2d9   : > { %14495 = vmatprep.mubr.msk.f32.mxu1 %vm276_vm1, %v12292_v29  ;;  %15131 = vmatprep.mubr.msk.f32.mxu0 %vm276_vm1, %v10804_v31 }
 0x2dc   : > { %14496 = vmatmul.mubr.msk.f32.gmra.mrb[4].mxu1 %vm276_vm1, %v12293_v16  ;;  %15132 = vmatmul.mubr.msk.f32.gmra.mrb[12].mxu0 %vm276_vm1, %v10805_v8 }
 0x2dd   : > { %14498 = vmatprep.mubr.msk.f32.mxu1 %vm276_vm1, %v12294_v5  ;;  %15134 = vmatprep.mubr.msk.f32.mxu0 %vm276_vm1, %v10806_v60 }
 0x2e0   : > { %14499 = vmatmul.mubr.msk.f32.gmra.mrb[6].mxu1 %vm276_vm1, %v12295_v20  ;;  %15135 = vmatmul.mubr.msk.f32.gmra.mrb[14].mxu0 %vm276_vm1, %v10807_v11 }
 0x2e1   : > { %14501 = vmatprep.mubr.msk.f32.mxu1 %vm276_vm1, %v12296_v9  ;;  %15139 = vmatprep.mubr.msk.f32.mxu0 %vm276_vm1, %v18210_v23  ;;  %v12301_v23 = vld [vmem:[%s16071_s27 + $0x2b8] sm:$0xff] }
 0x2e4   : > { %14502 = vmatmul.mubr.msk.f32.gmra.mrb[8].mxu1 %vm276_vm1, %v12297_v13  ;;  %15140 = vmatmul.mubr.msk.f32.vlgmr.msra.gmra.mrb[0].mxu0 %vm276_vm1, %v18221_v33  ;;  %v12302_v33 = vld [vmem:[%s16071_s27 + $0x2c0] sm:$0xff] }
 0x2e5   : > { %15164 = vmatpush3.msk.msra.mxu0 %vm325_vm0, %v13060_v2  ;;  %14504 = vmatprep.mubr.msk.f32.mxu1 %vm276_vm1, %v12298_v53 }
 0x2e6   : > { %15142 = vmatprep.mubr.msk.f32.mxu0 %vm276_vm1, %v18225_v36  ;;  %v12303_v36 = vld [vmem:[%s16071_s27 + $0x2c8] sm:$0xff] }
 0x2e8   : > { %14505 = vmatmul.mubr.msk.f32.gmra.mrb[10].mxu1 %vm276_vm1, %v12299_v28  ;;  %15143 = vmatmul.mubr.msk.f32.gmra.mrb[2].mxu0 %vm276_vm1, %v18235_v37  ;;  %v12322_v37 = vld [vmem:[%s16071_s27 + $0x191] sm:$0xff] }
 0x2e9   : > { %14507 = vmatprep.mubr.msk.f32.mxu1 %vm276_vm1, %v12300_v41  ;;  %15145 = vmatprep.mubr.msk.f32.mxu0 %vm276_vm1, %v18239_v30  ;;  %v12323_v30 = vld [vmem:[%s16071_s27 + $0x199] sm:$0xff] }
 0x2ec   : > { %14508 = vmatmul.mubr.msk.f32.gmra.mrb[12].mxu1 %vm276_vm1, %v12301_v23  ;;  %15146 = vmatmul.mubr.msk.f32.gmra.mrb[4].mxu0 %vm276_vm1, %v18249_v38  ;;  %v12324_v38 = vld [vmem:[%s16071_s27 + $0x1a1] sm:$0xff] }
 0x2ed   : > { %14510 = vmatprep.mubr.msk.f32.mxu1 %vm276_vm1, %v12302_v33  ;;  %15148 = vmatprep.mubr.msk.f32.mxu0 %vm276_vm1, %v18252_v39  ;;  %v12325_v39 = vld [vmem:[%s16071_s27 + $0x1a9] sm:$0xff] }
 0x2f0   : > { %14511 = vmatmul.mubr.msk.f32.gmra.mrb[14].mxu1 %vm276_vm1, %v12303_v36  ;;  %15149 = vmatmul.mubr.msk.f32.gmra.mrb[6].mxu0 %vm276_vm1, %v18265_v45  ;;  %v12326_v45 = vld [vmem:[%s16071_s27 + $0x1b1] sm:$0xff] }
 0x2f1   : > { %14515 = vmatprep.mubr.msk.f32.mxu1 %vm276_vm1, %v12322_v37  ;;  %15151 = vmatprep.mubr.msk.f32.mxu0 %vm276_vm1, %v18270_v47  ;;  %v13038_v47 = vld [vmem:[%s16071_s27 + $0x152] sm:$0xff] }
 0x2f4   : > { %14516 = vmatmul.mubr.msk.f32.vlgmr.msra.gmra.mrb[0].mxu1 %vm276_vm1, %v12323_v30  ;;  %15152 = vmatmul.mubr.msk.f32.gmra.mrb[8].mxu0 %vm276_vm1, %v18282_v27  ;;  %v12327_v27 = vld [vmem:[%s16071_s27 + $0x1b9] sm:$0xff] }
 0x2f5   : > { %15190 = vmatpush3.msk.msra.mxu1 %vm325_vm0, %v15984_v6  ;;  %14518 = vmatprep.mubr.msk.f32.mxu1 %vm276_vm1, %v12324_v38 }
 0x2f6   : > { %15154 = vmatprep.mubr.msk.f32.mxu0 %vm276_vm1, %v18285_v58  ;;  %v12329_v58 = vld [vmem:[%s16071_s27 + $0x1c9] sm:$0xff] }
 0x2f8   : > { %14519 = vmatmul.mubr.msk.f32.gmra.mrb[2].mxu1 %vm276_vm1, %v12325_v39  ;;  %15155 = vmatmul.mubr.msk.f32.gmra.mrb[10].mxu0 %vm276_vm1, %v18296_v34  ;;  %v13041_v34 = vld [vmem:[%s16071_s27 + $0x16a] sm:$0xff] }
 0x2f9   : > { %14521 = vmatprep.mubr.msk.f32.mxu1 %vm276_vm1, %v12326_v45  ;;  %15157 = vmatprep.mubr.msk.f32.mxu0 %vm276_vm1, %v13038_v47 }
 0x2fc   : > { %14522 = vmatmul.mubr.msk.f32.gmra.mrb[4].mxu1 %vm276_vm1, %v12327_v27  ;;  %15158 = vmatmul.mubr.msk.f32.gmra.mrb[12].mxu0 %vm276_vm1, %v13039_v52 }
 0x2fd   : > { %14524 = vmatprep.mubr.msk.f32.mxu1 %vm276_vm1, %v12328_v56  ;;  %15160 = vmatprep.mubr.msk.f32.mxu0 %vm276_vm1, %v13040_v35 }
 0x300   : > { %14525 = vmatmul.mubr.msk.f32.gmra.mrb[6].mxu1 %vm276_vm1, %v12329_v58  ;;  %15161 = vmatmul.mubr.msk.f32.gmra.mrb[14].mxu0 %vm276_vm1, %v13041_v34 }
 0x301   : > { %14527 = vmatprep.mubr.msk.f32.mxu1 %vm276_vm1, %v12330_v26  ;;  %15165 = vmatprep.mubr.msk.f32.mxu0 %vm276_vm1, %v18320_v12  ;;  %v12335_v12 = vld [vmem:[%s16071_s27 + $0x1f9] sm:$0xff] }
 0x304   : > { %14528 = vmatmul.mubr.msk.f32.gmra.mrb[8].mxu1 %vm276_vm1, %v12331_v63  ;;  %15166 = vmatmul.mubr.msk.f32.vlgmr.msra.gmra.mrb[0].mxu0 %vm276_vm1, %v18331_v51  ;;  %v12336_v51 = vld [vmem:[%s16071_s27 + $0x201] sm:$0xff] }
 0x305   : > { %14530 = vmatprep.mubr.msk.f32.mxu1 %vm276_vm1, %v12332_v1  ;;  %15168 = vmatprep.mubr.msk.f32.mxu0 %vm276_vm1, %v18335_v62  ;;  %v12337_v62 = vld [vmem:[%s16071_s27 + $0x209] sm:$0xff] }
 0x308   : > { %14531 = vmatmul.mubr.msk.f32.gmra.mrb[10].mxu1 %vm276_vm1, %v12333_v44  ;;  %15169 = vmatmul.mubr.msk.f32.gmra.mrb[2].mxu0 %vm276_vm1, %v18345_v59  ;;  %v12364_v59 = vld [vmem:[%s16071_s27 + $0x291] sm:$0xff] }
 0x309   : > { %14533 = vmatprep.mubr.msk.f32.mxu1 %vm276_vm1, %v12334_v50  ;;  %15171 = vmatprep.mubr.msk.f32.mxu0 %vm276_vm1, %v18349_v19  ;;  %v12365_v19 = vld [vmem:[%s16071_s27 + $0x299] sm:$0xff] }
 0x30c   : > { %14534 = vmatmul.mubr.msk.f32.gmra.mrb[12].mxu1 %vm276_vm1, %v12335_v12  ;;  %15172 = vmatmul.mubr.msk.f32.gmra.mrb[4].mxu0 %vm276_vm1, %v18359_v32  ;;  %v12366_v32 = vld [vmem:[%s16071_s27 + $0x2a1] sm:$0xff] }
 0x30d   : > { %14536 = vmatprep.mubr.msk.f32.mxu1 %vm276_vm1, %v12336_v51  ;;  %15174 = vmatprep.mubr.msk.f32.mxu0 %vm276_vm1, %v18362_v0  ;;  %v12367_v0 = vld [vmem:[%s16071_s27 + $0x2a9] sm:$0xff] }
 0x310   : > { %14537 = vmatmul.mubr.msk.f32.gmra.mrb[14].mxu1 %vm276_vm1, %v12337_v62  ;;  %15175 = vmatmul.mubr.msk.f32.gmra.mrb[6].mxu0 %vm276_vm1, %v18375_v48  ;;  %v12368_v48 = vld [vmem:[%s16071_s27 + $0x2b1] sm:$0xff] }
 0x311   : > { %14553 = vmatprep.mubr.msk.f32.mxu1 %vm276_vm1, %v12364_v59  ;;  %15177 = vmatprep.mubr.msk.f32.mxu0 %vm276_vm1, %v18380_v43  ;;  %v12369_v43 = vld [vmem:[%s16071_s27 + $0x2b9] sm:$0xff] }
 0x314   : > { %14554 = vmatmul.mubr.msk.f32.vlgmr.msra.gmra.mrb[8].mxu1 %vm276_vm1, %v12365_v19  ;;  %15178 = vmatmul.mubr.msk.f32.gmra.mrb[8].mxu0 %vm276_vm1, %v18392_v15  ;;  %v11265_v15 = vld [vmem:[%s16071_s27 + $0x9b] sm:$0xff] }
 0x315   : > { %14556 = vmatprep.mubr.msk.f32.mxu1 %vm276_vm1, %v12366_v32  ;;  %15180 = vmatprep.mubr.msk.f32.mxu0 %vm276_vm1, %v18395_v24  ;;  %v12371_v24 = vld [vmem:[%s16071_s27 + $0x2c9] sm:$0xff] }
 0x318   : > { %14557 = vmatmul.mubr.msk.f32.gmra.mrb[10].mxu1 %vm276_vm1, %v12367_v0  ;;  %15181 = vmatmul.mubr.msk.f32.gmra.mrb[10].mxu0 %vm276_vm1, %v18406_v25 }
 0x319   : > { %14559 = vmatprep.mubr.msk.f32.mxu1 %vm276_vm1, %v12368_v48  ;;  %15183 = vmatprep.mubr.msk.f32.mxu0 %vm276_vm1, %v11264_v46 }
 0x31c   : > { %14560 = vmatmul.mubr.msk.f32.gmra.mrb[12].mxu1 %vm276_vm1, %v12369_v43  ;;  %15184 = vmatmul.mubr.msk.f32.gmra.mrb[12].mxu0 %vm276_vm1, %v11265_v15 }
 0x31d   : > { %14562 = vmatprep.mubr.msk.f32.mxu1 %vm276_vm1, %v12370_v17  ;;  %15186 = vmatprep.mubr.msk.f32.mxu0 %vm276_vm1, %v11266_v10 }
 0x320   : > { %14563 = vmatmul.mubr.msk.f32.gmra.mrb[14].mxu1 %vm276_vm1, %v12371_v24  ;;  %15187 = vmatmul.mubr.msk.f32.gmra.mrb[14].mxu0 %vm276_vm1, %v11267_v54 }
 0x3c7   : > { %v14517_v25 = vpop.f32.mrb[0].mxu1 }
 0x3c8   : > { %v5637_v57 = vpop.f32.mrb[1].mxu1 }
 0x3cb   : > { %v14520_v49 = vpop.f32.mrb[2].mxu1 }
 0x3cc   : > { %v5647_v61 = vpop.f32.mrb[3].mxu1 }
 0x3cf   : > { %v14523_v21 = vpop.f32.mrb[4].mxu1 }
 0x3d0   : > { %v5657_v2 = vpop.f32.mrb[5].mxu1 }
 0x3d3   : > { %v14526_v14 = vpop.f32.mrb[6].mxu1 }
 0x3d4   : > { %v5667_v4 = vpop.f32.mrb[7].mxu1 }
 0x3d7   : > { %v15167_v3 = vpop.f32.mrb[0].mxu0 }
 0x3d8   : > { %v15191_v40 = vadd.f32 %v15167_v3, %v14517_v25  ;;  %v11387_v7 = vpop.f32.mrb[1].mxu0 }
 0x3d9   : > { %v15192_v18 = vadd.f32 %v11387_v7, %v5637_v57 }
 0x3da   : > { %v11490_v22 = vadd.f32 %v15191_v40, %v18656_v55 }
 0x3db   : > { %v11489_v42 = vadd.f32 %v15192_v18, %v18656_v55  ;;  %v15170_v29 = vpop.f32.mrb[2].mxu0 }
 0x3dc   : > { %v11506_v31 = vmax.f32 %v11490_v22, 0.0  ;;  %v15193_v6 = vadd.f32 %v15170_v29, %v14520_v49  ;;  %v11397_v16 = vpop.f32.mrb[3].mxu0 }
 0x3dd   : > { %v11505_v8 = vmax.f32 %v11489_v42, 0.0  ;;  %v15194_v5 = vadd.f32 %v11397_v16, %v5647_v61 }
 0x3de   : > { %11523 = vst.msk [vmem:[%s18663_s9 + $0x8] sm:$0xff] %vm11521_vm2, %v11506_v31  ;;  %v11492_v60 = vadd.f32 %v15193_v6, %v18656_v55 }
 0x3df   : > { %11522 = vst.msk [vmem:[%s18663_s9] sm:$0xff] %vm11521_vm2, %v11505_v8  ;;  %v11491_v20 = vadd.f32 %v15194_v5, %v18656_v55  ;;  %v15173_v11 = vpop.f32.mrb[4].mxu0 }
 0x3e0   : > { %v11508_v9 = vmax.f32 %v11492_v60, 0.0  ;;  %v15195_v13 = vadd.f32 %v15173_v11, %v14523_v21  ;;  %v11407_v53 = vpop.f32.mrb[5].mxu0 }
 0x3e1   : > { %v11507_v28 = vmax.f32 %v11491_v20, 0.0  ;;  %v15196_v41 = vadd.f32 %v11407_v53, %v5657_v2 }
 0x3e2   : > { %11525 = vst.msk [vmem:[%s18663_s9 + $0x18] sm:$0xff] %vm11521_vm2, %v11508_v9  ;;  %v11494_v23 = vadd.f32 %v15195_v13, %v18656_v55 }
 0x3e3   : > { %11524 = vst.msk [vmem:[%s18663_s9 + $0x10] sm:$0xff] %vm11521_vm2, %v11507_v28  ;;  %v11493_v33 = vadd.f32 %v15196_v41, %v18656_v55  ;;  %v15176_v36 = vpop.f32.mrb[6].mxu0 }
 0x3e4   : > { %v11510_v37 = vmax.f32 %v11494_v23, 0.0  ;;  %v15197_v30 = vadd.f32 %v15176_v36, %v14526_v14  ;;  %v11417_v38 = vpop.f32.mrb[7].mxu0 }
 0x3e5   : > { %v11509_v39 = vmax.f32 %v11493_v33, 0.0  ;;  %v15198_v45 = vadd.f32 %v11417_v38, %v5667_v4 }
 0x3e6   : > { %11527 = vst.msk [vmem:[%s18663_s9 + $0x28] sm:$0xff] %vm11521_vm2, %v11510_v37  ;;  %v11496_v47 = vadd.f32 %v15197_v30, %v18656_v55 }
 0x3e7   : > { %11526 = vst.msk [vmem:[%s18663_s9 + $0x20] sm:$0xff] %vm11521_vm2, %v11509_v39  ;;  %v11495_v27 = vadd.f32 %v15198_v45, %v18656_v55  ;;  %v14555_v52 = vpop.f32.mrb[8].mxu1  ;;  %v15179_v56 = vpop.f32.mrb[8].mxu0 }
 0x3e8   : > { %v11512_v35 = vmax.f32 %v11496_v47, 0.0  ;;  %v15199_v58 = vadd.f32 %v15179_v56, %v14555_v52  ;;  %v5907_v34 = vpop.f32.mrb[9].mxu1  ;;  %v11427_v26 = vpop.f32.mrb[9].mxu0 }
 0x3e9   : > { %v11511_v63 = vmax.f32 %v11495_v27, 0.0  ;;  %v15200_v1 = vadd.f32 %v11427_v26, %v5907_v34 }
 0x3ea   : > { %11529 = vst.msk [vmem:[%s18663_s9 + $0x38] sm:$0xff] %vm11521_vm2, %v11512_v35  ;;  %v11498_v44 = vadd.f32 %v15199_v58, %v18656_v55 }
 0x3eb   : > { %11528 = vst.msk [vmem:[%s18663_s9 + $0x30] sm:$0xff] %vm11521_vm2, %v11511_v63  ;;  %v11497_v50 = vadd.f32 %v15200_v1, %v18656_v55  ;;  %v14558_v12 = vpop.f32.mrb[10].mxu1  ;;  %v15182_v51 = vpop.f32.mrb[10].mxu0 }
 0x3ec   : > { %v11514_v62 = vmax.f32 %v11498_v44, 0.0  ;;  %v15201_v59 = vadd.f32 %v15182_v51, %v14558_v12  ;;  %v5917_v19 = vpop.f32.mrb[11].mxu1  ;;  %v11437_v32 = vpop.f32.mrb[11].mxu0 }
 0x3ed   : > { %v11513_v0 = vmax.f32 %v11497_v50, 0.0  ;;  %v15202_v48 = vadd.f32 %v11437_v32, %v5917_v19 }
 0x3ee   : > { %11531 = vst.msk [vmem:[%s18663_s9 + $0x48] sm:$0xff] %vm11521_vm2, %v11514_v62  ;;  %v11500_v46 = vadd.f32 %v15201_v59, %v18656_v55 }
 0x3ef   : > { %11530 = vst.msk [vmem:[%s18663_s9 + $0x40] sm:$0xff] %vm11521_vm2, %v11513_v0  ;;  %v11499_v43 = vadd.f32 %v15202_v48, %v18656_v55  ;;  %v14561_v15 = vpop.f32.mrb[12].mxu1  ;;  %v15185_v17 = vpop.f32.mrb[12].mxu0 }
 0x3f0   : > { %v11516_v10 = vmax.f32 %v11500_v46, 0.0  ;;  %v15203_v24 = vadd.f32 %v15185_v17, %v14561_v15  ;;  %v5927_v54 = vpop.f32.mrb[13].mxu1  ;;  %v11447_v25 = vpop.f32.mrb[13].mxu0 }
 0x3f1   : > { %v11515_v57 = vmax.f32 %v11499_v43, 0.0  ;;  %v15204_v49 = vadd.f32 %v11447_v25, %v5927_v54 }
 0x3f2   : > { %11533 = vst.msk [vmem:[%s18663_s9 + $0x58] sm:$0xff] %vm11521_vm2, %v11516_v10  ;;  %v11502_v61 = vadd.f32 %v15203_v24, %v18656_v55 }
 0x3f3   : > { %11532 = vst.msk [vmem:[%s18663_s9 + $0x50] sm:$0xff] %vm11521_vm2, %v11515_v57  ;;  %v11501_v21 = vadd.f32 %v15204_v49, %v18656_v55  ;;  %v14564_v2 = vpop.f32.mrb[14].mxu1  ;;  %v15188_v14 = vpop.f32.mrb[14].mxu0 }
 0x3f4   : > { %v11518_v4 = vmax.f32 %v11502_v61, 0.0  ;;  %v15205_v3 = vadd.f32 %v15188_v14, %v14564_v2  ;;  %v5937_v40 = vpop.f32.mrb[15].mxu1  ;;  %v11457_v7 = vpop.f32.mrb[15].mxu0 }
 0x3f5   : > { %v11517_v18 = vmax.f32 %v11501_v21, 0.0  ;;  %v15206_v22 = vadd.f32 %v11457_v7, %v5937_v40 }
 0x3f6   : > { %11535 = vst.msk [vmem:[%s18663_s9 + $0x68] sm:$0xff] %vm11521_vm2, %v11518_v4  ;;  %v11504_v42 = vadd.f32 %v15205_v3, %v18656_v55 }
 0x3f7   : > { %11534 = vst.msk [vmem:[%s18663_s9 + $0x60] sm:$0xff] %vm11521_vm2, %v11517_v18  ;;  %v11503_v29 = vadd.f32 %v15206_v22, %v18656_v55 }
 0x3f8   : > { %v11520_v31 = vmax.f32 %v11504_v42, 0.0 }
 0x3f9   : > { %v11519_v6 = vmax.f32 %v11503_v29, 0.0 }
 0x3fa   : > { %11537 = vst.msk [vmem:[%s18663_s9 + $0x78] sm:$0xff] %vm11521_vm2, %v11520_v31 }
 0x3fb   : > { %11536 = vst.msk [vmem:[%s18663_s9 + $0x70] sm:$0xff] %vm11521_vm2, %v11519_v6 }
 0x3fc PF: > { %s13_s14 = sadd.s32 1, %s16007_s14   ;;  %s18725_s12 = smov %s16003_s13 }
 0x3fd   : > { %p10_p5 = scmp.ge.s32.totalorder %s13_s14, 4   ;;  %s18726_s13 = smov %s18728_s15 }
 0x3ff   :  { %12 = sbr.rel (!%p10_p5) target bundleno = 2 (0x2), region = 119 }

</bundles_post_ra>
